<compile_context>
chip_gen: v6e
topology: v6e:2x2x1
jax: 0.10.0
libtpu: 0.0.40
codegen_flags: <defaults>
</compile_context>

<pallas_src>
import functools
import math

import jax
import jax.numpy as jnp
from jax.experimental import pallas as pl
from jax.experimental.pallas import tpu as pltpu

PAD_IDX = 0
LANE = 128  # lane-dense width for the logits store / packed attention weights

CFG = dict(vocab=16, d_model=32, heads=4, d_ff=64, layers=2, seq=8)


# ----------------------------- fused Pallas kernel ---------------------------

def _transformer_kernel(acts_ref, masks_ref, attn_w_ref, attn_b_ref,
                        ffn_w1_ref, ffn_w2_ref, ffn_b_ref, ln_ref,
                        gen_w_ref, gen_b_ref, out_ref, *, cfg):
    """Whole encoder-decoder forward for ONE batch element (grid=(B,)).

    Packed-slab layout (all indices static Python ints, no per-leaf refs):
      acts_ref   [1, 2S, D]  f32 : rows 0:S enc embeddings, S:2S dec embeddings
      masks_ref  [1, 3S, S]  f32 : rows 0:S src, S:2S dst(tril), 2S:3S src-dst
      attn_w_ref [NA, D, 4D] bf16: cols [Wq*scale | Wk | Wv | Wo]
      attn_b_ref [NA, 2, 4D] f32 : row0 = [bq*scale|bk|bv|0], row1 = [bo|0]
      ffn_w1_ref [NF, D, F]  bf16 , ffn_w2_ref [NF, F, D] bf16
      ffn_b_ref  [NF, 2, F]  f32 : row0 = b1, row1 = [b2|0]
      ln_ref     [NL, 2, D]  f32 : row0 = gamma, row1 = beta
      gen_w_ref  [D, 128]    bf16, gen_b_ref [1, 128] f32 (vocab padded to 128)
    """
    D = cfg["d_model"]
    H = cfg["heads"]
    Dh = D // H
    S = cfg["seq"]
    L = cfg["layers"]
    bf16 = jnp.bfloat16

    x_enc = acts_ref[0, 0:S, :]            # [S, D]
    x_dec = acts_ref[0, S:2 * S, :]
    src_m = masks_ref[0, 0:S, :]           # [S, S] additive (0 / -1e9)
    dst_m = masks_ref[0, S:2 * S, :]
    sd_m = masks_ref[0, 2 * S:3 * S, :]

    def layer_norm(x, ln_idx, eps=1e-6):
        # TODO(synk): torch.nn.LayerNorm default eps is 1e-5; reference config
        # (annotated-transformer style) uses 1e-6 — adjust if bit-matching.
        g = ln_ref[ln_idx, 0:1, :]
        b = ln_ref[ln_idx, 1:2, :]
        mean = jnp.mean(x, axis=-1, keepdims=True)
        var = jnp.mean((x - mean) ** 2, axis=-1, keepdims=True)
        return (x - mean) * jax.lax.rsqrt(var + eps) * g + b

    def attend(a_idx, x_q, x_kv, mask, self_attn):
        w = attn_w_ref[a_idx]              # [D, 4D] bf16
        b = attn_b_ref[a_idx]              # [2, 4D] f32
        wqkv = w[:, 0:3 * D]
        wo = w[:, 3 * D:4 * D]
        bqkv = b[0:1, 0:3 * D]
        bo = b[1:2, 0:D]

        if self_attn:
            # single merged QKV projection  [S,D] @ [D,3D]
            qkv = jnp.dot(x_q.astype(bf16), wqkv,
                          preferred_element_type=jnp.float32) + bqkv
            q_all = qkv[:, 0:D]
            k_all = qkv[:, D:2 * D]
            v_all = qkv[:, 2 * D:3 * D]
        else:
            q_all = jnp.dot(x_q.astype(bf16), wqkv[:, 0:D],
                            preferred_element_type=jnp.float32) + bqkv[:, 0:D]
            kv = jnp.dot(x_kv.astype(bf16), wqkv[:, D:3 * D],
                         preferred_element_type=jnp.float32) + bqkv[:, D:3 * D]
            k_all = kv[:, 0:D]
            v_all = kv[:, D:2 * D]

        # Per-head softmax attention (scale already folded into Wq/bq).
        # TODO(synk): heads could be batched into one block-diagonal score
        # matmul, but that needs in-kernel [S,H,Dh]->[H,S,Dh] relayouts; at
        # these shapes the per-head loop is small and lowers cleanly.
        heads = []
        for h in range(H):
            q = q_all[:, h * Dh:(h + 1) * Dh].astype(bf16)
            k = k_all[:, h * Dh:(h + 1) * Dh].astype(bf16)
            v = v_all[:, h * Dh:(h + 1) * Dh].astype(bf16)
            s = jax.lax.dot_general(q, k, (((1,), (1,)), ((), ())),
                                    preferred_element_type=jnp.float32)
            s = s + mask
            s = s - jnp.max(s, axis=-1, keepdims=True)
            e = jnp.exp(s)
            p = e * pl.reciprocal(jnp.sum(e, axis=-1, keepdims=True),
                                  approx=True)
            heads.append(jnp.dot(p.astype(bf16), v,
                                 preferred_element_type=jnp.float32))  # [S,Dh]
        o = jnp.concatenate(heads, axis=-1)                            # [S, D]
        # single merged output projection
        return jnp.dot(o.astype(bf16), wo,
                       preferred_element_type=jnp.float32) + bo

    def ffn(x, f_idx):
        fb = ffn_b_ref[f_idx]
        h1 = jnp.dot(x.astype(bf16), ffn_w1_ref[f_idx],
                     preferred_element_type=jnp.float32) + fb[0:1, :]
        h1 = jnp.maximum(h1, 0.0)
        return jnp.dot(h1.astype(bf16), ffn_w2_ref[f_idx],
                       preferred_element_type=jnp.float32) + fb[1:2, 0:D]

    # ---------------- encoder ----------------
    hx = x_enc
    for l in range(L):
        a = attend(l, hx, hx, src_m, self_attn=True)
        hx = layer_norm(hx + a, 2 * l + 0)
        f = ffn(hx, l)
        hx = layer_norm(hx + f, 2 * l + 1)
    context = hx

    # ---------------- decoder ----------------
    hz = x_dec
    for l in range(L):
        sa_idx = L + 2 * l
        ca_idx = L + 2 * l + 1
        ln_base = 2 * L + 3 * l
        a = attend(sa_idx, hz, hz, dst_m, self_attn=True)
        hz = layer_norm(hz + a, ln_base + 0)
        c = attend(ca_idx, hz, context, sd_m, self_attn=False)
        hz = layer_norm(hz + c, ln_base + 1)
        f = ffn(hz, L + l)
        hz = layer_norm(hz + f, ln_base + 2)

    # final vocab projection, lane-dense padded width -> unmasked store
    logits = jnp.dot(hz.astype(bf16), gen_w_ref[...],
                     preferred_element_type=jnp.float32) + gen_b_ref[...]
    out_ref[0] = logits


# ----------------------------- JAX glue (masks / embed) ----------------------

def sinusoidal_pos(S, D):
    pos = jnp.arange(S, dtype=jnp.float32)[:, None]
    i = jnp.arange(D // 2, dtype=jnp.float32)[None, :]
    angle = pos / jnp.power(10000.0, 2.0 * i / D)
    pe = jnp.zeros((S, D), jnp.float32)
    pe = pe.at[:, 0::2].set(jnp.sin(angle))
    pe = pe.at[:, 1::2].set(jnp.cos(angle))
    return pe


def init_mask_padding(q_tok, k_tok):
    # additive mask [B, Sq, Sk]: 0 where key token is not PAD, -1e9 otherwise
    valid = (k_tok != PAD_IDX)[:, None, :]
    m = jnp.where(valid, 0.0, -1e9).astype(jnp.float32)
    return jnp.broadcast_to(m, (q_tok.shape[0], q_tok.shape[1], k_tok.shape[1]))


def init_mask_tril(q_tok, k_tok):
    Sq, Sk = q_tok.shape[1], k_tok.shape[1]
    tri = jnp.tril(jnp.ones((Sq, Sk), jnp.float32))
    m = jnp.where(tri > 0, 0.0, -1e9).astype(jnp.float32)
    return jnp.broadcast_to(m[None], (q_tok.shape[0], Sq, Sk))


def embed(emb_table, tokens, d_model):
    # TODO(synk): embedding gather stays in plain JAX (no Pallas gather worth it
    # at vocab=16).
    e = emb_table[tokens] * math.sqrt(d_model)
    S = tokens.shape[1]
    return e + sinusoidal_pos(S, d_model)[None]


# ----------------------------- param packing ---------------------------------

def _pack_params(params, cfg):
    """Repack the parameter pytree into a handful of lane-dense stacked slabs."""
    D, F, V, H = cfg["d_model"], cfg["d_ff"], cfg["vocab"], cfg["heads"]
    Dh = D // H
    scale = 1.0 / math.sqrt(Dh)
    bf16 = jnp.bfloat16

    def attn_pack(ap):
        # [D, 4D]: [Wq*scale | Wk | Wv | Wo]  (4D == 128 for this config)
        w = jnp.concatenate([ap["wq"]["w"] * scale, ap["wk"]["w"],
                             ap["wv"]["w"], ap["wo"]["w"]], axis=1)
        b = jnp.zeros((2, 4 * D), jnp.float32)
        b = b.at[0, 0:D].set(ap["wq"]["b"][0] * scale)
        b = b.at[0, D:2 * D].set(ap["wk"]["b"][0])
        b = b.at[0, 2 * D:3 * D].set(ap["wv"]["b"][0])
        b = b.at[1, 0:D].set(ap["wo"]["b"][0])
        return w, b

    # attention block order: enc0..encL-1, then (dec_l.self, dec_l.cross) per l
    attn_blocks = [lp["self_attn"] for lp in params["enc_layers"]]
    for lp in params["dec_layers"]:
        attn_blocks += [lp["self_attn"], lp["cross_attn"]]
    ws, bs = zip(*[attn_pack(ap) for ap in attn_blocks])
    attn_w = jnp.stack(ws).astype(bf16)          # [NA, D, 4D] bf16
    attn_b = jnp.stack(bs)                       # [NA, 2, 4D] f32

    # FFN block order: enc0..encL-1, dec0..decL-1
    ffn_blocks = ([lp["ffn"] for lp in params["enc_layers"]]
                  + [lp["ffn"] for lp in params["dec_layers"]])
    ffn_w1 = jnp.stack([fp["w1"] for fp in ffn_blocks]).astype(bf16)   # [NF,D,F]
    ffn_w2 = jnp.stack([fp["w2"] for fp in ffn_blocks]).astype(bf16)   # [NF,F,D]
    ffn_b = jnp.stack([
        jnp.zeros((2, F), jnp.float32)
           .at[0, :].set(fp["b1"][0])
           .at[1, 0:D].set(fp["b2"][0])
        for fp in ffn_blocks])                                         # [NF,2,F]

    # LayerNorm order: enc(l): ln1, ln2 ; dec(l): ln1, ln2, ln3
    ln_blocks = []
    for lp in params["enc_layers"]:
        ln_blocks += [lp["ln1"], lp["ln2"]]
    for lp in params["dec_layers"]:
        ln_blocks += [lp["ln1"], lp["ln2"], lp["ln3"]]
    ln_gb = jnp.stack([jnp.concatenate([ln["g"], ln["b"]], axis=0)
                       for ln in ln_blocks])                           # [NL,2,D]

    # generator padded to lane-dense width (128)
    gen_w = (jnp.zeros((D, LANE), jnp.float32)
             .at[:, :V].set(params["gen"]["w"])).astype(bf16)
    gen_b = jnp.zeros((1, LANE), jnp.float32).at[:, :V].set(params["gen"]["b"])

    return dict(attn_w=attn_w, attn_b=attn_b, ffn_w1=ffn_w1, ffn_w2=ffn_w2,
                ffn_b=ffn_b, ln_gb=ln_gb, gen_w=gen_w, gen_b=gen_b)


# ----------------------------- forward ---------------------------------------

def transformer_forward(params, x_tok, z_tok, cfg):
    B, S = x_tok.shape
    D, V = cfg["d_model"], cfg["vocab"]

    # masks exactly as in the reference forward()
    src_mask = init_mask_padding(x_tok, x_tok)        # method='padding'
    dst_mask = init_mask_tril(z_tok, z_tok)           # method='tril'
    src_dst_mask = init_mask_padding(z_tok, x_tok)    # method='padding'
    masks = jnp.concatenate([src_mask, dst_mask, src_dst_mask], axis=1)  # [B,3S,S]

    enc_x = embed(params["enc_emb"], x_tok, D)        # [B, S, D]
    dec_x = embed(params["dec_emb"], z_tok, D)
    acts = jnp.concatenate([enc_x, dec_x], axis=1)    # [B, 2S, D]

    packed = _pack_params(params, cfg)
    kernel = functools.partial(_transformer_kernel, cfg=cfg)

    def resident(x):
        # whole array as one VMEM-resident block, constant across grid steps
        nz = (0,) * x.ndim
        return pl.BlockSpec(x.shape, lambda b, nz=nz: nz)

    logits_pad = pl.pallas_call(
        kernel,
        out_shape=jax.ShapeDtypeStruct((B, S, LANE), jnp.float32),
        grid=(B,),
        in_specs=[
            pl.BlockSpec((1, 2 * S, D), lambda b: (b, 0, 0)),   # acts
            pl.BlockSpec((1, 3 * S, S), lambda b: (b, 0, 0)),   # masks
            resident(packed["attn_w"]),
            resident(packed["attn_b"]),
            resident(packed["ffn_w1"]),
            resident(packed["ffn_w2"]),
            resident(packed["ffn_b"]),
            resident(packed["ln_gb"]),
            resident(packed["gen_w"]),
            resident(packed["gen_b"]),
        ],
        out_specs=pl.BlockSpec((1, S, LANE), lambda b: (b, 0, 0)),
        compiler_params=pltpu.CompilerParams(
            dimension_semantics=("parallel",)),   # v7x: batch over both TCs
    )(acts, masks,
      packed["attn_w"], packed["attn_b"], packed["ffn_w1"], packed["ffn_w2"],
      packed["ffn_b"], packed["ln_gb"], packed["gen_w"], packed["gen_b"])

    return logits_pad[:, :, :V]


# ----------------------------- parameter init --------------------------------

def init_params(key, cfg):
    D, F, V = cfg["d_model"], cfg["d_ff"], cfg["vocab"]

    def dense(k, din, dout):
        return {"w": 0.02 * jax.random.normal(k, (din, dout), jnp.float32),
                "b": jnp.zeros((1, dout), jnp.float32)}

    def ln():
        return {"g": jnp.ones((1, D), jnp.float32),
                "b": jnp.zeros((1, D), jnp.float32)}

    def attn_block(k):
        ks = jax.random.split(k, 4)
        return {"wq": dense(ks[0], D, D), "wk": dense(ks[1], D, D),
                "wv": dense(ks[2], D, D), "wo": dense(ks[3], D, D)}

    def ffn_block(k):
        k1, k2 = jax.random.split(k)
        return {"w1": 0.02 * jax.random.normal(k1, (D, F), jnp.float32),
                "b1": jnp.zeros((1, F), jnp.float32),
                "w2": 0.02 * jax.random.normal(k2, (F, D), jnp.float32),
                "b2": jnp.zeros((1, D), jnp.float32)}

    keys = jax.random.split(key, 4 + 2 * cfg["layers"])
    params = {
        "enc_emb": 0.02 * jax.random.normal(keys[0], (V, D), jnp.float32),
        "dec_emb": 0.02 * jax.random.normal(keys[1], (V, D), jnp.float32),
        "gen": dense(keys[2], D, V),
        "enc_layers": [],
        "dec_layers": [],
    }
    for l in range(cfg["layers"]):
        ke = jax.random.split(keys[3 + l], 2)
        params["enc_layers"].append({"self_attn": attn_block(ke[0]),
                                     "ffn": ffn_block(ke[1]),
                                     "ln1": ln(), "ln2": ln()})
        kd = jax.random.split(keys[3 + cfg["layers"] + l], 3)
        params["dec_layers"].append({"self_attn": attn_block(kd[0]),
                                     "cross_attn": attn_block(kd[1]),
                                     "ffn": ffn_block(kd[2]),
                                     "ln1": ln(), "ln2": ln(), "ln3": ln()})
    return params


# --------------------------------- main ---------------------------------------

if __name__ == "__main__":
    cfg = CFG
    B, S = 2, cfg["seq"]

    key = jax.random.PRNGKey(0)
    k_p, k_x, k_z = jax.random.split(key, 3)

    params = init_params(k_p, cfg)

    # token ids in [1, vocab); force trailing PAD tokens so padding masks matter
    x_tok = jax.random.randint(k_x, (B, S), 1, cfg["vocab"], dtype=jnp.int32)
    z_tok = jax.random.randint(k_z, (B, S), 1, cfg["vocab"], dtype=jnp.int32)
    x_tok = x_tok.at[:, -2:].set(PAD_IDX)
    z_tok = z_tok.at[0, -1:].set(PAD_IDX)

    out = transformer_forward(params, x_tok, z_tok, cfg)
    out = jax.block_until_ready(out)

    assert out.shape == (B, S, cfg["vocab"]), out.shape
    assert bool(jnp.all(jnp.isfinite(out)))
    print("KERNEL_OK")
</pallas_src>

<mosaic_0001>
module attributes {stable_mosaic.version = 11 : i64} {
  func.func @_transformer_kernel(%arg0: i32, %arg1: memref<1x16x32xf32, #tpu.memory_space<vmem>>, %arg2: memref<1x24x8xf32, #tpu.memory_space<vmem>>, %arg3: memref<6x32x128xbf16, #tpu.memory_space<vmem>>, %arg4: memref<6x2x128xf32, #tpu.memory_space<vmem>>, %arg5: memref<4x32x64xbf16, #tpu.memory_space<vmem>>, %arg6: memref<4x64x32xbf16, #tpu.memory_space<vmem>>, %arg7: memref<4x2x64xf32, #tpu.memory_space<vmem>>, %arg8: memref<10x2x32xf32, #tpu.memory_space<vmem>>, %arg9: memref<32x128xbf16, #tpu.memory_space<vmem>>, %arg10: memref<1x128xf32, #tpu.memory_space<vmem>>, %arg11: memref<1x8x128xf32, #tpu.memory_space<vmem>>) attributes {dimension_semantics = [#tpu.dimension_semantics<parallel>], iteration_bounds = array<i64: 2>, scalar_prefetch = 0 : i64, scratch_operands = 0 : i64, tpu.core_type = #tpu.core_type<tc>, window_params = [{transform_indices = @transform_0, window_bounds = array<i64: 1, 16, 32>}, {transform_indices = @transform_1, window_bounds = array<i64: 1, 24, 8>}, {pipeline_mode = #tpu.pipeline_mode<synchronous>, transform_indices = @transform_2, window_bounds = array<i64: 6, 32, 128>}, {pipeline_mode = #tpu.pipeline_mode<synchronous>, transform_indices = @transform_3, window_bounds = array<i64: 6, 2, 128>}, {pipeline_mode = #tpu.pipeline_mode<synchronous>, transform_indices = @transform_4, window_bounds = array<i64: 4, 32, 64>}, {pipeline_mode = #tpu.pipeline_mode<synchronous>, transform_indices = @transform_5, window_bounds = array<i64: 4, 64, 32>}, {pipeline_mode = #tpu.pipeline_mode<synchronous>, transform_indices = @transform_6, window_bounds = array<i64: 4, 2, 64>}, {pipeline_mode = #tpu.pipeline_mode<synchronous>, transform_indices = @transform_7, window_bounds = array<i64: 10, 2, 32>}, {pipeline_mode = #tpu.pipeline_mode<synchronous>, transform_indices = @transform_8, window_bounds = array<i64: 32, 128>}, {pipeline_mode = #tpu.pipeline_mode<synchronous>, transform_indices = @transform_9, window_bounds = array<i64: 1, 128>}, {transform_indices = @transform_10, window_bounds = array<i64: 1, 8, 128>}]} {
    %c0 = arith.constant 0 : index
    %c0_0 = arith.constant 0 : index
    %c0_1 = arith.constant 0 : index
    %0 = vector.load %arg1[%c0, %c0_0, %c0_1] : memref<1x16x32xf32, #tpu.memory_space<vmem>>, vector<1x8x32xf32>
    %1 = vector.shape_cast %0 : vector<1x8x32xf32> to vector<8x32xf32>
    %c0_2 = arith.constant 0 : index
    %c8 = arith.constant 8 : index
    %c0_3 = arith.constant 0 : index
    %2 = vector.load %arg1[%c0_2, %c8, %c0_3] : memref<1x16x32xf32, #tpu.memory_space<vmem>>, vector<1x8x32xf32>
    %3 = vector.shape_cast %2 : vector<1x8x32xf32> to vector<8x32xf32>
    %c0_4 = arith.constant 0 : index
    %c0_5 = arith.constant 0 : index
    %c0_6 = arith.constant 0 : index
    %4 = vector.load %arg2[%c0_4, %c0_5, %c0_6] : memref<1x24x8xf32, #tpu.memory_space<vmem>>, vector<1x8x8xf32>
    %5 = vector.shape_cast %4 : vector<1x8x8xf32> to vector<8x8xf32>
    %c0_7 = arith.constant 0 : index
    %c8_8 = arith.constant 8 : index
    %c0_9 = arith.constant 0 : index
    %6 = vector.load %arg2[%c0_7, %c8_8, %c0_9] : memref<1x24x8xf32, #tpu.memory_space<vmem>>, vector<1x8x8xf32>
    %7 = vector.shape_cast %6 : vector<1x8x8xf32> to vector<8x8xf32>
    %c0_10 = arith.constant 0 : index
    %c16 = arith.constant 16 : index
    %c0_11 = arith.constant 0 : index
    %8 = vector.load %arg2[%c0_10, %c16, %c0_11] : memref<1x24x8xf32, #tpu.memory_space<vmem>>, vector<1x8x8xf32>
    %9 = vector.shape_cast %8 : vector<1x8x8xf32> to vector<8x8xf32>
    %c0_12 = arith.constant 0 : index
    %c0_13 = arith.constant 0 : index
    %c0_14 = arith.constant 0 : index
    %10 = vector.load %arg3[%c0_12, %c0_13, %c0_14] : memref<6x32x128xbf16, #tpu.memory_space<vmem>>, vector<1x32x128xbf16>
    %11 = vector.shape_cast %10 : vector<1x32x128xbf16> to vector<32x128xbf16>
    %c0_15 = arith.constant 0 : index
    %c0_16 = arith.constant 0 : index
    %c0_17 = arith.constant 0 : index
    %12 = vector.load %arg4[%c0_15, %c0_16, %c0_17] : memref<6x2x128xf32, #tpu.memory_space<vmem>>, vector<1x2x128xf32>
    %13 = vector.shape_cast %12 : vector<1x2x128xf32> to vector<2x128xf32>
    %14 = vector.extract_strided_slice %11 {offsets = [0, 0], sizes = [32, 96], strides = [1, 1]} : vector<32x128xbf16> to vector<32x96xbf16>
    %15 = vector.extract_strided_slice %11 {offsets = [0, 96], sizes = [32, 32], strides = [1, 1]} : vector<32x128xbf16> to vector<32x32xbf16>
    %16 = vector.extract_strided_slice %13 {offsets = [0, 0], sizes = [1, 96], strides = [1, 1]} : vector<2x128xf32> to vector<1x96xf32>
    %17 = vector.extract_strided_slice %13 {offsets = [1, 0], sizes = [1, 32], strides = [1, 1]} : vector<2x128xf32> to vector<1x32xf32>
    %18 = arith.truncf %1 : vector<8x32xf32> to vector<8x32xbf16>
    %cst = arith.constant dense<0.000000e+00> : vector<8x96xf32>
    %19 = tpu.matmul %18, %14, %cst {dimension_numbers = #tpu.dot_dimension_numbers<[1], [0], [0], [1], [0, 0, 1, 1], [], []>} : vector<8x32xbf16>, vector<32x96xbf16>, vector<8x96xf32> -> vector<8x96xf32>
    %20 = vector.broadcast %16 : vector<1x96xf32> to vector<8x96xf32>
    %21 = arith.addf %19, %20 : vector<8x96xf32>
    %22 = vector.extract_strided_slice %21 {offsets = [0, 0], sizes = [8, 32], strides = [1, 1]} : vector<8x96xf32> to vector<8x32xf32>
    %23 = vector.extract_strided_slice %21 {offsets = [0, 32], sizes = [8, 32], strides = [1, 1]} : vector<8x96xf32> to vector<8x32xf32>
    %24 = vector.extract_strided_slice %21 {offsets = [0, 64], sizes = [8, 32], strides = [1, 1]} : vector<8x96xf32> to vector<8x32xf32>
    %25 = vector.extract_strided_slice %22 {offsets = [0, 0], sizes = [8, 8], strides = [1, 1]} : vector<8x32xf32> to vector<8x8xf32>
    %26 = arith.truncf %25 : vector<8x8xf32> to vector<8x8xbf16>
    %27 = vector.extract_strided_slice %23 {offsets = [0, 0], sizes = [8, 8], strides = [1, 1]} : vector<8x32xf32> to vector<8x8xf32>
    %28 = arith.truncf %27 : vector<8x8xf32> to vector<8x8xbf16>
    %29 = vector.extract_strided_slice %24 {offsets = [0, 0], sizes = [8, 8], strides = [1, 1]} : vector<8x32xf32> to vector<8x8xf32>
    %30 = arith.truncf %29 : vector<8x8xf32> to vector<8x8xbf16>
    %cst_18 = arith.constant dense<0.000000e+00> : vector<8x8xf32>
    %31 = tpu.matmul %26, %28, %cst_18 {dimension_numbers = #tpu.dot_dimension_numbers<[1], [1], [0], [0], [0, 0, 1, 0], [], []>} : vector<8x8xbf16>, vector<8x8xbf16>, vector<8x8xf32> -> vector<8x8xf32>
    %32 = arith.addf %31, %5 : vector<8x8xf32>
    %cst_19 = arith.constant dense<0xFF800000> : vector<8xf32>
    %33 = vector.multi_reduction <maximumf>, %32, %cst_19 [1] : vector<8x8xf32> to vector<8xf32>
    %34 = vector.shape_cast %33 : vector<8xf32> to vector<8x1xf32>
    %35 = vector.broadcast %34 : vector<8x1xf32> to vector<8x8xf32>
    %36 = arith.subf %32, %35 : vector<8x8xf32>
    %37 = math.exp %36 : vector<8x8xf32>
    %cst_20 = arith.constant dense<0.000000e+00> : vector<8xf32>
    %38 = vector.multi_reduction <add>, %37, %cst_20 [1] : vector<8x8xf32> to vector<8xf32>
    %39 = vector.shape_cast %38 : vector<8xf32> to vector<8x1xf32>
    %40 = tpu.reciprocal %39 {approx = true} : vector<8x1xf32> -> vector<8x1xf32>
    %41 = vector.broadcast %40 : vector<8x1xf32> to vector<8x8xf32>
    %42 = arith.mulf %37, %41 : vector<8x8xf32>
    %43 = arith.truncf %42 : vector<8x8xf32> to vector<8x8xbf16>
    %cst_21 = arith.constant dense<0.000000e+00> : vector<8x8xf32>
    %44 = tpu.matmul %43, %30, %cst_21 {dimension_numbers = #tpu.dot_dimension_numbers<[1], [0], [0], [1], [0, 0, 1, 1], [], []>} : vector<8x8xbf16>, vector<8x8xbf16>, vector<8x8xf32> -> vector<8x8xf32>
    %45 = vector.extract_strided_slice %22 {offsets = [0, 8], sizes = [8, 8], strides = [1, 1]} : vector<8x32xf32> to vector<8x8xf32>
    %46 = arith.truncf %45 : vector<8x8xf32> to vector<8x8xbf16>
    %47 = vector.extract_strided_slice %23 {offsets = [0, 8], sizes = [8, 8], strides = [1, 1]} : vector<8x32xf32> to vector<8x8xf32>
    %48 = arith.truncf %47 : vector<8x8xf32> to vector<8x8xbf16>
    %49 = vector.extract_strided_slice %24 {offsets = [0, 8], sizes = [8, 8], strides = [1, 1]} : vector<8x32xf32> to vector<8x8xf32>
    %50 = arith.truncf %49 : vector<8x8xf32> to vector<8x8xbf16>
    %cst_22 = arith.constant dense<0.000000e+00> : vector<8x8xf32>
    %51 = tpu.matmul %46, %48, %cst_22 {dimension_numbers = #tpu.dot_dimension_numbers<[1], [1], [0], [0], [0, 0, 1, 0], [], []>} : vector<8x8xbf16>, vector<8x8xbf16>, vector<8x8xf32> -> vector<8x8xf32>
    %52 = arith.addf %51, %5 : vector<8x8xf32>
    %cst_23 = arith.constant dense<0xFF800000> : vector<8xf32>
    %53 = vector.multi_reduction <maximumf>, %52, %cst_23 [1] : vector<8x8xf32> to vector<8xf32>
    %54 = vector.shape_cast %53 : vector<8xf32> to vector<8x1xf32>
    %55 = vector.broadcast %54 : vector<8x1xf32> to vector<8x8xf32>
    %56 = arith.subf %52, %55 : vector<8x8xf32>
    %57 = math.exp %56 : vector<8x8xf32>
    %cst_24 = arith.constant dense<0.000000e+00> : vector<8xf32>
    %58 = vector.multi_reduction <add>, %57, %cst_24 [1] : vector<8x8xf32> to vector<8xf32>
    %59 = vector.shape_cast %58 : vector<8xf32> to vector<8x1xf32>
    %60 = tpu.reciprocal %59 {approx = true} : vector<8x1xf32> -> vector<8x1xf32>
    %61 = vector.broadcast %60 : vector<8x1xf32> to vector<8x8xf32>
    %62 = arith.mulf %57, %61 : vector<8x8xf32>
    %63 = arith.truncf %62 : vector<8x8xf32> to vector<8x8xbf16>
    %cst_25 = arith.constant dense<0.000000e+00> : vector<8x8xf32>
    %64 = tpu.matmul %63, %50, %cst_25 {dimension_numbers = #tpu.dot_dimension_numbers<[1], [0], [0], [1], [0, 0, 1, 1], [], []>} : vector<8x8xbf16>, vector<8x8xbf16>, vector<8x8xf32> -> vector<8x8xf32>
    %65 = vector.extract_strided_slice %22 {offsets = [0, 16], sizes = [8, 8], strides = [1, 1]} : vector<8x32xf32> to vector<8x8xf32>
    %66 = arith.truncf %65 : vector<8x8xf32> to vector<8x8xbf16>
    %67 = vector.extract_strided_slice %23 {offsets = [0, 16], sizes = [8, 8], strides = [1, 1]} : vector<8x32xf32> to vector<8x8xf32>
    %68 = arith.truncf %67 : vector<8x8xf32> to vector<8x8xbf16>
    %69 = vector.extract_strided_slice %24 {offsets = [0, 16], sizes = [8, 8], strides = [1, 1]} : vector<8x32xf32> to vector<8x8xf32>
    %70 = arith.truncf %69 : vector<8x8xf32> to vector<8x8xbf16>
    %cst_26 = arith.constant dense<0.000000e+00> : vector<8x8xf32>
    %71 = tpu.matmul %66, %68, %cst_26 {dimension_numbers = #tpu.dot_dimension_numbers<[1], [1], [0], [0], [0, 0, 1, 0], [], []>} : vector<8x8xbf16>, vector<8x8xbf16>, vector<8x8xf32> -> vector<8x8xf32>
    %72 = arith.addf %71, %5 : vector<8x8xf32>
    %cst_27 = arith.constant dense<0xFF800000> : vector<8xf32>
    %73 = vector.multi_reduction <maximumf>, %72, %cst_27 [1] : vector<8x8xf32> to vector<8xf32>
    %74 = vector.shape_cast %73 : vector<8xf32> to vector<8x1xf32>
    %75 = vector.broadcast %74 : vector<8x1xf32> to vector<8x8xf32>
    %76 = arith.subf %72, %75 : vector<8x8xf32>
    %77 = math.exp %76 : vector<8x8xf32>
    %cst_28 = arith.constant dense<0.000000e+00> : vector<8xf32>
    %78 = vector.multi_reduction <add>, %77, %cst_28 [1] : vector<8x8xf32> to vector<8xf32>
    %79 = vector.shape_cast %78 : vector<8xf32> to vector<8x1xf32>
    %80 = tpu.reciprocal %79 {approx = true} : vector<8x1xf32> -> vector<8x1xf32>
    %81 = vector.broadcast %80 : vector<8x1xf32> to vector<8x8xf32>
    %82 = arith.mulf %77, %81 : vector<8x8xf32>
    %83 = arith.truncf %82 : vector<8x8xf32> to vector<8x8xbf16>
    %cst_29 = arith.constant dense<0.000000e+00> : vector<8x8xf32>
    %84 = tpu.matmul %83, %70, %cst_29 {dimension_numbers = #tpu.dot_dimension_numbers<[1], [0], [0], [1], [0, 0, 1, 1], [], []>} : vector<8x8xbf16>, vector<8x8xbf16>, vector<8x8xf32> -> vector<8x8xf32>
    %85 = vector.extract_strided_slice %22 {offsets = [0, 24], sizes = [8, 8], strides = [1, 1]} : vector<8x32xf32> to vector<8x8xf32>
    %86 = arith.truncf %85 : vector<8x8xf32> to vector<8x8xbf16>
    %87 = vector.extract_strided_slice %23 {offsets = [0, 24], sizes = [8, 8], strides = [1, 1]} : vector<8x32xf32> to vector<8x8xf32>
    %88 = arith.truncf %87 : vector<8x8xf32> to vector<8x8xbf16>
    %89 = vector.extract_strided_slice %24 {offsets = [0, 24], sizes = [8, 8], strides = [1, 1]} : vector<8x32xf32> to vector<8x8xf32>
    %90 = arith.truncf %89 : vector<8x8xf32> to vector<8x8xbf16>
    %cst_30 = arith.constant dense<0.000000e+00> : vector<8x8xf32>
    %91 = tpu.matmul %86, %88, %cst_30 {dimension_numbers = #tpu.dot_dimension_numbers<[1], [1], [0], [0], [0, 0, 1, 0], [], []>} : vector<8x8xbf16>, vector<8x8xbf16>, vector<8x8xf32> -> vector<8x8xf32>
    %92 = arith.addf %91, %5 : vector<8x8xf32>
    %cst_31 = arith.constant dense<0xFF800000> : vector<8xf32>
    %93 = vector.multi_reduction <maximumf>, %92, %cst_31 [1] : vector<8x8xf32> to vector<8xf32>
    %94 = vector.shape_cast %93 : vector<8xf32> to vector<8x1xf32>
    %95 = vector.broadcast %94 : vector<8x1xf32> to vector<8x8xf32>
    %96 = arith.subf %92, %95 : vector<8x8xf32>
    %97 = math.exp %96 : vector<8x8xf32>
    %cst_32 = arith.constant dense<0.000000e+00> : vector<8xf32>
    %98 = vector.multi_reduction <add>, %97, %cst_32 [1] : vector<8x8xf32> to vector<8xf32>
    %99 = vector.shape_cast %98 : vector<8xf32> to vector<8x1xf32>
    %100 = tpu.reciprocal %99 {approx = true} : vector<8x1xf32> -> vector<8x1xf32>
    %101 = vector.broadcast %100 : vector<8x1xf32> to vector<8x8xf32>
    %102 = arith.mulf %97, %101 : vector<8x8xf32>
    %103 = arith.truncf %102 : vector<8x8xf32> to vector<8x8xbf16>
    %cst_33 = arith.constant dense<0.000000e+00> : vector<8x8xf32>
    %104 = tpu.matmul %103, %90, %cst_33 {dimension_numbers = #tpu.dot_dimension_numbers<[1], [0], [0], [1], [0, 0, 1, 1], [], []>} : vector<8x8xbf16>, vector<8x8xbf16>, vector<8x8xf32> -> vector<8x8xf32>
    %105 = tpu.concatenate %44, %64, %84, %104 in 1 : vector<8x8xf32>, vector<8x8xf32>, vector<8x8xf32>, vector<8x8xf32> -> vector<8x32xf32>
    %106 = arith.truncf %105 : vector<8x32xf32> to vector<8x32xbf16>
    %cst_34 = arith.constant dense<0.000000e+00> : vector<8x32xf32>
    %107 = tpu.matmul %106, %15, %cst_34 {dimension_numbers = #tpu.dot_dimension_numbers<[1], [0], [0], [1], [0, 0, 1, 1], [], []>} : vector<8x32xbf16>, vector<32x32xbf16>, vector<8x32xf32> -> vector<8x32xf32>
    %108 = vector.broadcast %17 : vector<1x32xf32> to vector<8x32xf32>
    %109 = arith.addf %107, %108 : vector<8x32xf32>
    %110 = arith.addf %1, %109 : vector<8x32xf32>
    %c0_35 = arith.constant 0 : index
    %c0_36 = arith.constant 0 : index
    %c0_37 = arith.constant 0 : index
    %111 = vector.load %arg8[%c0_35, %c0_36, %c0_37] : memref<10x2x32xf32, #tpu.memory_space<vmem>>, vector<1x1x32xf32>
    %112 = vector.shape_cast %111 : vector<1x1x32xf32> to vector<1x32xf32>
    %c0_38 = arith.constant 0 : index
    %c1 = arith.constant 1 : index
    %c0_39 = arith.constant 0 : index
    %113 = vector.load %arg8[%c0_38, %c1, %c0_39] : memref<10x2x32xf32, #tpu.memory_space<vmem>>, vector<1x1x32xf32>
    %114 = vector.shape_cast %113 : vector<1x1x32xf32> to vector<1x32xf32>
    %cst_40 = arith.constant dense<0.000000e+00> : vector<8xf32>
    %115 = vector.multi_reduction <add>, %110, %cst_40 [1] : vector<8x32xf32> to vector<8xf32>
    %116 = vector.shape_cast %115 : vector<8xf32> to vector<8x1xf32>
    %cst_41 = arith.constant 3.200000e+01 : f32
    %117 = vector.broadcast %cst_41 : f32 to vector<8x1xf32>
    %118 = arith.divf %116, %117 : vector<8x1xf32>
    %119 = vector.broadcast %118 : vector<8x1xf32> to vector<8x32xf32>
    %120 = arith.subf %110, %119 : vector<8x32xf32>
    %121 = arith.mulf %120, %120 : vector<8x32xf32>
    %cst_42 = arith.constant dense<0.000000e+00> : vector<8xf32>
    %122 = vector.multi_reduction <add>, %121, %cst_42 [1] : vector<8x32xf32> to vector<8xf32>
    %123 = vector.shape_cast %122 : vector<8xf32> to vector<8x1xf32>
    %cst_43 = arith.constant 3.200000e+01 : f32
    %124 = vector.broadcast %cst_43 : f32 to vector<8x1xf32>
    %125 = arith.divf %123, %124 : vector<8x1xf32>
    %126 = vector.broadcast %118 : vector<8x1xf32> to vector<8x32xf32>
    %127 = arith.subf %110, %126 : vector<8x32xf32>
    %cst_44 = arith.constant 9.99999997E-7 : f32
    %128 = vector.broadcast %cst_44 : f32 to vector<8x1xf32>
    %129 = arith.addf %125, %128 : vector<8x1xf32>
    %130 = math.rsqrt %129 : vector<8x1xf32>
    %131 = vector.broadcast %130 : vector<8x1xf32> to vector<8x32xf32>
    %132 = arith.mulf %127, %131 : vector<8x32xf32>
    %133 = vector.broadcast %112 : vector<1x32xf32> to vector<8x32xf32>
    %134 = arith.mulf %132, %133 : vector<8x32xf32>
    %135 = vector.broadcast %114 : vector<1x32xf32> to vector<8x32xf32>
    %136 = arith.addf %134, %135 : vector<8x32xf32>
    %c0_45 = arith.constant 0 : index
    %c0_46 = arith.constant 0 : index
    %c0_47 = arith.constant 0 : index
    %137 = vector.load %arg7[%c0_45, %c0_46, %c0_47] : memref<4x2x64xf32, #tpu.memory_space<vmem>>, vector<1x2x64xf32>
    %138 = vector.shape_cast %137 : vector<1x2x64xf32> to vector<2x64xf32>
    %139 = arith.truncf %136 : vector<8x32xf32> to vector<8x32xbf16>
    %c0_48 = arith.constant 0 : index
    %c0_49 = arith.constant 0 : index
    %c0_50 = arith.constant 0 : index
    %140 = vector.load %arg5[%c0_48, %c0_49, %c0_50] : memref<4x32x64xbf16, #tpu.memory_space<vmem>>, vector<1x32x64xbf16>
    %141 = vector.shape_cast %140 : vector<1x32x64xbf16> to vector<32x64xbf16>
    %cst_51 = arith.constant dense<0.000000e+00> : vector<8x64xf32>
    %142 = tpu.matmul %139, %141, %cst_51 {dimension_numbers = #tpu.dot_dimension_numbers<[1], [0], [0], [1], [0, 0, 1, 1], [], []>} : vector<8x32xbf16>, vector<32x64xbf16>, vector<8x64xf32> -> vector<8x64xf32>
    %143 = vector.extract_strided_slice %138 {offsets = [0, 0], sizes = [1, 64], strides = [1, 1]} : vector<2x64xf32> to vector<1x64xf32>
    %144 = vector.broadcast %143 : vector<1x64xf32> to vector<8x64xf32>
    %145 = arith.addf %142, %144 : vector<8x64xf32>
    %cst_52 = arith.constant 0.000000e+00 : f32
    %146 = vector.broadcast %cst_52 : f32 to vector<8x64xf32>
    %147 = arith.maximumf %145, %146 : vector<8x64xf32>
    %148 = arith.truncf %147 : vector<8x64xf32> to vector<8x64xbf16>
    %c0_53 = arith.constant 0 : index
    %c0_54 = arith.constant 0 : index
    %c0_55 = arith.constant 0 : index
    %149 = vector.load %arg6[%c0_53, %c0_54, %c0_55] : memref<4x64x32xbf16, #tpu.memory_space<vmem>>, vector<1x64x32xbf16>
    %150 = vector.shape_cast %149 : vector<1x64x32xbf16> to vector<64x32xbf16>
    %cst_56 = arith.constant dense<0.000000e+00> : vector<8x32xf32>
    %151 = tpu.matmul %148, %150, %cst_56 {dimension_numbers = #tpu.dot_dimension_numbers<[1], [0], [0], [1], [0, 0, 1, 1], [], []>} : vector<8x64xbf16>, vector<64x32xbf16>, vector<8x32xf32> -> vector<8x32xf32>
    %152 = vector.extract_strided_slice %138 {offsets = [1, 0], sizes = [1, 32], strides = [1, 1]} : vector<2x64xf32> to vector<1x32xf32>
    %153 = vector.broadcast %152 : vector<1x32xf32> to vector<8x32xf32>
    %154 = arith.addf %151, %153 : vector<8x32xf32>
    %155 = arith.addf %136, %154 : vector<8x32xf32>
    %c1_57 = arith.constant 1 : index
    %c0_58 = arith.constant 0 : index
    %c0_59 = arith.constant 0 : index
    %156 = vector.load %arg8[%c1_57, %c0_58, %c0_59] : memref<10x2x32xf32, #tpu.memory_space<vmem>>, vector<1x1x32xf32>
    %157 = vector.shape_cast %156 : vector<1x1x32xf32> to vector<1x32xf32>
    %c1_60 = arith.constant 1 : index
    %c1_61 = arith.constant 1 : index
    %c0_62 = arith.constant 0 : index
    %158 = vector.load %arg8[%c1_60, %c1_61, %c0_62] : memref<10x2x32xf32, #tpu.memory_space<vmem>>, vector<1x1x32xf32>
    %159 = vector.shape_cast %158 : vector<1x1x32xf32> to vector<1x32xf32>
    %cst_63 = arith.constant dense<0.000000e+00> : vector<8xf32>
    %160 = vector.multi_reduction <add>, %155, %cst_63 [1] : vector<8x32xf32> to vector<8xf32>
    %161 = vector.shape_cast %160 : vector<8xf32> to vector<8x1xf32>
    %cst_64 = arith.constant 3.200000e+01 : f32
    %162 = vector.broadcast %cst_64 : f32 to vector<8x1xf32>
    %163 = arith.divf %161, %162 : vector<8x1xf32>
    %164 = vector.broadcast %163 : vector<8x1xf32> to vector<8x32xf32>
    %165 = arith.subf %155, %164 : vector<8x32xf32>
    %166 = arith.mulf %165, %165 : vector<8x32xf32>
    %cst_65 = arith.constant dense<0.000000e+00> : vector<8xf32>
    %167 = vector.multi_reduction <add>, %166, %cst_65 [1] : vector<8x32xf32> to vector<8xf32>
    %168 = vector.shape_cast %167 : vector<8xf32> to vector<8x1xf32>
    %cst_66 = arith.constant 3.200000e+01 : f32
    %169 = vector.broadcast %cst_66 : f32 to vector<8x1xf32>
    %170 = arith.divf %168, %169 : vector<8x1xf32>
    %171 = vector.broadcast %163 : vector<8x1xf32> to vector<8x32xf32>
    %172 = arith.subf %155, %171 : vector<8x32xf32>
    %cst_67 = arith.constant 9.99999997E-7 : f32
    %173 = vector.broadcast %cst_67 : f32 to vector<8x1xf32>
    %174 = arith.addf %170, %173 : vector<8x1xf32>
    %175 = math.rsqrt %174 : vector<8x1xf32>
    %176 = vector.broadcast %175 : vector<8x1xf32> to vector<8x32xf32>
    %177 = arith.mulf %172, %176 : vector<8x32xf32>
    %178 = vector.broadcast %157 : vector<1x32xf32> to vector<8x32xf32>
    %179 = arith.mulf %177, %178 : vector<8x32xf32>
    %180 = vector.broadcast %159 : vector<1x32xf32> to vector<8x32xf32>
    %181 = arith.addf %179, %180 : vector<8x32xf32>
    %c1_68 = arith.constant 1 : index
    %c0_69 = arith.constant 0 : index
    %c0_70 = arith.constant 0 : index
    %182 = vector.load %arg3[%c1_68, %c0_69, %c0_70] : memref<6x32x128xbf16, #tpu.memory_space<vmem>>, vector<1x32x128xbf16>
    %183 = vector.shape_cast %182 : vector<1x32x128xbf16> to vector<32x128xbf16>
    %c1_71 = arith.constant 1 : index
    %c0_72 = arith.constant 0 : index
    %c0_73 = arith.constant 0 : index
    %184 = vector.load %arg4[%c1_71, %c0_72, %c0_73] : memref<6x2x128xf32, #tpu.memory_space<vmem>>, vector<1x2x128xf32>
    %185 = vector.shape_cast %184 : vector<1x2x128xf32> to vector<2x128xf32>
    %186 = vector.extract_strided_slice %183 {offsets = [0, 0], sizes = [32, 96], strides = [1, 1]} : vector<32x128xbf16> to vector<32x96xbf16>
    %187 = vector.extract_strided_slice %183 {offsets = [0, 96], sizes = [32, 32], strides = [1, 1]} : vector<32x128xbf16> to vector<32x32xbf16>
    %188 = vector.extract_strided_slice %185 {offsets = [0, 0], sizes = [1, 96], strides = [1, 1]} : vector<2x128xf32> to vector<1x96xf32>
    %189 = vector.extract_strided_slice %185 {offsets = [1, 0], sizes = [1, 32], strides = [1, 1]} : vector<2x128xf32> to vector<1x32xf32>
    %190 = arith.truncf %181 : vector<8x32xf32> to vector<8x32xbf16>
    %cst_74 = arith.constant dense<0.000000e+00> : vector<8x96xf32>
    %191 = tpu.matmul %190, %186, %cst_74 {dimension_numbers = #tpu.dot_dimension_numbers<[1], [0], [0], [1], [0, 0, 1, 1], [], []>} : vector<8x32xbf16>, vector<32x96xbf16>, vector<8x96xf32> -> vector<8x96xf32>
    %192 = vector.broadcast %188 : vector<1x96xf32> to vector<8x96xf32>
    %193 = arith.addf %191, %192 : vector<8x96xf32>
    %194 = vector.extract_strided_slice %193 {offsets = [0, 0], sizes = [8, 32], strides = [1, 1]} : vector<8x96xf32> to vector<8x32xf32>
    %195 = vector.extract_strided_slice %193 {offsets = [0, 32], sizes = [8, 32], strides = [1, 1]} : vector<8x96xf32> to vector<8x32xf32>
    %196 = vector.extract_strided_slice %193 {offsets = [0, 64], sizes = [8, 32], strides = [1, 1]} : vector<8x96xf32> to vector<8x32xf32>
    %197 = vector.extract_strided_slice %194 {offsets = [0, 0], sizes = [8, 8], strides = [1, 1]} : vector<8x32xf32> to vector<8x8xf32>
    %198 = arith.truncf %197 : vector<8x8xf32> to vector<8x8xbf16>
    %199 = vector.extract_strided_slice %195 {offsets = [0, 0], sizes = [8, 8], strides = [1, 1]} : vector<8x32xf32> to vector<8x8xf32>
    %200 = arith.truncf %199 : vector<8x8xf32> to vector<8x8xbf16>
    %201 = vector.extract_strided_slice %196 {offsets = [0, 0], sizes = [8, 8], strides = [1, 1]} : vector<8x32xf32> to vector<8x8xf32>
    %202 = arith.truncf %201 : vector<8x8xf32> to vector<8x8xbf16>
    %cst_75 = arith.constant dense<0.000000e+00> : vector<8x8xf32>
    %203 = tpu.matmul %198, %200, %cst_75 {dimension_numbers = #tpu.dot_dimension_numbers<[1], [1], [0], [0], [0, 0, 1, 0], [], []>} : vector<8x8xbf16>, vector<8x8xbf16>, vector<8x8xf32> -> vector<8x8xf32>
    %204 = arith.addf %203, %5 : vector<8x8xf32>
    %cst_76 = arith.constant dense<0xFF800000> : vector<8xf32>
    %205 = vector.multi_reduction <maximumf>, %204, %cst_76 [1] : vector<8x8xf32> to vector<8xf32>
    %206 = vector.shape_cast %205 : vector<8xf32> to vector<8x1xf32>
    %207 = vector.broadcast %206 : vector<8x1xf32> to vector<8x8xf32>
    %208 = arith.subf %204, %207 : vector<8x8xf32>
    %209 = math.exp %208 : vector<8x8xf32>
    %cst_77 = arith.constant dense<0.000000e+00> : vector<8xf32>
    %210 = vector.multi_reduction <add>, %209, %cst_77 [1] : vector<8x8xf32> to vector<8xf32>
    %211 = vector.shape_cast %210 : vector<8xf32> to vector<8x1xf32>
    %212 = tpu.reciprocal %211 {approx = true} : vector<8x1xf32> -> vector<8x1xf32>
    %213 = vector.broadcast %212 : vector<8x1xf32> to vector<8x8xf32>
    %214 = arith.mulf %209, %213 : vector<8x8xf32>
    %215 = arith.truncf %214 : vector<8x8xf32> to vector<8x8xbf16>
    %cst_78 = arith.constant dense<0.000000e+00> : vector<8x8xf32>
    %216 = tpu.matmul %215, %202, %cst_78 {dimension_numbers = #tpu.dot_dimension_numbers<[1], [0], [0], [1], [0, 0, 1, 1], [], []>} : vector<8x8xbf16>, vector<8x8xbf16>, vector<8x8xf32> -> vector<8x8xf32>
    %217 = vector.extract_strided_slice %194 {offsets = [0, 8], sizes = [8, 8], strides = [1, 1]} : vector<8x32xf32> to vector<8x8xf32>
    %218 = arith.truncf %217 : vector<8x8xf32> to vector<8x8xbf16>
    %219 = vector.extract_strided_slice %195 {offsets = [0, 8], sizes = [8, 8], strides = [1, 1]} : vector<8x32xf32> to vector<8x8xf32>
    %220 = arith.truncf %219 : vector<8x8xf32> to vector<8x8xbf16>
    %221 = vector.extract_strided_slice %196 {offsets = [0, 8], sizes = [8, 8], strides = [1, 1]} : vector<8x32xf32> to vector<8x8xf32>
    %222 = arith.truncf %221 : vector<8x8xf32> to vector<8x8xbf16>
    %cst_79 = arith.constant dense<0.000000e+00> : vector<8x8xf32>
    %223 = tpu.matmul %218, %220, %cst_79 {dimension_numbers = #tpu.dot_dimension_numbers<[1], [1], [0], [0], [0, 0, 1, 0], [], []>} : vector<8x8xbf16>, vector<8x8xbf16>, vector<8x8xf32> -> vector<8x8xf32>
    %224 = arith.addf %223, %5 : vector<8x8xf32>
    %cst_80 = arith.constant dense<0xFF800000> : vector<8xf32>
    %225 = vector.multi_reduction <maximumf>, %224, %cst_80 [1] : vector<8x8xf32> to vector<8xf32>
    %226 = vector.shape_cast %225 : vector<8xf32> to vector<8x1xf32>
    %227 = vector.broadcast %226 : vector<8x1xf32> to vector<8x8xf32>
    %228 = arith.subf %224, %227 : vector<8x8xf32>
    %229 = math.exp %228 : vector<8x8xf32>
    %cst_81 = arith.constant dense<0.000000e+00> : vector<8xf32>
    %230 = vector.multi_reduction <add>, %229, %cst_81 [1] : vector<8x8xf32> to vector<8xf32>
    %231 = vector.shape_cast %230 : vector<8xf32> to vector<8x1xf32>
    %232 = tpu.reciprocal %231 {approx = true} : vector<8x1xf32> -> vector<8x1xf32>
    %233 = vector.broadcast %232 : vector<8x1xf32> to vector<8x8xf32>
    %234 = arith.mulf %229, %233 : vector<8x8xf32>
    %235 = arith.truncf %234 : vector<8x8xf32> to vector<8x8xbf16>
    %cst_82 = arith.constant dense<0.000000e+00> : vector<8x8xf32>
    %236 = tpu.matmul %235, %222, %cst_82 {dimension_numbers = #tpu.dot_dimension_numbers<[1], [0], [0], [1], [0, 0, 1, 1], [], []>} : vector<8x8xbf16>, vector<8x8xbf16>, vector<8x8xf32> -> vector<8x8xf32>
    %237 = vector.extract_strided_slice %194 {offsets = [0, 16], sizes = [8, 8], strides = [1, 1]} : vector<8x32xf32> to vector<8x8xf32>
    %238 = arith.truncf %237 : vector<8x8xf32> to vector<8x8xbf16>
    %239 = vector.extract_strided_slice %195 {offsets = [0, 16], sizes = [8, 8], strides = [1, 1]} : vector<8x32xf32> to vector<8x8xf32>
    %240 = arith.truncf %239 : vector<8x8xf32> to vector<8x8xbf16>
    %241 = vector.extract_strided_slice %196 {offsets = [0, 16], sizes = [8, 8], strides = [1, 1]} : vector<8x32xf32> to vector<8x8xf32>
    %242 = arith.truncf %241 : vector<8x8xf32> to vector<8x8xbf16>
    %cst_83 = arith.constant dense<0.000000e+00> : vector<8x8xf32>
    %243 = tpu.matmul %238, %240, %cst_83 {dimension_numbers = #tpu.dot_dimension_numbers<[1], [1], [0], [0], [0, 0, 1, 0], [], []>} : vector<8x8xbf16>, vector<8x8xbf16>, vector<8x8xf32> -> vector<8x8xf32>
    %244 = arith.addf %243, %5 : vector<8x8xf32>
    %cst_84 = arith.constant dense<0xFF800000> : vector<8xf32>
    %245 = vector.multi_reduction <maximumf>, %244, %cst_84 [1] : vector<8x8xf32> to vector<8xf32>
    %246 = vector.shape_cast %245 : vector<8xf32> to vector<8x1xf32>
    %247 = vector.broadcast %246 : vector<8x1xf32> to vector<8x8xf32>
    %248 = arith.subf %244, %247 : vector<8x8xf32>
    %249 = math.exp %248 : vector<8x8xf32>
    %cst_85 = arith.constant dense<0.000000e+00> : vector<8xf32>
    %250 = vector.multi_reduction <add>, %249, %cst_85 [1] : vector<8x8xf32> to vector<8xf32>
    %251 = vector.shape_cast %250 : vector<8xf32> to vector<8x1xf32>
    %252 = tpu.reciprocal %251 {approx = true} : vector<8x1xf32> -> vector<8x1xf32>
    %253 = vector.broadcast %252 : vector<8x1xf32> to vector<8x8xf32>
    %254 = arith.mulf %249, %253 : vector<8x8xf32>
    %255 = arith.truncf %254 : vector<8x8xf32> to vector<8x8xbf16>
    %cst_86 = arith.constant dense<0.000000e+00> : vector<8x8xf32>
    %256 = tpu.matmul %255, %242, %cst_86 {dimension_numbers = #tpu.dot_dimension_numbers<[1], [0], [0], [1], [0, 0, 1, 1], [], []>} : vector<8x8xbf16>, vector<8x8xbf16>, vector<8x8xf32> -> vector<8x8xf32>
    %257 = vector.extract_strided_slice %194 {offsets = [0, 24], sizes = [8, 8], strides = [1, 1]} : vector<8x32xf32> to vector<8x8xf32>
    %258 = arith.truncf %257 : vector<8x8xf32> to vector<8x8xbf16>
    %259 = vector.extract_strided_slice %195 {offsets = [0, 24], sizes = [8, 8], strides = [1, 1]} : vector<8x32xf32> to vector<8x8xf32>
    %260 = arith.truncf %259 : vector<8x8xf32> to vector<8x8xbf16>
    %261 = vector.extract_strided_slice %196 {offsets = [0, 24], sizes = [8, 8], strides = [1, 1]} : vector<8x32xf32> to vector<8x8xf32>
    %262 = arith.truncf %261 : vector<8x8xf32> to vector<8x8xbf16>
    %cst_87 = arith.constant dense<0.000000e+00> : vector<8x8xf32>
    %263 = tpu.matmul %258, %260, %cst_87 {dimension_numbers = #tpu.dot_dimension_numbers<[1], [1], [0], [0], [0, 0, 1, 0], [], []>} : vector<8x8xbf16>, vector<8x8xbf16>, vector<8x8xf32> -> vector<8x8xf32>
    %264 = arith.addf %263, %5 : vector<8x8xf32>
    %cst_88 = arith.constant dense<0xFF800000> : vector<8xf32>
    %265 = vector.multi_reduction <maximumf>, %264, %cst_88 [1] : vector<8x8xf32> to vector<8xf32>
    %266 = vector.shape_cast %265 : vector<8xf32> to vector<8x1xf32>
    %267 = vector.broadcast %266 : vector<8x1xf32> to vector<8x8xf32>
    %268 = arith.subf %264, %267 : vector<8x8xf32>
    %269 = math.exp %268 : vector<8x8xf32>
    %cst_89 = arith.constant dense<0.000000e+00> : vector<8xf32>
    %270 = vector.multi_reduction <add>, %269, %cst_89 [1] : vector<8x8xf32> to vector<8xf32>
    %271 = vector.shape_cast %270 : vector<8xf32> to vector<8x1xf32>
    %272 = tpu.reciprocal %271 {approx = true} : vector<8x1xf32> -> vector<8x1xf32>
    %273 = vector.broadcast %272 : vector<8x1xf32> to vector<8x8xf32>
    %274 = arith.mulf %269, %273 : vector<8x8xf32>
    %275 = arith.truncf %274 : vector<8x8xf32> to vector<8x8xbf16>
    %cst_90 = arith.constant dense<0.000000e+00> : vector<8x8xf32>
    %276 = tpu.matmul %275, %262, %cst_90 {dimension_numbers = #tpu.dot_dimension_numbers<[1], [0], [0], [1], [0, 0, 1, 1], [], []>} : vector<8x8xbf16>, vector<8x8xbf16>, vector<8x8xf32> -> vector<8x8xf32>
    %277 = tpu.concatenate %216, %236, %256, %276 in 1 : vector<8x8xf32>, vector<8x8xf32>, vector<8x8xf32>, vector<8x8xf32> -> vector<8x32xf32>
    %278 = arith.truncf %277 : vector<8x32xf32> to vector<8x32xbf16>
    %cst_91 = arith.constant dense<0.000000e+00> : vector<8x32xf32>
    %279 = tpu.matmul %278, %187, %cst_91 {dimension_numbers = #tpu.dot_dimension_numbers<[1], [0], [0], [1], [0, 0, 1, 1], [], []>} : vector<8x32xbf16>, vector<32x32xbf16>, vector<8x32xf32> -> vector<8x32xf32>
    %280 = vector.broadcast %189 : vector<1x32xf32> to vector<8x32xf32>
    %281 = arith.addf %279, %280 : vector<8x32xf32>
    %282 = arith.addf %181, %281 : vector<8x32xf32>
    %c2 = arith.constant 2 : index
    %c0_92 = arith.constant 0 : index
    %c0_93 = arith.constant 0 : index
    %283 = vector.load %arg8[%c2, %c0_92, %c0_93] : memref<10x2x32xf32, #tpu.memory_space<vmem>>, vector<1x1x32xf32>
    %284 = vector.shape_cast %283 : vector<1x1x32xf32> to vector<1x32xf32>
    %c2_94 = arith.constant 2 : index
    %c1_95 = arith.constant 1 : index
    %c0_96 = arith.constant 0 : index
    %285 = vector.load %arg8[%c2_94, %c1_95, %c0_96] : memref<10x2x32xf32, #tpu.memory_space<vmem>>, vector<1x1x32xf32>
    %286 = vector.shape_cast %285 : vector<1x1x32xf32> to vector<1x32xf32>
    %cst_97 = arith.constant dense<0.000000e+00> : vector<8xf32>
    %287 = vector.multi_reduction <add>, %282, %cst_97 [1] : vector<8x32xf32> to vector<8xf32>
    %288 = vector.shape_cast %287 : vector<8xf32> to vector<8x1xf32>
    %cst_98 = arith.constant 3.200000e+01 : f32
    %289 = vector.broadcast %cst_98 : f32 to vector<8x1xf32>
    %290 = arith.divf %288, %289 : vector<8x1xf32>
    %291 = vector.broadcast %290 : vector<8x1xf32> to vector<8x32xf32>
    %292 = arith.subf %282, %291 : vector<8x32xf32>
    %293 = arith.mulf %292, %292 : vector<8x32xf32>
    %cst_99 = arith.constant dense<0.000000e+00> : vector<8xf32>
    %294 = vector.multi_reduction <add>, %293, %cst_99 [1] : vector<8x32xf32> to vector<8xf32>
    %295 = vector.shape_cast %294 : vector<8xf32> to vector<8x1xf32>
    %cst_100 = arith.constant 3.200000e+01 : f32
    %296 = vector.broadcast %cst_100 : f32 to vector<8x1xf32>
    %297 = arith.divf %295, %296 : vector<8x1xf32>
    %298 = vector.broadcast %290 : vector<8x1xf32> to vector<8x32xf32>
    %299 = arith.subf %282, %298 : vector<8x32xf32>
    %cst_101 = arith.constant 9.99999997E-7 : f32
    %300 = vector.broadcast %cst_101 : f32 to vector<8x1xf32>
    %301 = arith.addf %297, %300 : vector<8x1xf32>
    %302 = math.rsqrt %301 : vector<8x1xf32>
    %303 = vector.broadcast %302 : vector<8x1xf32> to vector<8x32xf32>
    %304 = arith.mulf %299, %303 : vector<8x32xf32>
    %305 = vector.broadcast %284 : vector<1x32xf32> to vector<8x32xf32>
    %306 = arith.mulf %304, %305 : vector<8x32xf32>
    %307 = vector.broadcast %286 : vector<1x32xf32> to vector<8x32xf32>
    %308 = arith.addf %306, %307 : vector<8x32xf32>
    %c1_102 = arith.constant 1 : index
    %c0_103 = arith.constant 0 : index
    %c0_104 = arith.constant 0 : index
    %309 = vector.load %arg7[%c1_102, %c0_103, %c0_104] : memref<4x2x64xf32, #tpu.memory_space<vmem>>, vector<1x2x64xf32>
    %310 = vector.shape_cast %309 : vector<1x2x64xf32> to vector<2x64xf32>
    %311 = arith.truncf %308 : vector<8x32xf32> to vector<8x32xbf16>
    %c1_105 = arith.constant 1 : index
    %c0_106 = arith.constant 0 : index
    %c0_107 = arith.constant 0 : index
    %312 = vector.load %arg5[%c1_105, %c0_106, %c0_107] : memref<4x32x64xbf16, #tpu.memory_space<vmem>>, vector<1x32x64xbf16>
    %313 = vector.shape_cast %312 : vector<1x32x64xbf16> to vector<32x64xbf16>
    %cst_108 = arith.constant dense<0.000000e+00> : vector<8x64xf32>
    %314 = tpu.matmul %311, %313, %cst_108 {dimension_numbers = #tpu.dot_dimension_numbers<[1], [0], [0], [1], [0, 0, 1, 1], [], []>} : vector<8x32xbf16>, vector<32x64xbf16>, vector<8x64xf32> -> vector<8x64xf32>
    %315 = vector.extract_strided_slice %310 {offsets = [0, 0], sizes = [1, 64], strides = [1, 1]} : vector<2x64xf32> to vector<1x64xf32>
    %316 = vector.broadcast %315 : vector<1x64xf32> to vector<8x64xf32>
    %317 = arith.addf %314, %316 : vector<8x64xf32>
    %cst_109 = arith.constant 0.000000e+00 : f32
    %318 = vector.broadcast %cst_109 : f32 to vector<8x64xf32>
    %319 = arith.maximumf %317, %318 : vector<8x64xf32>
    %320 = arith.truncf %319 : vector<8x64xf32> to vector<8x64xbf16>
    %c1_110 = arith.constant 1 : index
    %c0_111 = arith.constant 0 : index
    %c0_112 = arith.constant 0 : index
    %321 = vector.load %arg6[%c1_110, %c0_111, %c0_112] : memref<4x64x32xbf16, #tpu.memory_space<vmem>>, vector<1x64x32xbf16>
    %322 = vector.shape_cast %321 : vector<1x64x32xbf16> to vector<64x32xbf16>
    %cst_113 = arith.constant dense<0.000000e+00> : vector<8x32xf32>
    %323 = tpu.matmul %320, %322, %cst_113 {dimension_numbers = #tpu.dot_dimension_numbers<[1], [0], [0], [1], [0, 0, 1, 1], [], []>} : vector<8x64xbf16>, vector<64x32xbf16>, vector<8x32xf32> -> vector<8x32xf32>
    %324 = vector.extract_strided_slice %310 {offsets = [1, 0], sizes = [1, 32], strides = [1, 1]} : vector<2x64xf32> to vector<1x32xf32>
    %325 = vector.broadcast %324 : vector<1x32xf32> to vector<8x32xf32>
    %326 = arith.addf %323, %325 : vector<8x32xf32>
    %327 = arith.addf %308, %326 : vector<8x32xf32>
    %c3 = arith.constant 3 : index
    %c0_114 = arith.constant 0 : index
    %c0_115 = arith.constant 0 : index
    %328 = vector.load %arg8[%c3, %c0_114, %c0_115] : memref<10x2x32xf32, #tpu.memory_space<vmem>>, vector<1x1x32xf32>
    %329 = vector.shape_cast %328 : vector<1x1x32xf32> to vector<1x32xf32>
    %c3_116 = arith.constant 3 : index
    %c1_117 = arith.constant 1 : index
    %c0_118 = arith.constant 0 : index
    %330 = vector.load %arg8[%c3_116, %c1_117, %c0_118] : memref<10x2x32xf32, #tpu.memory_space<vmem>>, vector<1x1x32xf32>
    %331 = vector.shape_cast %330 : vector<1x1x32xf32> to vector<1x32xf32>
    %cst_119 = arith.constant dense<0.000000e+00> : vector<8xf32>
    %332 = vector.multi_reduction <add>, %327, %cst_119 [1] : vector<8x32xf32> to vector<8xf32>
    %333 = vector.shape_cast %332 : vector<8xf32> to vector<8x1xf32>
    %cst_120 = arith.constant 3.200000e+01 : f32
    %334 = vector.broadcast %cst_120 : f32 to vector<8x1xf32>
    %335 = arith.divf %333, %334 : vector<8x1xf32>
    %336 = vector.broadcast %335 : vector<8x1xf32> to vector<8x32xf32>
    %337 = arith.subf %327, %336 : vector<8x32xf32>
    %338 = arith.mulf %337, %337 : vector<8x32xf32>
    %cst_121 = arith.constant dense<0.000000e+00> : vector<8xf32>
    %339 = vector.multi_reduction <add>, %338, %cst_121 [1] : vector<8x32xf32> to vector<8xf32>
    %340 = vector.shape_cast %339 : vector<8xf32> to vector<8x1xf32>
    %cst_122 = arith.constant 3.200000e+01 : f32
    %341 = vector.broadcast %cst_122 : f32 to vector<8x1xf32>
    %342 = arith.divf %340, %341 : vector<8x1xf32>
    %343 = vector.broadcast %335 : vector<8x1xf32> to vector<8x32xf32>
    %344 = arith.subf %327, %343 : vector<8x32xf32>
    %cst_123 = arith.constant 9.99999997E-7 : f32
    %345 = vector.broadcast %cst_123 : f32 to vector<8x1xf32>
    %346 = arith.addf %342, %345 : vector<8x1xf32>
    %347 = math.rsqrt %346 : vector<8x1xf32>
    %348 = vector.broadcast %347 : vector<8x1xf32> to vector<8x32xf32>
    %349 = arith.mulf %344, %348 : vector<8x32xf32>
    %350 = vector.broadcast %329 : vector<1x32xf32> to vector<8x32xf32>
    %351 = arith.mulf %349, %350 : vector<8x32xf32>
    %352 = vector.broadcast %331 : vector<1x32xf32> to vector<8x32xf32>
    %353 = arith.addf %351, %352 : vector<8x32xf32>
    %c2_124 = arith.constant 2 : index
    %c0_125 = arith.constant 0 : index
    %c0_126 = arith.constant 0 : index
    %354 = vector.load %arg3[%c2_124, %c0_125, %c0_126] : memref<6x32x128xbf16, #tpu.memory_space<vmem>>, vector<1x32x128xbf16>
    %355 = vector.shape_cast %354 : vector<1x32x128xbf16> to vector<32x128xbf16>
    %c2_127 = arith.constant 2 : index
    %c0_128 = arith.constant 0 : index
    %c0_129 = arith.constant 0 : index
    %356 = vector.load %arg4[%c2_127, %c0_128, %c0_129] : memref<6x2x128xf32, #tpu.memory_space<vmem>>, vector<1x2x128xf32>
    %357 = vector.shape_cast %356 : vector<1x2x128xf32> to vector<2x128xf32>
    %358 = vector.extract_strided_slice %355 {offsets = [0, 0], sizes = [32, 96], strides = [1, 1]} : vector<32x128xbf16> to vector<32x96xbf16>
    %359 = vector.extract_strided_slice %355 {offsets = [0, 96], sizes = [32, 32], strides = [1, 1]} : vector<32x128xbf16> to vector<32x32xbf16>
    %360 = vector.extract_strided_slice %357 {offsets = [0, 0], sizes = [1, 96], strides = [1, 1]} : vector<2x128xf32> to vector<1x96xf32>
    %361 = vector.extract_strided_slice %357 {offsets = [1, 0], sizes = [1, 32], strides = [1, 1]} : vector<2x128xf32> to vector<1x32xf32>
    %362 = arith.truncf %3 : vector<8x32xf32> to vector<8x32xbf16>
    %cst_130 = arith.constant dense<0.000000e+00> : vector<8x96xf32>
    %363 = tpu.matmul %362, %358, %cst_130 {dimension_numbers = #tpu.dot_dimension_numbers<[1], [0], [0], [1], [0, 0, 1, 1], [], []>} : vector<8x32xbf16>, vector<32x96xbf16>, vector<8x96xf32> -> vector<8x96xf32>
    %364 = vector.broadcast %360 : vector<1x96xf32> to vector<8x96xf32>
    %365 = arith.addf %363, %364 : vector<8x96xf32>
    %366 = vector.extract_strided_slice %365 {offsets = [0, 0], sizes = [8, 32], strides = [1, 1]} : vector<8x96xf32> to vector<8x32xf32>
    %367 = vector.extract_strided_slice %365 {offsets = [0, 32], sizes = [8, 32], strides = [1, 1]} : vector<8x96xf32> to vector<8x32xf32>
    %368 = vector.extract_strided_slice %365 {offsets = [0, 64], sizes = [8, 32], strides = [1, 1]} : vector<8x96xf32> to vector<8x32xf32>
    %369 = vector.extract_strided_slice %366 {offsets = [0, 0], sizes = [8, 8], strides = [1, 1]} : vector<8x32xf32> to vector<8x8xf32>
    %370 = arith.truncf %369 : vector<8x8xf32> to vector<8x8xbf16>
    %371 = vector.extract_strided_slice %367 {offsets = [0, 0], sizes = [8, 8], strides = [1, 1]} : vector<8x32xf32> to vector<8x8xf32>
    %372 = arith.truncf %371 : vector<8x8xf32> to vector<8x8xbf16>
    %373 = vector.extract_strided_slice %368 {offsets = [0, 0], sizes = [8, 8], strides = [1, 1]} : vector<8x32xf32> to vector<8x8xf32>
    %374 = arith.truncf %373 : vector<8x8xf32> to vector<8x8xbf16>
    %cst_131 = arith.constant dense<0.000000e+00> : vector<8x8xf32>
    %375 = tpu.matmul %370, %372, %cst_131 {dimension_numbers = #tpu.dot_dimension_numbers<[1], [1], [0], [0], [0, 0, 1, 0], [], []>} : vector<8x8xbf16>, vector<8x8xbf16>, vector<8x8xf32> -> vector<8x8xf32>
    %376 = arith.addf %375, %7 : vector<8x8xf32>
    %cst_132 = arith.constant dense<0xFF800000> : vector<8xf32>
    %377 = vector.multi_reduction <maximumf>, %376, %cst_132 [1] : vector<8x8xf32> to vector<8xf32>
    %378 = vector.shape_cast %377 : vector<8xf32> to vector<8x1xf32>
    %379 = vector.broadcast %378 : vector<8x1xf32> to vector<8x8xf32>
    %380 = arith.subf %376, %379 : vector<8x8xf32>
    %381 = math.exp %380 : vector<8x8xf32>
    %cst_133 = arith.constant dense<0.000000e+00> : vector<8xf32>
    %382 = vector.multi_reduction <add>, %381, %cst_133 [1] : vector<8x8xf32> to vector<8xf32>
    %383 = vector.shape_cast %382 : vector<8xf32> to vector<8x1xf32>
    %384 = tpu.reciprocal %383 {approx = true} : vector<8x1xf32> -> vector<8x1xf32>
    %385 = vector.broadcast %384 : vector<8x1xf32> to vector<8x8xf32>
    %386 = arith.mulf %381, %385 : vector<8x8xf32>
    %387 = arith.truncf %386 : vector<8x8xf32> to vector<8x8xbf16>
    %cst_134 = arith.constant dense<0.000000e+00> : vector<8x8xf32>
    %388 = tpu.matmul %387, %374, %cst_134 {dimension_numbers = #tpu.dot_dimension_numbers<[1], [0], [0], [1], [0, 0, 1, 1], [], []>} : vector<8x8xbf16>, vector<8x8xbf16>, vector<8x8xf32> -> vector<8x8xf32>
    %389 = vector.extract_strided_slice %366 {offsets = [0, 8], sizes = [8, 8], strides = [1, 1]} : vector<8x32xf32> to vector<8x8xf32>
    %390 = arith.truncf %389 : vector<8x8xf32> to vector<8x8xbf16>
    %391 = vector.extract_strided_slice %367 {offsets = [0, 8], sizes = [8, 8], strides = [1, 1]} : vector<8x32xf32> to vector<8x8xf32>
    %392 = arith.truncf %391 : vector<8x8xf32> to vector<8x8xbf16>
    %393 = vector.extract_strided_slice %368 {offsets = [0, 8], sizes = [8, 8], strides = [1, 1]} : vector<8x32xf32> to vector<8x8xf32>
    %394 = arith.truncf %393 : vector<8x8xf32> to vector<8x8xbf16>
    %cst_135 = arith.constant dense<0.000000e+00> : vector<8x8xf32>
    %395 = tpu.matmul %390, %392, %cst_135 {dimension_numbers = #tpu.dot_dimension_numbers<[1], [1], [0], [0], [0, 0, 1, 0], [], []>} : vector<8x8xbf16>, vector<8x8xbf16>, vector<8x8xf32> -> vector<8x8xf32>
    %396 = arith.addf %395, %7 : vector<8x8xf32>
    %cst_136 = arith.constant dense<0xFF800000> : vector<8xf32>
    %397 = vector.multi_reduction <maximumf>, %396, %cst_136 [1] : vector<8x8xf32> to vector<8xf32>
    %398 = vector.shape_cast %397 : vector<8xf32> to vector<8x1xf32>
    %399 = vector.broadcast %398 : vector<8x1xf32> to vector<8x8xf32>
    %400 = arith.subf %396, %399 : vector<8x8xf32>
    %401 = math.exp %400 : vector<8x8xf32>
    %cst_137 = arith.constant dense<0.000000e+00> : vector<8xf32>
    %402 = vector.multi_reduction <add>, %401, %cst_137 [1] : vector<8x8xf32> to vector<8xf32>
    %403 = vector.shape_cast %402 : vector<8xf32> to vector<8x1xf32>
    %404 = tpu.reciprocal %403 {approx = true} : vector<8x1xf32> -> vector<8x1xf32>
    %405 = vector.broadcast %404 : vector<8x1xf32> to vector<8x8xf32>
    %406 = arith.mulf %401, %405 : vector<8x8xf32>
    %407 = arith.truncf %406 : vector<8x8xf32> to vector<8x8xbf16>
    %cst_138 = arith.constant dense<0.000000e+00> : vector<8x8xf32>
    %408 = tpu.matmul %407, %394, %cst_138 {dimension_numbers = #tpu.dot_dimension_numbers<[1], [0], [0], [1], [0, 0, 1, 1], [], []>} : vector<8x8xbf16>, vector<8x8xbf16>, vector<8x8xf32> -> vector<8x8xf32>
    %409 = vector.extract_strided_slice %366 {offsets = [0, 16], sizes = [8, 8], strides = [1, 1]} : vector<8x32xf32> to vector<8x8xf32>
    %410 = arith.truncf %409 : vector<8x8xf32> to vector<8x8xbf16>
    %411 = vector.extract_strided_slice %367 {offsets = [0, 16], sizes = [8, 8], strides = [1, 1]} : vector<8x32xf32> to vector<8x8xf32>
    %412 = arith.truncf %411 : vector<8x8xf32> to vector<8x8xbf16>
    %413 = vector.extract_strided_slice %368 {offsets = [0, 16], sizes = [8, 8], strides = [1, 1]} : vector<8x32xf32> to vector<8x8xf32>
    %414 = arith.truncf %413 : vector<8x8xf32> to vector<8x8xbf16>
    %cst_139 = arith.constant dense<0.000000e+00> : vector<8x8xf32>
    %415 = tpu.matmul %410, %412, %cst_139 {dimension_numbers = #tpu.dot_dimension_numbers<[1], [1], [0], [0], [0, 0, 1, 0], [], []>} : vector<8x8xbf16>, vector<8x8xbf16>, vector<8x8xf32> -> vector<8x8xf32>
    %416 = arith.addf %415, %7 : vector<8x8xf32>
    %cst_140 = arith.constant dense<0xFF800000> : vector<8xf32>
    %417 = vector.multi_reduction <maximumf>, %416, %cst_140 [1] : vector<8x8xf32> to vector<8xf32>
    %418 = vector.shape_cast %417 : vector<8xf32> to vector<8x1xf32>
    %419 = vector.broadcast %418 : vector<8x1xf32> to vector<8x8xf32>
    %420 = arith.subf %416, %419 : vector<8x8xf32>
    %421 = math.exp %420 : vector<8x8xf32>
    %cst_141 = arith.constant dense<0.000000e+00> : vector<8xf32>
    %422 = vector.multi_reduction <add>, %421, %cst_141 [1] : vector<8x8xf32> to vector<8xf32>
    %423 = vector.shape_cast %422 : vector<8xf32> to vector<8x1xf32>
    %424 = tpu.reciprocal %423 {approx = true} : vector<8x1xf32> -> vector<8x1xf32>
    %425 = vector.broadcast %424 : vector<8x1xf32> to vector<8x8xf32>
    %426 = arith.mulf %421, %425 : vector<8x8xf32>
    %427 = arith.truncf %426 : vector<8x8xf32> to vector<8x8xbf16>
    %cst_142 = arith.constant dense<0.000000e+00> : vector<8x8xf32>
    %428 = tpu.matmul %427, %414, %cst_142 {dimension_numbers = #tpu.dot_dimension_numbers<[1], [0], [0], [1], [0, 0, 1, 1], [], []>} : vector<8x8xbf16>, vector<8x8xbf16>, vector<8x8xf32> -> vector<8x8xf32>
    %429 = vector.extract_strided_slice %366 {offsets = [0, 24], sizes = [8, 8], strides = [1, 1]} : vector<8x32xf32> to vector<8x8xf32>
    %430 = arith.truncf %429 : vector<8x8xf32> to vector<8x8xbf16>
    %431 = vector.extract_strided_slice %367 {offsets = [0, 24], sizes = [8, 8], strides = [1, 1]} : vector<8x32xf32> to vector<8x8xf32>
    %432 = arith.truncf %431 : vector<8x8xf32> to vector<8x8xbf16>
    %433 = vector.extract_strided_slice %368 {offsets = [0, 24], sizes = [8, 8], strides = [1, 1]} : vector<8x32xf32> to vector<8x8xf32>
    %434 = arith.truncf %433 : vector<8x8xf32> to vector<8x8xbf16>
    %cst_143 = arith.constant dense<0.000000e+00> : vector<8x8xf32>
    %435 = tpu.matmul %430, %432, %cst_143 {dimension_numbers = #tpu.dot_dimension_numbers<[1], [1], [0], [0], [0, 0, 1, 0], [], []>} : vector<8x8xbf16>, vector<8x8xbf16>, vector<8x8xf32> -> vector<8x8xf32>
    %436 = arith.addf %435, %7 : vector<8x8xf32>
    %cst_144 = arith.constant dense<0xFF800000> : vector<8xf32>
    %437 = vector.multi_reduction <maximumf>, %436, %cst_144 [1] : vector<8x8xf32> to vector<8xf32>
    %438 = vector.shape_cast %437 : vector<8xf32> to vector<8x1xf32>
    %439 = vector.broadcast %438 : vector<8x1xf32> to vector<8x8xf32>
    %440 = arith.subf %436, %439 : vector<8x8xf32>
    %441 = math.exp %440 : vector<8x8xf32>
    %cst_145 = arith.constant dense<0.000000e+00> : vector<8xf32>
    %442 = vector.multi_reduction <add>, %441, %cst_145 [1] : vector<8x8xf32> to vector<8xf32>
    %443 = vector.shape_cast %442 : vector<8xf32> to vector<8x1xf32>
    %444 = tpu.reciprocal %443 {approx = true} : vector<8x1xf32> -> vector<8x1xf32>
    %445 = vector.broadcast %444 : vector<8x1xf32> to vector<8x8xf32>
    %446 = arith.mulf %441, %445 : vector<8x8xf32>
    %447 = arith.truncf %446 : vector<8x8xf32> to vector<8x8xbf16>
    %cst_146 = arith.constant dense<0.000000e+00> : vector<8x8xf32>
    %448 = tpu.matmul %447, %434, %cst_146 {dimension_numbers = #tpu.dot_dimension_numbers<[1], [0], [0], [1], [0, 0, 1, 1], [], []>} : vector<8x8xbf16>, vector<8x8xbf16>, vector<8x8xf32> -> vector<8x8xf32>
    %449 = tpu.concatenate %388, %408, %428, %448 in 1 : vector<8x8xf32>, vector<8x8xf32>, vector<8x8xf32>, vector<8x8xf32> -> vector<8x32xf32>
    %450 = arith.truncf %449 : vector<8x32xf32> to vector<8x32xbf16>
    %cst_147 = arith.constant dense<0.000000e+00> : vector<8x32xf32>
    %451 = tpu.matmul %450, %359, %cst_147 {dimension_numbers = #tpu.dot_dimension_numbers<[1], [0], [0], [1], [0, 0, 1, 1], [], []>} : vector<8x32xbf16>, vector<32x32xbf16>, vector<8x32xf32> -> vector<8x32xf32>
    %452 = vector.broadcast %361 : vector<1x32xf32> to vector<8x32xf32>
    %453 = arith.addf %451, %452 : vector<8x32xf32>
    %454 = arith.addf %3, %453 : vector<8x32xf32>
    %c4 = arith.constant 4 : index
    %c0_148 = arith.constant 0 : index
    %c0_149 = arith.constant 0 : index
    %455 = vector.load %arg8[%c4, %c0_148, %c0_149] : memref<10x2x32xf32, #tpu.memory_space<vmem>>, vector<1x1x32xf32>
    %456 = vector.shape_cast %455 : vector<1x1x32xf32> to vector<1x32xf32>
    %c4_150 = arith.constant 4 : index
    %c1_151 = arith.constant 1 : index
    %c0_152 = arith.constant 0 : index
    %457 = vector.load %arg8[%c4_150, %c1_151, %c0_152] : memref<10x2x32xf32, #tpu.memory_space<vmem>>, vector<1x1x32xf32>
    %458 = vector.shape_cast %457 : vector<1x1x32xf32> to vector<1x32xf32>
    %cst_153 = arith.constant dense<0.000000e+00> : vector<8xf32>
    %459 = vector.multi_reduction <add>, %454, %cst_153 [1] : vector<8x32xf32> to vector<8xf32>
    %460 = vector.shape_cast %459 : vector<8xf32> to vector<8x1xf32>
    %cst_154 = arith.constant 3.200000e+01 : f32
    %461 = vector.broadcast %cst_154 : f32 to vector<8x1xf32>
    %462 = arith.divf %460, %461 : vector<8x1xf32>
    %463 = vector.broadcast %462 : vector<8x1xf32> to vector<8x32xf32>
    %464 = arith.subf %454, %463 : vector<8x32xf32>
    %465 = arith.mulf %464, %464 : vector<8x32xf32>
    %cst_155 = arith.constant dense<0.000000e+00> : vector<8xf32>
    %466 = vector.multi_reduction <add>, %465, %cst_155 [1] : vector<8x32xf32> to vector<8xf32>
    %467 = vector.shape_cast %466 : vector<8xf32> to vector<8x1xf32>
    %cst_156 = arith.constant 3.200000e+01 : f32
    %468 = vector.broadcast %cst_156 : f32 to vector<8x1xf32>
    %469 = arith.divf %467, %468 : vector<8x1xf32>
    %470 = vector.broadcast %462 : vector<8x1xf32> to vector<8x32xf32>
    %471 = arith.subf %454, %470 : vector<8x32xf32>
    %cst_157 = arith.constant 9.99999997E-7 : f32
    %472 = vector.broadcast %cst_157 : f32 to vector<8x1xf32>
    %473 = arith.addf %469, %472 : vector<8x1xf32>
    %474 = math.rsqrt %473 : vector<8x1xf32>
    %475 = vector.broadcast %474 : vector<8x1xf32> to vector<8x32xf32>
    %476 = arith.mulf %471, %475 : vector<8x32xf32>
    %477 = vector.broadcast %456 : vector<1x32xf32> to vector<8x32xf32>
    %478 = arith.mulf %476, %477 : vector<8x32xf32>
    %479 = vector.broadcast %458 : vector<1x32xf32> to vector<8x32xf32>
    %480 = arith.addf %478, %479 : vector<8x32xf32>
    %c3_158 = arith.constant 3 : index
    %c0_159 = arith.constant 0 : index
    %c0_160 = arith.constant 0 : index
    %481 = vector.load %arg3[%c3_158, %c0_159, %c0_160] : memref<6x32x128xbf16, #tpu.memory_space<vmem>>, vector<1x32x128xbf16>
    %482 = vector.shape_cast %481 : vector<1x32x128xbf16> to vector<32x128xbf16>
    %c3_161 = arith.constant 3 : index
    %c0_162 = arith.constant 0 : index
    %c0_163 = arith.constant 0 : index
    %483 = vector.load %arg4[%c3_161, %c0_162, %c0_163] : memref<6x2x128xf32, #tpu.memory_space<vmem>>, vector<1x2x128xf32>
    %484 = vector.shape_cast %483 : vector<1x2x128xf32> to vector<2x128xf32>
    %485 = vector.extract_strided_slice %482 {offsets = [0, 0], sizes = [32, 96], strides = [1, 1]} : vector<32x128xbf16> to vector<32x96xbf16>
    %486 = vector.extract_strided_slice %482 {offsets = [0, 96], sizes = [32, 32], strides = [1, 1]} : vector<32x128xbf16> to vector<32x32xbf16>
    %487 = vector.extract_strided_slice %484 {offsets = [0, 0], sizes = [1, 96], strides = [1, 1]} : vector<2x128xf32> to vector<1x96xf32>
    %488 = vector.extract_strided_slice %484 {offsets = [1, 0], sizes = [1, 32], strides = [1, 1]} : vector<2x128xf32> to vector<1x32xf32>
    %489 = arith.truncf %480 : vector<8x32xf32> to vector<8x32xbf16>
    %490 = vector.extract_strided_slice %485 {offsets = [0, 0], sizes = [32, 32], strides = [1, 1]} : vector<32x96xbf16> to vector<32x32xbf16>
    %cst_164 = arith.constant dense<0.000000e+00> : vector<8x32xf32>
    %491 = tpu.matmul %489, %490, %cst_164 {dimension_numbers = #tpu.dot_dimension_numbers<[1], [0], [0], [1], [0, 0, 1, 1], [], []>} : vector<8x32xbf16>, vector<32x32xbf16>, vector<8x32xf32> -> vector<8x32xf32>
    %492 = vector.extract_strided_slice %487 {offsets = [0, 0], sizes = [1, 32], strides = [1, 1]} : vector<1x96xf32> to vector<1x32xf32>
    %493 = vector.broadcast %492 : vector<1x32xf32> to vector<8x32xf32>
    %494 = arith.addf %491, %493 : vector<8x32xf32>
    %495 = arith.truncf %353 : vector<8x32xf32> to vector<8x32xbf16>
    %496 = vector.extract_strided_slice %485 {offsets = [0, 32], sizes = [32, 64], strides = [1, 1]} : vector<32x96xbf16> to vector<32x64xbf16>
    %cst_165 = arith.constant dense<0.000000e+00> : vector<8x64xf32>
    %497 = tpu.matmul %495, %496, %cst_165 {dimension_numbers = #tpu.dot_dimension_numbers<[1], [0], [0], [1], [0, 0, 1, 1], [], []>} : vector<8x32xbf16>, vector<32x64xbf16>, vector<8x64xf32> -> vector<8x64xf32>
    %498 = vector.extract_strided_slice %487 {offsets = [0, 32], sizes = [1, 64], strides = [1, 1]} : vector<1x96xf32> to vector<1x64xf32>
    %499 = vector.broadcast %498 : vector<1x64xf32> to vector<8x64xf32>
    %500 = arith.addf %497, %499 : vector<8x64xf32>
    %501 = vector.extract_strided_slice %500 {offsets = [0, 0], sizes = [8, 32], strides = [1, 1]} : vector<8x64xf32> to vector<8x32xf32>
    %502 = vector.extract_strided_slice %500 {offsets = [0, 32], sizes = [8, 32], strides = [1, 1]} : vector<8x64xf32> to vector<8x32xf32>
    %503 = vector.extract_strided_slice %494 {offsets = [0, 0], sizes = [8, 8], strides = [1, 1]} : vector<8x32xf32> to vector<8x8xf32>
    %504 = arith.truncf %503 : vector<8x8xf32> to vector<8x8xbf16>
    %505 = vector.extract_strided_slice %501 {offsets = [0, 0], sizes = [8, 8], strides = [1, 1]} : vector<8x32xf32> to vector<8x8xf32>
    %506 = arith.truncf %505 : vector<8x8xf32> to vector<8x8xbf16>
    %507 = vector.extract_strided_slice %502 {offsets = [0, 0], sizes = [8, 8], strides = [1, 1]} : vector<8x32xf32> to vector<8x8xf32>
    %508 = arith.truncf %507 : vector<8x8xf32> to vector<8x8xbf16>
    %cst_166 = arith.constant dense<0.000000e+00> : vector<8x8xf32>
    %509 = tpu.matmul %504, %506, %cst_166 {dimension_numbers = #tpu.dot_dimension_numbers<[1], [1], [0], [0], [0, 0, 1, 0], [], []>} : vector<8x8xbf16>, vector<8x8xbf16>, vector<8x8xf32> -> vector<8x8xf32>
    %510 = arith.addf %509, %9 : vector<8x8xf32>
    %cst_167 = arith.constant dense<0xFF800000> : vector<8xf32>
    %511 = vector.multi_reduction <maximumf>, %510, %cst_167 [1] : vector<8x8xf32> to vector<8xf32>
    %512 = vector.shape_cast %511 : vector<8xf32> to vector<8x1xf32>
    %513 = vector.broadcast %512 : vector<8x1xf32> to vector<8x8xf32>
    %514 = arith.subf %510, %513 : vector<8x8xf32>
    %515 = math.exp %514 : vector<8x8xf32>
    %cst_168 = arith.constant dense<0.000000e+00> : vector<8xf32>
    %516 = vector.multi_reduction <add>, %515, %cst_168 [1] : vector<8x8xf32> to vector<8xf32>
    %517 = vector.shape_cast %516 : vector<8xf32> to vector<8x1xf32>
    %518 = tpu.reciprocal %517 {approx = true} : vector<8x1xf32> -> vector<8x1xf32>
    %519 = vector.broadcast %518 : vector<8x1xf32> to vector<8x8xf32>
    %520 = arith.mulf %515, %519 : vector<8x8xf32>
    %521 = arith.truncf %520 : vector<8x8xf32> to vector<8x8xbf16>
    %cst_169 = arith.constant dense<0.000000e+00> : vector<8x8xf32>
    %522 = tpu.matmul %521, %508, %cst_169 {dimension_numbers = #tpu.dot_dimension_numbers<[1], [0], [0], [1], [0, 0, 1, 1], [], []>} : vector<8x8xbf16>, vector<8x8xbf16>, vector<8x8xf32> -> vector<8x8xf32>
    %523 = vector.extract_strided_slice %494 {offsets = [0, 8], sizes = [8, 8], strides = [1, 1]} : vector<8x32xf32> to vector<8x8xf32>
    %524 = arith.truncf %523 : vector<8x8xf32> to vector<8x8xbf16>
    %525 = vector.extract_strided_slice %501 {offsets = [0, 8], sizes = [8, 8], strides = [1, 1]} : vector<8x32xf32> to vector<8x8xf32>
    %526 = arith.truncf %525 : vector<8x8xf32> to vector<8x8xbf16>
    %527 = vector.extract_strided_slice %502 {offsets = [0, 8], sizes = [8, 8], strides = [1, 1]} : vector<8x32xf32> to vector<8x8xf32>
    %528 = arith.truncf %527 : vector<8x8xf32> to vector<8x8xbf16>
    %cst_170 = arith.constant dense<0.000000e+00> : vector<8x8xf32>
    %529 = tpu.matmul %524, %526, %cst_170 {dimension_numbers = #tpu.dot_dimension_numbers<[1], [1], [0], [0], [0, 0, 1, 0], [], []>} : vector<8x8xbf16>, vector<8x8xbf16>, vector<8x8xf32> -> vector<8x8xf32>
    %530 = arith.addf %529, %9 : vector<8x8xf32>
    %cst_171 = arith.constant dense<0xFF800000> : vector<8xf32>
    %531 = vector.multi_reduction <maximumf>, %530, %cst_171 [1] : vector<8x8xf32> to vector<8xf32>
    %532 = vector.shape_cast %531 : vector<8xf32> to vector<8x1xf32>
    %533 = vector.broadcast %532 : vector<8x1xf32> to vector<8x8xf32>
    %534 = arith.subf %530, %533 : vector<8x8xf32>
    %535 = math.exp %534 : vector<8x8xf32>
    %cst_172 = arith.constant dense<0.000000e+00> : vector<8xf32>
    %536 = vector.multi_reduction <add>, %535, %cst_172 [1] : vector<8x8xf32> to vector<8xf32>
    %537 = vector.shape_cast %536 : vector<8xf32> to vector<8x1xf32>
    %538 = tpu.reciprocal %537 {approx = true} : vector<8x1xf32> -> vector<8x1xf32>
    %539 = vector.broadcast %538 : vector<8x1xf32> to vector<8x8xf32>
    %540 = arith.mulf %535, %539 : vector<8x8xf32>
    %541 = arith.truncf %540 : vector<8x8xf32> to vector<8x8xbf16>
    %cst_173 = arith.constant dense<0.000000e+00> : vector<8x8xf32>
    %542 = tpu.matmul %541, %528, %cst_173 {dimension_numbers = #tpu.dot_dimension_numbers<[1], [0], [0], [1], [0, 0, 1, 1], [], []>} : vector<8x8xbf16>, vector<8x8xbf16>, vector<8x8xf32> -> vector<8x8xf32>
    %543 = vector.extract_strided_slice %494 {offsets = [0, 16], sizes = [8, 8], strides = [1, 1]} : vector<8x32xf32> to vector<8x8xf32>
    %544 = arith.truncf %543 : vector<8x8xf32> to vector<8x8xbf16>
    %545 = vector.extract_strided_slice %501 {offsets = [0, 16], sizes = [8, 8], strides = [1, 1]} : vector<8x32xf32> to vector<8x8xf32>
    %546 = arith.truncf %545 : vector<8x8xf32> to vector<8x8xbf16>
    %547 = vector.extract_strided_slice %502 {offsets = [0, 16], sizes = [8, 8], strides = [1, 1]} : vector<8x32xf32> to vector<8x8xf32>
    %548 = arith.truncf %547 : vector<8x8xf32> to vector<8x8xbf16>
    %cst_174 = arith.constant dense<0.000000e+00> : vector<8x8xf32>
    %549 = tpu.matmul %544, %546, %cst_174 {dimension_numbers = #tpu.dot_dimension_numbers<[1], [1], [0], [0], [0, 0, 1, 0], [], []>} : vector<8x8xbf16>, vector<8x8xbf16>, vector<8x8xf32> -> vector<8x8xf32>
    %550 = arith.addf %549, %9 : vector<8x8xf32>
    %cst_175 = arith.constant dense<0xFF800000> : vector<8xf32>
    %551 = vector.multi_reduction <maximumf>, %550, %cst_175 [1] : vector<8x8xf32> to vector<8xf32>
    %552 = vector.shape_cast %551 : vector<8xf32> to vector<8x1xf32>
    %553 = vector.broadcast %552 : vector<8x1xf32> to vector<8x8xf32>
    %554 = arith.subf %550, %553 : vector<8x8xf32>
    %555 = math.exp %554 : vector<8x8xf32>
    %cst_176 = arith.constant dense<0.000000e+00> : vector<8xf32>
    %556 = vector.multi_reduction <add>, %555, %cst_176 [1] : vector<8x8xf32> to vector<8xf32>
    %557 = vector.shape_cast %556 : vector<8xf32> to vector<8x1xf32>
    %558 = tpu.reciprocal %557 {approx = true} : vector<8x1xf32> -> vector<8x1xf32>
    %559 = vector.broadcast %558 : vector<8x1xf32> to vector<8x8xf32>
    %560 = arith.mulf %555, %559 : vector<8x8xf32>
    %561 = arith.truncf %560 : vector<8x8xf32> to vector<8x8xbf16>
    %cst_177 = arith.constant dense<0.000000e+00> : vector<8x8xf32>
    %562 = tpu.matmul %561, %548, %cst_177 {dimension_numbers = #tpu.dot_dimension_numbers<[1], [0], [0], [1], [0, 0, 1, 1], [], []>} : vector<8x8xbf16>, vector<8x8xbf16>, vector<8x8xf32> -> vector<8x8xf32>
    %563 = vector.extract_strided_slice %494 {offsets = [0, 24], sizes = [8, 8], strides = [1, 1]} : vector<8x32xf32> to vector<8x8xf32>
    %564 = arith.truncf %563 : vector<8x8xf32> to vector<8x8xbf16>
    %565 = vector.extract_strided_slice %501 {offsets = [0, 24], sizes = [8, 8], strides = [1, 1]} : vector<8x32xf32> to vector<8x8xf32>
    %566 = arith.truncf %565 : vector<8x8xf32> to vector<8x8xbf16>
    %567 = vector.extract_strided_slice %502 {offsets = [0, 24], sizes = [8, 8], strides = [1, 1]} : vector<8x32xf32> to vector<8x8xf32>
    %568 = arith.truncf %567 : vector<8x8xf32> to vector<8x8xbf16>
    %cst_178 = arith.constant dense<0.000000e+00> : vector<8x8xf32>
    %569 = tpu.matmul %564, %566, %cst_178 {dimension_numbers = #tpu.dot_dimension_numbers<[1], [1], [0], [0], [0, 0, 1, 0], [], []>} : vector<8x8xbf16>, vector<8x8xbf16>, vector<8x8xf32> -> vector<8x8xf32>
    %570 = arith.addf %569, %9 : vector<8x8xf32>
    %cst_179 = arith.constant dense<0xFF800000> : vector<8xf32>
    %571 = vector.multi_reduction <maximumf>, %570, %cst_179 [1] : vector<8x8xf32> to vector<8xf32>
    %572 = vector.shape_cast %571 : vector<8xf32> to vector<8x1xf32>
    %573 = vector.broadcast %572 : vector<8x1xf32> to vector<8x8xf32>
    %574 = arith.subf %570, %573 : vector<8x8xf32>
    %575 = math.exp %574 : vector<8x8xf32>
    %cst_180 = arith.constant dense<0.000000e+00> : vector<8xf32>
    %576 = vector.multi_reduction <add>, %575, %cst_180 [1] : vector<8x8xf32> to vector<8xf32>
    %577 = vector.shape_cast %576 : vector<8xf32> to vector<8x1xf32>
    %578 = tpu.reciprocal %577 {approx = true} : vector<8x1xf32> -> vector<8x1xf32>
    %579 = vector.broadcast %578 : vector<8x1xf32> to vector<8x8xf32>
    %580 = arith.mulf %575, %579 : vector<8x8xf32>
    %581 = arith.truncf %580 : vector<8x8xf32> to vector<8x8xbf16>
    %cst_181 = arith.constant dense<0.000000e+00> : vector<8x8xf32>
    %582 = tpu.matmul %581, %568, %cst_181 {dimension_numbers = #tpu.dot_dimension_numbers<[1], [0], [0], [1], [0, 0, 1, 1], [], []>} : vector<8x8xbf16>, vector<8x8xbf16>, vector<8x8xf32> -> vector<8x8xf32>
    %583 = tpu.concatenate %522, %542, %562, %582 in 1 : vector<8x8xf32>, vector<8x8xf32>, vector<8x8xf32>, vector<8x8xf32> -> vector<8x32xf32>
    %584 = arith.truncf %583 : vector<8x32xf32> to vector<8x32xbf16>
    %cst_182 = arith.constant dense<0.000000e+00> : vector<8x32xf32>
    %585 = tpu.matmul %584, %486, %cst_182 {dimension_numbers = #tpu.dot_dimension_numbers<[1], [0], [0], [1], [0, 0, 1, 1], [], []>} : vector<8x32xbf16>, vector<32x32xbf16>, vector<8x32xf32> -> vector<8x32xf32>
    %586 = vector.broadcast %488 : vector<1x32xf32> to vector<8x32xf32>
    %587 = arith.addf %585, %586 : vector<8x32xf32>
    %588 = arith.addf %480, %587 : vector<8x32xf32>
    %c5 = arith.constant 5 : index
    %c0_183 = arith.constant 0 : index
    %c0_184 = arith.constant 0 : index
    %589 = vector.load %arg8[%c5, %c0_183, %c0_184] : memref<10x2x32xf32, #tpu.memory_space<vmem>>, vector<1x1x32xf32>
    %590 = vector.shape_cast %589 : vector<1x1x32xf32> to vector<1x32xf32>
    %c5_185 = arith.constant 5 : index
    %c1_186 = arith.constant 1 : index
    %c0_187 = arith.constant 0 : index
    %591 = vector.load %arg8[%c5_185, %c1_186, %c0_187] : memref<10x2x32xf32, #tpu.memory_space<vmem>>, vector<1x1x32xf32>
    %592 = vector.shape_cast %591 : vector<1x1x32xf32> to vector<1x32xf32>
    %cst_188 = arith.constant dense<0.000000e+00> : vector<8xf32>
    %593 = vector.multi_reduction <add>, %588, %cst_188 [1] : vector<8x32xf32> to vector<8xf32>
    %594 = vector.shape_cast %593 : vector<8xf32> to vector<8x1xf32>
    %cst_189 = arith.constant 3.200000e+01 : f32
    %595 = vector.broadcast %cst_189 : f32 to vector<8x1xf32>
    %596 = arith.divf %594, %595 : vector<8x1xf32>
    %597 = vector.broadcast %596 : vector<8x1xf32> to vector<8x32xf32>
    %598 = arith.subf %588, %597 : vector<8x32xf32>
    %599 = arith.mulf %598, %598 : vector<8x32xf32>
    %cst_190 = arith.constant dense<0.000000e+00> : vector<8xf32>
    %600 = vector.multi_reduction <add>, %599, %cst_190 [1] : vector<8x32xf32> to vector<8xf32>
    %601 = vector.shape_cast %600 : vector<8xf32> to vector<8x1xf32>
    %cst_191 = arith.constant 3.200000e+01 : f32
    %602 = vector.broadcast %cst_191 : f32 to vector<8x1xf32>
    %603 = arith.divf %601, %602 : vector<8x1xf32>
    %604 = vector.broadcast %596 : vector<8x1xf32> to vector<8x32xf32>
    %605 = arith.subf %588, %604 : vector<8x32xf32>
    %cst_192 = arith.constant 9.99999997E-7 : f32
    %606 = vector.broadcast %cst_192 : f32 to vector<8x1xf32>
    %607 = arith.addf %603, %606 : vector<8x1xf32>
    %608 = math.rsqrt %607 : vector<8x1xf32>
    %609 = vector.broadcast %608 : vector<8x1xf32> to vector<8x32xf32>
    %610 = arith.mulf %605, %609 : vector<8x32xf32>
    %611 = vector.broadcast %590 : vector<1x32xf32> to vector<8x32xf32>
    %612 = arith.mulf %610, %611 : vector<8x32xf32>
    %613 = vector.broadcast %592 : vector<1x32xf32> to vector<8x32xf32>
    %614 = arith.addf %612, %613 : vector<8x32xf32>
    %c2_193 = arith.constant 2 : index
    %c0_194 = arith.constant 0 : index
    %c0_195 = arith.constant 0 : index
    %615 = vector.load %arg7[%c2_193, %c0_194, %c0_195] : memref<4x2x64xf32, #tpu.memory_space<vmem>>, vector<1x2x64xf32>
    %616 = vector.shape_cast %615 : vector<1x2x64xf32> to vector<2x64xf32>
    %617 = arith.truncf %614 : vector<8x32xf32> to vector<8x32xbf16>
    %c2_196 = arith.constant 2 : index
    %c0_197 = arith.constant 0 : index
    %c0_198 = arith.constant 0 : index
    %618 = vector.load %arg5[%c2_196, %c0_197, %c0_198] : memref<4x32x64xbf16, #tpu.memory_space<vmem>>, vector<1x32x64xbf16>
    %619 = vector.shape_cast %618 : vector<1x32x64xbf16> to vector<32x64xbf16>
    %cst_199 = arith.constant dense<0.000000e+00> : vector<8x64xf32>
    %620 = tpu.matmul %617, %619, %cst_199 {dimension_numbers = #tpu.dot_dimension_numbers<[1], [0], [0], [1], [0, 0, 1, 1], [], []>} : vector<8x32xbf16>, vector<32x64xbf16>, vector<8x64xf32> -> vector<8x64xf32>
    %621 = vector.extract_strided_slice %616 {offsets = [0, 0], sizes = [1, 64], strides = [1, 1]} : vector<2x64xf32> to vector<1x64xf32>
    %622 = vector.broadcast %621 : vector<1x64xf32> to vector<8x64xf32>
    %623 = arith.addf %620, %622 : vector<8x64xf32>
    %cst_200 = arith.constant 0.000000e+00 : f32
    %624 = vector.broadcast %cst_200 : f32 to vector<8x64xf32>
    %625 = arith.maximumf %623, %624 : vector<8x64xf32>
    %626 = arith.truncf %625 : vector<8x64xf32> to vector<8x64xbf16>
    %c2_201 = arith.constant 2 : index
    %c0_202 = arith.constant 0 : index
    %c0_203 = arith.constant 0 : index
    %627 = vector.load %arg6[%c2_201, %c0_202, %c0_203] : memref<4x64x32xbf16, #tpu.memory_space<vmem>>, vector<1x64x32xbf16>
    %628 = vector.shape_cast %627 : vector<1x64x32xbf16> to vector<64x32xbf16>
    %cst_204 = arith.constant dense<0.000000e+00> : vector<8x32xf32>
    %629 = tpu.matmul %626, %628, %cst_204 {dimension_numbers = #tpu.dot_dimension_numbers<[1], [0], [0], [1], [0, 0, 1, 1], [], []>} : vector<8x64xbf16>, vector<64x32xbf16>, vector<8x32xf32> -> vector<8x32xf32>
    %630 = vector.extract_strided_slice %616 {offsets = [1, 0], sizes = [1, 32], strides = [1, 1]} : vector<2x64xf32> to vector<1x32xf32>
    %631 = vector.broadcast %630 : vector<1x32xf32> to vector<8x32xf32>
    %632 = arith.addf %629, %631 : vector<8x32xf32>
    %633 = arith.addf %614, %632 : vector<8x32xf32>
    %c6 = arith.constant 6 : index
    %c0_205 = arith.constant 0 : index
    %c0_206 = arith.constant 0 : index
    %634 = vector.load %arg8[%c6, %c0_205, %c0_206] : memref<10x2x32xf32, #tpu.memory_space<vmem>>, vector<1x1x32xf32>
    %635 = vector.shape_cast %634 : vector<1x1x32xf32> to vector<1x32xf32>
    %c6_207 = arith.constant 6 : index
    %c1_208 = arith.constant 1 : index
    %c0_209 = arith.constant 0 : index
    %636 = vector.load %arg8[%c6_207, %c1_208, %c0_209] : memref<10x2x32xf32, #tpu.memory_space<vmem>>, vector<1x1x32xf32>
    %637 = vector.shape_cast %636 : vector<1x1x32xf32> to vector<1x32xf32>
    %cst_210 = arith.constant dense<0.000000e+00> : vector<8xf32>
    %638 = vector.multi_reduction <add>, %633, %cst_210 [1] : vector<8x32xf32> to vector<8xf32>
    %639 = vector.shape_cast %638 : vector<8xf32> to vector<8x1xf32>
    %cst_211 = arith.constant 3.200000e+01 : f32
    %640 = vector.broadcast %cst_211 : f32 to vector<8x1xf32>
    %641 = arith.divf %639, %640 : vector<8x1xf32>
    %642 = vector.broadcast %641 : vector<8x1xf32> to vector<8x32xf32>
    %643 = arith.subf %633, %642 : vector<8x32xf32>
    %644 = arith.mulf %643, %643 : vector<8x32xf32>
    %cst_212 = arith.constant dense<0.000000e+00> : vector<8xf32>
    %645 = vector.multi_reduction <add>, %644, %cst_212 [1] : vector<8x32xf32> to vector<8xf32>
    %646 = vector.shape_cast %645 : vector<8xf32> to vector<8x1xf32>
    %cst_213 = arith.constant 3.200000e+01 : f32
    %647 = vector.broadcast %cst_213 : f32 to vector<8x1xf32>
    %648 = arith.divf %646, %647 : vector<8x1xf32>
    %649 = vector.broadcast %641 : vector<8x1xf32> to vector<8x32xf32>
    %650 = arith.subf %633, %649 : vector<8x32xf32>
    %cst_214 = arith.constant 9.99999997E-7 : f32
    %651 = vector.broadcast %cst_214 : f32 to vector<8x1xf32>
    %652 = arith.addf %648, %651 : vector<8x1xf32>
    %653 = math.rsqrt %652 : vector<8x1xf32>
    %654 = vector.broadcast %653 : vector<8x1xf32> to vector<8x32xf32>
    %655 = arith.mulf %650, %654 : vector<8x32xf32>
    %656 = vector.broadcast %635 : vector<1x32xf32> to vector<8x32xf32>
    %657 = arith.mulf %655, %656 : vector<8x32xf32>
    %658 = vector.broadcast %637 : vector<1x32xf32> to vector<8x32xf32>
    %659 = arith.addf %657, %658 : vector<8x32xf32>
    %c4_215 = arith.constant 4 : index
    %c0_216 = arith.constant 0 : index
    %c0_217 = arith.constant 0 : index
    %660 = vector.load %arg3[%c4_215, %c0_216, %c0_217] : memref<6x32x128xbf16, #tpu.memory_space<vmem>>, vector<1x32x128xbf16>
    %661 = vector.shape_cast %660 : vector<1x32x128xbf16> to vector<32x128xbf16>
    %c4_218 = arith.constant 4 : index
    %c0_219 = arith.constant 0 : index
    %c0_220 = arith.constant 0 : index
    %662 = vector.load %arg4[%c4_218, %c0_219, %c0_220] : memref<6x2x128xf32, #tpu.memory_space<vmem>>, vector<1x2x128xf32>
    %663 = vector.shape_cast %662 : vector<1x2x128xf32> to vector<2x128xf32>
    %664 = vector.extract_strided_slice %661 {offsets = [0, 0], sizes = [32, 96], strides = [1, 1]} : vector<32x128xbf16> to vector<32x96xbf16>
    %665 = vector.extract_strided_slice %661 {offsets = [0, 96], sizes = [32, 32], strides = [1, 1]} : vector<32x128xbf16> to vector<32x32xbf16>
    %666 = vector.extract_strided_slice %663 {offsets = [0, 0], sizes = [1, 96], strides = [1, 1]} : vector<2x128xf32> to vector<1x96xf32>
    %667 = vector.extract_strided_slice %663 {offsets = [1, 0], sizes = [1, 32], strides = [1, 1]} : vector<2x128xf32> to vector<1x32xf32>
    %668 = arith.truncf %659 : vector<8x32xf32> to vector<8x32xbf16>
    %cst_221 = arith.constant dense<0.000000e+00> : vector<8x96xf32>
    %669 = tpu.matmul %668, %664, %cst_221 {dimension_numbers = #tpu.dot_dimension_numbers<[1], [0], [0], [1], [0, 0, 1, 1], [], []>} : vector<8x32xbf16>, vector<32x96xbf16>, vector<8x96xf32> -> vector<8x96xf32>
    %670 = vector.broadcast %666 : vector<1x96xf32> to vector<8x96xf32>
    %671 = arith.addf %669, %670 : vector<8x96xf32>
    %672 = vector.extract_strided_slice %671 {offsets = [0, 0], sizes = [8, 32], strides = [1, 1]} : vector<8x96xf32> to vector<8x32xf32>
    %673 = vector.extract_strided_slice %671 {offsets = [0, 32], sizes = [8, 32], strides = [1, 1]} : vector<8x96xf32> to vector<8x32xf32>
    %674 = vector.extract_strided_slice %671 {offsets = [0, 64], sizes = [8, 32], strides = [1, 1]} : vector<8x96xf32> to vector<8x32xf32>
    %675 = vector.extract_strided_slice %672 {offsets = [0, 0], sizes = [8, 8], strides = [1, 1]} : vector<8x32xf32> to vector<8x8xf32>
    %676 = arith.truncf %675 : vector<8x8xf32> to vector<8x8xbf16>
    %677 = vector.extract_strided_slice %673 {offsets = [0, 0], sizes = [8, 8], strides = [1, 1]} : vector<8x32xf32> to vector<8x8xf32>
    %678 = arith.truncf %677 : vector<8x8xf32> to vector<8x8xbf16>
    %679 = vector.extract_strided_slice %674 {offsets = [0, 0], sizes = [8, 8], strides = [1, 1]} : vector<8x32xf32> to vector<8x8xf32>
    %680 = arith.truncf %679 : vector<8x8xf32> to vector<8x8xbf16>
    %cst_222 = arith.constant dense<0.000000e+00> : vector<8x8xf32>
    %681 = tpu.matmul %676, %678, %cst_222 {dimension_numbers = #tpu.dot_dimension_numbers<[1], [1], [0], [0], [0, 0, 1, 0], [], []>} : vector<8x8xbf16>, vector<8x8xbf16>, vector<8x8xf32> -> vector<8x8xf32>
    %682 = arith.addf %681, %7 : vector<8x8xf32>
    %cst_223 = arith.constant dense<0xFF800000> : vector<8xf32>
    %683 = vector.multi_reduction <maximumf>, %682, %cst_223 [1] : vector<8x8xf32> to vector<8xf32>
    %684 = vector.shape_cast %683 : vector<8xf32> to vector<8x1xf32>
    %685 = vector.broadcast %684 : vector<8x1xf32> to vector<8x8xf32>
    %686 = arith.subf %682, %685 : vector<8x8xf32>
    %687 = math.exp %686 : vector<8x8xf32>
    %cst_224 = arith.constant dense<0.000000e+00> : vector<8xf32>
    %688 = vector.multi_reduction <add>, %687, %cst_224 [1] : vector<8x8xf32> to vector<8xf32>
    %689 = vector.shape_cast %688 : vector<8xf32> to vector<8x1xf32>
    %690 = tpu.reciprocal %689 {approx = true} : vector<8x1xf32> -> vector<8x1xf32>
    %691 = vector.broadcast %690 : vector<8x1xf32> to vector<8x8xf32>
    %692 = arith.mulf %687, %691 : vector<8x8xf32>
    %693 = arith.truncf %692 : vector<8x8xf32> to vector<8x8xbf16>
    %cst_225 = arith.constant dense<0.000000e+00> : vector<8x8xf32>
    %694 = tpu.matmul %693, %680, %cst_225 {dimension_numbers = #tpu.dot_dimension_numbers<[1], [0], [0], [1], [0, 0, 1, 1], [], []>} : vector<8x8xbf16>, vector<8x8xbf16>, vector<8x8xf32> -> vector<8x8xf32>
    %695 = vector.extract_strided_slice %672 {offsets = [0, 8], sizes = [8, 8], strides = [1, 1]} : vector<8x32xf32> to vector<8x8xf32>
    %696 = arith.truncf %695 : vector<8x8xf32> to vector<8x8xbf16>
    %697 = vector.extract_strided_slice %673 {offsets = [0, 8], sizes = [8, 8], strides = [1, 1]} : vector<8x32xf32> to vector<8x8xf32>
    %698 = arith.truncf %697 : vector<8x8xf32> to vector<8x8xbf16>
    %699 = vector.extract_strided_slice %674 {offsets = [0, 8], sizes = [8, 8], strides = [1, 1]} : vector<8x32xf32> to vector<8x8xf32>
    %700 = arith.truncf %699 : vector<8x8xf32> to vector<8x8xbf16>
    %cst_226 = arith.constant dense<0.000000e+00> : vector<8x8xf32>
    %701 = tpu.matmul %696, %698, %cst_226 {dimension_numbers = #tpu.dot_dimension_numbers<[1], [1], [0], [0], [0, 0, 1, 0], [], []>} : vector<8x8xbf16>, vector<8x8xbf16>, vector<8x8xf32> -> vector<8x8xf32>
    %702 = arith.addf %701, %7 : vector<8x8xf32>
    %cst_227 = arith.constant dense<0xFF800000> : vector<8xf32>
    %703 = vector.multi_reduction <maximumf>, %702, %cst_227 [1] : vector<8x8xf32> to vector<8xf32>
    %704 = vector.shape_cast %703 : vector<8xf32> to vector<8x1xf32>
    %705 = vector.broadcast %704 : vector<8x1xf32> to vector<8x8xf32>
    %706 = arith.subf %702, %705 : vector<8x8xf32>
    %707 = math.exp %706 : vector<8x8xf32>
    %cst_228 = arith.constant dense<0.000000e+00> : vector<8xf32>
    %708 = vector.multi_reduction <add>, %707, %cst_228 [1] : vector<8x8xf32> to vector<8xf32>
    %709 = vector.shape_cast %708 : vector<8xf32> to vector<8x1xf32>
    %710 = tpu.reciprocal %709 {approx = true} : vector<8x1xf32> -> vector<8x1xf32>
    %711 = vector.broadcast %710 : vector<8x1xf32> to vector<8x8xf32>
    %712 = arith.mulf %707, %711 : vector<8x8xf32>
    %713 = arith.truncf %712 : vector<8x8xf32> to vector<8x8xbf16>
    %cst_229 = arith.constant dense<0.000000e+00> : vector<8x8xf32>
    %714 = tpu.matmul %713, %700, %cst_229 {dimension_numbers = #tpu.dot_dimension_numbers<[1], [0], [0], [1], [0, 0, 1, 1], [], []>} : vector<8x8xbf16>, vector<8x8xbf16>, vector<8x8xf32> -> vector<8x8xf32>
    %715 = vector.extract_strided_slice %672 {offsets = [0, 16], sizes = [8, 8], strides = [1, 1]} : vector<8x32xf32> to vector<8x8xf32>
    %716 = arith.truncf %715 : vector<8x8xf32> to vector<8x8xbf16>
    %717 = vector.extract_strided_slice %673 {offsets = [0, 16], sizes = [8, 8], strides = [1, 1]} : vector<8x32xf32> to vector<8x8xf32>
    %718 = arith.truncf %717 : vector<8x8xf32> to vector<8x8xbf16>
    %719 = vector.extract_strided_slice %674 {offsets = [0, 16], sizes = [8, 8], strides = [1, 1]} : vector<8x32xf32> to vector<8x8xf32>
    %720 = arith.truncf %719 : vector<8x8xf32> to vector<8x8xbf16>
    %cst_230 = arith.constant dense<0.000000e+00> : vector<8x8xf32>
    %721 = tpu.matmul %716, %718, %cst_230 {dimension_numbers = #tpu.dot_dimension_numbers<[1], [1], [0], [0], [0, 0, 1, 0], [], []>} : vector<8x8xbf16>, vector<8x8xbf16>, vector<8x8xf32> -> vector<8x8xf32>
    %722 = arith.addf %721, %7 : vector<8x8xf32>
    %cst_231 = arith.constant dense<0xFF800000> : vector<8xf32>
    %723 = vector.multi_reduction <maximumf>, %722, %cst_231 [1] : vector<8x8xf32> to vector<8xf32>
    %724 = vector.shape_cast %723 : vector<8xf32> to vector<8x1xf32>
    %725 = vector.broadcast %724 : vector<8x1xf32> to vector<8x8xf32>
    %726 = arith.subf %722, %725 : vector<8x8xf32>
    %727 = math.exp %726 : vector<8x8xf32>
    %cst_232 = arith.constant dense<0.000000e+00> : vector<8xf32>
    %728 = vector.multi_reduction <add>, %727, %cst_232 [1] : vector<8x8xf32> to vector<8xf32>
    %729 = vector.shape_cast %728 : vector<8xf32> to vector<8x1xf32>
    %730 = tpu.reciprocal %729 {approx = true} : vector<8x1xf32> -> vector<8x1xf32>
    %731 = vector.broadcast %730 : vector<8x1xf32> to vector<8x8xf32>
    %732 = arith.mulf %727, %731 : vector<8x8xf32>
    %733 = arith.truncf %732 : vector<8x8xf32> to vector<8x8xbf16>
    %cst_233 = arith.constant dense<0.000000e+00> : vector<8x8xf32>
    %734 = tpu.matmul %733, %720, %cst_233 {dimension_numbers = #tpu.dot_dimension_numbers<[1], [0], [0], [1], [0, 0, 1, 1], [], []>} : vector<8x8xbf16>, vector<8x8xbf16>, vector<8x8xf32> -> vector<8x8xf32>
    %735 = vector.extract_strided_slice %672 {offsets = [0, 24], sizes = [8, 8], strides = [1, 1]} : vector<8x32xf32> to vector<8x8xf32>
    %736 = arith.truncf %735 : vector<8x8xf32> to vector<8x8xbf16>
    %737 = vector.extract_strided_slice %673 {offsets = [0, 24], sizes = [8, 8], strides = [1, 1]} : vector<8x32xf32> to vector<8x8xf32>
    %738 = arith.truncf %737 : vector<8x8xf32> to vector<8x8xbf16>
    %739 = vector.extract_strided_slice %674 {offsets = [0, 24], sizes = [8, 8], strides = [1, 1]} : vector<8x32xf32> to vector<8x8xf32>
    %740 = arith.truncf %739 : vector<8x8xf32> to vector<8x8xbf16>
    %cst_234 = arith.constant dense<0.000000e+00> : vector<8x8xf32>
    %741 = tpu.matmul %736, %738, %cst_234 {dimension_numbers = #tpu.dot_dimension_numbers<[1], [1], [0], [0], [0, 0, 1, 0], [], []>} : vector<8x8xbf16>, vector<8x8xbf16>, vector<8x8xf32> -> vector<8x8xf32>
    %742 = arith.addf %741, %7 : vector<8x8xf32>
    %cst_235 = arith.constant dense<0xFF800000> : vector<8xf32>
    %743 = vector.multi_reduction <maximumf>, %742, %cst_235 [1] : vector<8x8xf32> to vector<8xf32>
    %744 = vector.shape_cast %743 : vector<8xf32> to vector<8x1xf32>
    %745 = vector.broadcast %744 : vector<8x1xf32> to vector<8x8xf32>
    %746 = arith.subf %742, %745 : vector<8x8xf32>
    %747 = math.exp %746 : vector<8x8xf32>
    %cst_236 = arith.constant dense<0.000000e+00> : vector<8xf32>
    %748 = vector.multi_reduction <add>, %747, %cst_236 [1] : vector<8x8xf32> to vector<8xf32>
    %749 = vector.shape_cast %748 : vector<8xf32> to vector<8x1xf32>
    %750 = tpu.reciprocal %749 {approx = true} : vector<8x1xf32> -> vector<8x1xf32>
    %751 = vector.broadcast %750 : vector<8x1xf32> to vector<8x8xf32>
    %752 = arith.mulf %747, %751 : vector<8x8xf32>
    %753 = arith.truncf %752 : vector<8x8xf32> to vector<8x8xbf16>
    %cst_237 = arith.constant dense<0.000000e+00> : vector<8x8xf32>
    %754 = tpu.matmul %753, %740, %cst_237 {dimension_numbers = #tpu.dot_dimension_numbers<[1], [0], [0], [1], [0, 0, 1, 1], [], []>} : vector<8x8xbf16>, vector<8x8xbf16>, vector<8x8xf32> -> vector<8x8xf32>
    %755 = tpu.concatenate %694, %714, %734, %754 in 1 : vector<8x8xf32>, vector<8x8xf32>, vector<8x8xf32>, vector<8x8xf32> -> vector<8x32xf32>
    %756 = arith.truncf %755 : vector<8x32xf32> to vector<8x32xbf16>
    %cst_238 = arith.constant dense<0.000000e+00> : vector<8x32xf32>
    %757 = tpu.matmul %756, %665, %cst_238 {dimension_numbers = #tpu.dot_dimension_numbers<[1], [0], [0], [1], [0, 0, 1, 1], [], []>} : vector<8x32xbf16>, vector<32x32xbf16>, vector<8x32xf32> -> vector<8x32xf32>
    %758 = vector.broadcast %667 : vector<1x32xf32> to vector<8x32xf32>
    %759 = arith.addf %757, %758 : vector<8x32xf32>
    %760 = arith.addf %659, %759 : vector<8x32xf32>
    %c7 = arith.constant 7 : index
    %c0_239 = arith.constant 0 : index
    %c0_240 = arith.constant 0 : index
    %761 = vector.load %arg8[%c7, %c0_239, %c0_240] : memref<10x2x32xf32, #tpu.memory_space<vmem>>, vector<1x1x32xf32>
    %762 = vector.shape_cast %761 : vector<1x1x32xf32> to vector<1x32xf32>
    %c7_241 = arith.constant 7 : index
    %c1_242 = arith.constant 1 : index
    %c0_243 = arith.constant 0 : index
    %763 = vector.load %arg8[%c7_241, %c1_242, %c0_243] : memref<10x2x32xf32, #tpu.memory_space<vmem>>, vector<1x1x32xf32>
    %764 = vector.shape_cast %763 : vector<1x1x32xf32> to vector<1x32xf32>
    %cst_244 = arith.constant dense<0.000000e+00> : vector<8xf32>
    %765 = vector.multi_reduction <add>, %760, %cst_244 [1] : vector<8x32xf32> to vector<8xf32>
    %766 = vector.shape_cast %765 : vector<8xf32> to vector<8x1xf32>
    %cst_245 = arith.constant 3.200000e+01 : f32
    %767 = vector.broadcast %cst_245 : f32 to vector<8x1xf32>
    %768 = arith.divf %766, %767 : vector<8x1xf32>
    %769 = vector.broadcast %768 : vector<8x1xf32> to vector<8x32xf32>
    %770 = arith.subf %760, %769 : vector<8x32xf32>
    %771 = arith.mulf %770, %770 : vector<8x32xf32>
    %cst_246 = arith.constant dense<0.000000e+00> : vector<8xf32>
    %772 = vector.multi_reduction <add>, %771, %cst_246 [1] : vector<8x32xf32> to vector<8xf32>
    %773 = vector.shape_cast %772 : vector<8xf32> to vector<8x1xf32>
    %cst_247 = arith.constant 3.200000e+01 : f32
    %774 = vector.broadcast %cst_247 : f32 to vector<8x1xf32>
    %775 = arith.divf %773, %774 : vector<8x1xf32>
    %776 = vector.broadcast %768 : vector<8x1xf32> to vector<8x32xf32>
    %777 = arith.subf %760, %776 : vector<8x32xf32>
    %cst_248 = arith.constant 9.99999997E-7 : f32
    %778 = vector.broadcast %cst_248 : f32 to vector<8x1xf32>
    %779 = arith.addf %775, %778 : vector<8x1xf32>
    %780 = math.rsqrt %779 : vector<8x1xf32>
    %781 = vector.broadcast %780 : vector<8x1xf32> to vector<8x32xf32>
    %782 = arith.mulf %777, %781 : vector<8x32xf32>
    %783 = vector.broadcast %762 : vector<1x32xf32> to vector<8x32xf32>
    %784 = arith.mulf %782, %783 : vector<8x32xf32>
    %785 = vector.broadcast %764 : vector<1x32xf32> to vector<8x32xf32>
    %786 = arith.addf %784, %785 : vector<8x32xf32>
    %c5_249 = arith.constant 5 : index
    %c0_250 = arith.constant 0 : index
    %c0_251 = arith.constant 0 : index
    %787 = vector.load %arg3[%c5_249, %c0_250, %c0_251] : memref<6x32x128xbf16, #tpu.memory_space<vmem>>, vector<1x32x128xbf16>
    %788 = vector.shape_cast %787 : vector<1x32x128xbf16> to vector<32x128xbf16>
    %c5_252 = arith.constant 5 : index
    %c0_253 = arith.constant 0 : index
    %c0_254 = arith.constant 0 : index
    %789 = vector.load %arg4[%c5_252, %c0_253, %c0_254] : memref<6x2x128xf32, #tpu.memory_space<vmem>>, vector<1x2x128xf32>
    %790 = vector.shape_cast %789 : vector<1x2x128xf32> to vector<2x128xf32>
    %791 = vector.extract_strided_slice %788 {offsets = [0, 0], sizes = [32, 96], strides = [1, 1]} : vector<32x128xbf16> to vector<32x96xbf16>
    %792 = vector.extract_strided_slice %788 {offsets = [0, 96], sizes = [32, 32], strides = [1, 1]} : vector<32x128xbf16> to vector<32x32xbf16>
    %793 = vector.extract_strided_slice %790 {offsets = [0, 0], sizes = [1, 96], strides = [1, 1]} : vector<2x128xf32> to vector<1x96xf32>
    %794 = vector.extract_strided_slice %790 {offsets = [1, 0], sizes = [1, 32], strides = [1, 1]} : vector<2x128xf32> to vector<1x32xf32>
    %795 = arith.truncf %786 : vector<8x32xf32> to vector<8x32xbf16>
    %796 = vector.extract_strided_slice %791 {offsets = [0, 0], sizes = [32, 32], strides = [1, 1]} : vector<32x96xbf16> to vector<32x32xbf16>
    %cst_255 = arith.constant dense<0.000000e+00> : vector<8x32xf32>
    %797 = tpu.matmul %795, %796, %cst_255 {dimension_numbers = #tpu.dot_dimension_numbers<[1], [0], [0], [1], [0, 0, 1, 1], [], []>} : vector<8x32xbf16>, vector<32x32xbf16>, vector<8x32xf32> -> vector<8x32xf32>
    %798 = vector.extract_strided_slice %793 {offsets = [0, 0], sizes = [1, 32], strides = [1, 1]} : vector<1x96xf32> to vector<1x32xf32>
    %799 = vector.broadcast %798 : vector<1x32xf32> to vector<8x32xf32>
    %800 = arith.addf %797, %799 : vector<8x32xf32>
    %801 = arith.truncf %353 : vector<8x32xf32> to vector<8x32xbf16>
    %802 = vector.extract_strided_slice %791 {offsets = [0, 32], sizes = [32, 64], strides = [1, 1]} : vector<32x96xbf16> to vector<32x64xbf16>
    %cst_256 = arith.constant dense<0.000000e+00> : vector<8x64xf32>
    %803 = tpu.matmul %801, %802, %cst_256 {dimension_numbers = #tpu.dot_dimension_numbers<[1], [0], [0], [1], [0, 0, 1, 1], [], []>} : vector<8x32xbf16>, vector<32x64xbf16>, vector<8x64xf32> -> vector<8x64xf32>
    %804 = vector.extract_strided_slice %793 {offsets = [0, 32], sizes = [1, 64], strides = [1, 1]} : vector<1x96xf32> to vector<1x64xf32>
    %805 = vector.broadcast %804 : vector<1x64xf32> to vector<8x64xf32>
    %806 = arith.addf %803, %805 : vector<8x64xf32>
    %807 = vector.extract_strided_slice %806 {offsets = [0, 0], sizes = [8, 32], strides = [1, 1]} : vector<8x64xf32> to vector<8x32xf32>
    %808 = vector.extract_strided_slice %806 {offsets = [0, 32], sizes = [8, 32], strides = [1, 1]} : vector<8x64xf32> to vector<8x32xf32>
    %809 = vector.extract_strided_slice %800 {offsets = [0, 0], sizes = [8, 8], strides = [1, 1]} : vector<8x32xf32> to vector<8x8xf32>
    %810 = arith.truncf %809 : vector<8x8xf32> to vector<8x8xbf16>
    %811 = vector.extract_strided_slice %807 {offsets = [0, 0], sizes = [8, 8], strides = [1, 1]} : vector<8x32xf32> to vector<8x8xf32>
    %812 = arith.truncf %811 : vector<8x8xf32> to vector<8x8xbf16>
    %813 = vector.extract_strided_slice %808 {offsets = [0, 0], sizes = [8, 8], strides = [1, 1]} : vector<8x32xf32> to vector<8x8xf32>
    %814 = arith.truncf %813 : vector<8x8xf32> to vector<8x8xbf16>
    %cst_257 = arith.constant dense<0.000000e+00> : vector<8x8xf32>
    %815 = tpu.matmul %810, %812, %cst_257 {dimension_numbers = #tpu.dot_dimension_numbers<[1], [1], [0], [0], [0, 0, 1, 0], [], []>} : vector<8x8xbf16>, vector<8x8xbf16>, vector<8x8xf32> -> vector<8x8xf32>
    %816 = arith.addf %815, %9 : vector<8x8xf32>
    %cst_258 = arith.constant dense<0xFF800000> : vector<8xf32>
    %817 = vector.multi_reduction <maximumf>, %816, %cst_258 [1] : vector<8x8xf32> to vector<8xf32>
    %818 = vector.shape_cast %817 : vector<8xf32> to vector<8x1xf32>
    %819 = vector.broadcast %818 : vector<8x1xf32> to vector<8x8xf32>
    %820 = arith.subf %816, %819 : vector<8x8xf32>
    %821 = math.exp %820 : vector<8x8xf32>
    %cst_259 = arith.constant dense<0.000000e+00> : vector<8xf32>
    %822 = vector.multi_reduction <add>, %821, %cst_259 [1] : vector<8x8xf32> to vector<8xf32>
    %823 = vector.shape_cast %822 : vector<8xf32> to vector<8x1xf32>
    %824 = tpu.reciprocal %823 {approx = true} : vector<8x1xf32> -> vector<8x1xf32>
    %825 = vector.broadcast %824 : vector<8x1xf32> to vector<8x8xf32>
    %826 = arith.mulf %821, %825 : vector<8x8xf32>
    %827 = arith.truncf %826 : vector<8x8xf32> to vector<8x8xbf16>
    %cst_260 = arith.constant dense<0.000000e+00> : vector<8x8xf32>
    %828 = tpu.matmul %827, %814, %cst_260 {dimension_numbers = #tpu.dot_dimension_numbers<[1], [0], [0], [1], [0, 0, 1, 1], [], []>} : vector<8x8xbf16>, vector<8x8xbf16>, vector<8x8xf32> -> vector<8x8xf32>
    %829 = vector.extract_strided_slice %800 {offsets = [0, 8], sizes = [8, 8], strides = [1, 1]} : vector<8x32xf32> to vector<8x8xf32>
    %830 = arith.truncf %829 : vector<8x8xf32> to vector<8x8xbf16>
    %831 = vector.extract_strided_slice %807 {offsets = [0, 8], sizes = [8, 8], strides = [1, 1]} : vector<8x32xf32> to vector<8x8xf32>
    %832 = arith.truncf %831 : vector<8x8xf32> to vector<8x8xbf16>
    %833 = vector.extract_strided_slice %808 {offsets = [0, 8], sizes = [8, 8], strides = [1, 1]} : vector<8x32xf32> to vector<8x8xf32>
    %834 = arith.truncf %833 : vector<8x8xf32> to vector<8x8xbf16>
    %cst_261 = arith.constant dense<0.000000e+00> : vector<8x8xf32>
    %835 = tpu.matmul %830, %832, %cst_261 {dimension_numbers = #tpu.dot_dimension_numbers<[1], [1], [0], [0], [0, 0, 1, 0], [], []>} : vector<8x8xbf16>, vector<8x8xbf16>, vector<8x8xf32> -> vector<8x8xf32>
    %836 = arith.addf %835, %9 : vector<8x8xf32>
    %cst_262 = arith.constant dense<0xFF800000> : vector<8xf32>
    %837 = vector.multi_reduction <maximumf>, %836, %cst_262 [1] : vector<8x8xf32> to vector<8xf32>
    %838 = vector.shape_cast %837 : vector<8xf32> to vector<8x1xf32>
    %839 = vector.broadcast %838 : vector<8x1xf32> to vector<8x8xf32>
    %840 = arith.subf %836, %839 : vector<8x8xf32>
    %841 = math.exp %840 : vector<8x8xf32>
    %cst_263 = arith.constant dense<0.000000e+00> : vector<8xf32>
    %842 = vector.multi_reduction <add>, %841, %cst_263 [1] : vector<8x8xf32> to vector<8xf32>
    %843 = vector.shape_cast %842 : vector<8xf32> to vector<8x1xf32>
    %844 = tpu.reciprocal %843 {approx = true} : vector<8x1xf32> -> vector<8x1xf32>
    %845 = vector.broadcast %844 : vector<8x1xf32> to vector<8x8xf32>
    %846 = arith.mulf %841, %845 : vector<8x8xf32>
    %847 = arith.truncf %846 : vector<8x8xf32> to vector<8x8xbf16>
    %cst_264 = arith.constant dense<0.000000e+00> : vector<8x8xf32>
    %848 = tpu.matmul %847, %834, %cst_264 {dimension_numbers = #tpu.dot_dimension_numbers<[1], [0], [0], [1], [0, 0, 1, 1], [], []>} : vector<8x8xbf16>, vector<8x8xbf16>, vector<8x8xf32> -> vector<8x8xf32>
    %849 = vector.extract_strided_slice %800 {offsets = [0, 16], sizes = [8, 8], strides = [1, 1]} : vector<8x32xf32> to vector<8x8xf32>
    %850 = arith.truncf %849 : vector<8x8xf32> to vector<8x8xbf16>
    %851 = vector.extract_strided_slice %807 {offsets = [0, 16], sizes = [8, 8], strides = [1, 1]} : vector<8x32xf32> to vector<8x8xf32>
    %852 = arith.truncf %851 : vector<8x8xf32> to vector<8x8xbf16>
    %853 = vector.extract_strided_slice %808 {offsets = [0, 16], sizes = [8, 8], strides = [1, 1]} : vector<8x32xf32> to vector<8x8xf32>
    %854 = arith.truncf %853 : vector<8x8xf32> to vector<8x8xbf16>
    %cst_265 = arith.constant dense<0.000000e+00> : vector<8x8xf32>
    %855 = tpu.matmul %850, %852, %cst_265 {dimension_numbers = #tpu.dot_dimension_numbers<[1], [1], [0], [0], [0, 0, 1, 0], [], []>} : vector<8x8xbf16>, vector<8x8xbf16>, vector<8x8xf32> -> vector<8x8xf32>
    %856 = arith.addf %855, %9 : vector<8x8xf32>
    %cst_266 = arith.constant dense<0xFF800000> : vector<8xf32>
    %857 = vector.multi_reduction <maximumf>, %856, %cst_266 [1] : vector<8x8xf32> to vector<8xf32>
    %858 = vector.shape_cast %857 : vector<8xf32> to vector<8x1xf32>
    %859 = vector.broadcast %858 : vector<8x1xf32> to vector<8x8xf32>
    %860 = arith.subf %856, %859 : vector<8x8xf32>
    %861 = math.exp %860 : vector<8x8xf32>
    %cst_267 = arith.constant dense<0.000000e+00> : vector<8xf32>
    %862 = vector.multi_reduction <add>, %861, %cst_267 [1] : vector<8x8xf32> to vector<8xf32>
    %863 = vector.shape_cast %862 : vector<8xf32> to vector<8x1xf32>
    %864 = tpu.reciprocal %863 {approx = true} : vector<8x1xf32> -> vector<8x1xf32>
    %865 = vector.broadcast %864 : vector<8x1xf32> to vector<8x8xf32>
    %866 = arith.mulf %861, %865 : vector<8x8xf32>
    %867 = arith.truncf %866 : vector<8x8xf32> to vector<8x8xbf16>
    %cst_268 = arith.constant dense<0.000000e+00> : vector<8x8xf32>
    %868 = tpu.matmul %867, %854, %cst_268 {dimension_numbers = #tpu.dot_dimension_numbers<[1], [0], [0], [1], [0, 0, 1, 1], [], []>} : vector<8x8xbf16>, vector<8x8xbf16>, vector<8x8xf32> -> vector<8x8xf32>
    %869 = vector.extract_strided_slice %800 {offsets = [0, 24], sizes = [8, 8], strides = [1, 1]} : vector<8x32xf32> to vector<8x8xf32>
    %870 = arith.truncf %869 : vector<8x8xf32> to vector<8x8xbf16>
    %871 = vector.extract_strided_slice %807 {offsets = [0, 24], sizes = [8, 8], strides = [1, 1]} : vector<8x32xf32> to vector<8x8xf32>
    %872 = arith.truncf %871 : vector<8x8xf32> to vector<8x8xbf16>
    %873 = vector.extract_strided_slice %808 {offsets = [0, 24], sizes = [8, 8], strides = [1, 1]} : vector<8x32xf32> to vector<8x8xf32>
    %874 = arith.truncf %873 : vector<8x8xf32> to vector<8x8xbf16>
    %cst_269 = arith.constant dense<0.000000e+00> : vector<8x8xf32>
    %875 = tpu.matmul %870, %872, %cst_269 {dimension_numbers = #tpu.dot_dimension_numbers<[1], [1], [0], [0], [0, 0, 1, 0], [], []>} : vector<8x8xbf16>, vector<8x8xbf16>, vector<8x8xf32> -> vector<8x8xf32>
    %876 = arith.addf %875, %9 : vector<8x8xf32>
    %cst_270 = arith.constant dense<0xFF800000> : vector<8xf32>
    %877 = vector.multi_reduction <maximumf>, %876, %cst_270 [1] : vector<8x8xf32> to vector<8xf32>
    %878 = vector.shape_cast %877 : vector<8xf32> to vector<8x1xf32>
    %879 = vector.broadcast %878 : vector<8x1xf32> to vector<8x8xf32>
    %880 = arith.subf %876, %879 : vector<8x8xf32>
    %881 = math.exp %880 : vector<8x8xf32>
    %cst_271 = arith.constant dense<0.000000e+00> : vector<8xf32>
    %882 = vector.multi_reduction <add>, %881, %cst_271 [1] : vector<8x8xf32> to vector<8xf32>
    %883 = vector.shape_cast %882 : vector<8xf32> to vector<8x1xf32>
    %884 = tpu.reciprocal %883 {approx = true} : vector<8x1xf32> -> vector<8x1xf32>
    %885 = vector.broadcast %884 : vector<8x1xf32> to vector<8x8xf32>
    %886 = arith.mulf %881, %885 : vector<8x8xf32>
    %887 = arith.truncf %886 : vector<8x8xf32> to vector<8x8xbf16>
    %cst_272 = arith.constant dense<0.000000e+00> : vector<8x8xf32>
    %888 = tpu.matmul %887, %874, %cst_272 {dimension_numbers = #tpu.dot_dimension_numbers<[1], [0], [0], [1], [0, 0, 1, 1], [], []>} : vector<8x8xbf16>, vector<8x8xbf16>, vector<8x8xf32> -> vector<8x8xf32>
    %889 = tpu.concatenate %828, %848, %868, %888 in 1 : vector<8x8xf32>, vector<8x8xf32>, vector<8x8xf32>, vector<8x8xf32> -> vector<8x32xf32>
    %890 = arith.truncf %889 : vector<8x32xf32> to vector<8x32xbf16>
    %cst_273 = arith.constant dense<0.000000e+00> : vector<8x32xf32>
    %891 = tpu.matmul %890, %792, %cst_273 {dimension_numbers = #tpu.dot_dimension_numbers<[1], [0], [0], [1], [0, 0, 1, 1], [], []>} : vector<8x32xbf16>, vector<32x32xbf16>, vector<8x32xf32> -> vector<8x32xf32>
    %892 = vector.broadcast %794 : vector<1x32xf32> to vector<8x32xf32>
    %893 = arith.addf %891, %892 : vector<8x32xf32>
    %894 = arith.addf %786, %893 : vector<8x32xf32>
    %c8_274 = arith.constant 8 : index
    %c0_275 = arith.constant 0 : index
    %c0_276 = arith.constant 0 : index
    %895 = vector.load %arg8[%c8_274, %c0_275, %c0_276] : memref<10x2x32xf32, #tpu.memory_space<vmem>>, vector<1x1x32xf32>
    %896 = vector.shape_cast %895 : vector<1x1x32xf32> to vector<1x32xf32>
    %c8_277 = arith.constant 8 : index
    %c1_278 = arith.constant 1 : index
    %c0_279 = arith.constant 0 : index
    %897 = vector.load %arg8[%c8_277, %c1_278, %c0_279] : memref<10x2x32xf32, #tpu.memory_space<vmem>>, vector<1x1x32xf32>
    %898 = vector.shape_cast %897 : vector<1x1x32xf32> to vector<1x32xf32>
    %cst_280 = arith.constant dense<0.000000e+00> : vector<8xf32>
    %899 = vector.multi_reduction <add>, %894, %cst_280 [1] : vector<8x32xf32> to vector<8xf32>
    %900 = vector.shape_cast %899 : vector<8xf32> to vector<8x1xf32>
    %cst_281 = arith.constant 3.200000e+01 : f32
    %901 = vector.broadcast %cst_281 : f32 to vector<8x1xf32>
    %902 = arith.divf %900, %901 : vector<8x1xf32>
    %903 = vector.broadcast %902 : vector<8x1xf32> to vector<8x32xf32>
    %904 = arith.subf %894, %903 : vector<8x32xf32>
    %905 = arith.mulf %904, %904 : vector<8x32xf32>
    %cst_282 = arith.constant dense<0.000000e+00> : vector<8xf32>
    %906 = vector.multi_reduction <add>, %905, %cst_282 [1] : vector<8x32xf32> to vector<8xf32>
    %907 = vector.shape_cast %906 : vector<8xf32> to vector<8x1xf32>
    %cst_283 = arith.constant 3.200000e+01 : f32
    %908 = vector.broadcast %cst_283 : f32 to vector<8x1xf32>
    %909 = arith.divf %907, %908 : vector<8x1xf32>
    %910 = vector.broadcast %902 : vector<8x1xf32> to vector<8x32xf32>
    %911 = arith.subf %894, %910 : vector<8x32xf32>
    %cst_284 = arith.constant 9.99999997E-7 : f32
    %912 = vector.broadcast %cst_284 : f32 to vector<8x1xf32>
    %913 = arith.addf %909, %912 : vector<8x1xf32>
    %914 = math.rsqrt %913 : vector<8x1xf32>
    %915 = vector.broadcast %914 : vector<8x1xf32> to vector<8x32xf32>
    %916 = arith.mulf %911, %915 : vector<8x32xf32>
    %917 = vector.broadcast %896 : vector<1x32xf32> to vector<8x32xf32>
    %918 = arith.mulf %916, %917 : vector<8x32xf32>
    %919 = vector.broadcast %898 : vector<1x32xf32> to vector<8x32xf32>
    %920 = arith.addf %918, %919 : vector<8x32xf32>
    %c3_285 = arith.constant 3 : index
    %c0_286 = arith.constant 0 : index
    %c0_287 = arith.constant 0 : index
    %921 = vector.load %arg7[%c3_285, %c0_286, %c0_287] : memref<4x2x64xf32, #tpu.memory_space<vmem>>, vector<1x2x64xf32>
    %922 = vector.shape_cast %921 : vector<1x2x64xf32> to vector<2x64xf32>
    %923 = arith.truncf %920 : vector<8x32xf32> to vector<8x32xbf16>
    %c3_288 = arith.constant 3 : index
    %c0_289 = arith.constant 0 : index
    %c0_290 = arith.constant 0 : index
    %924 = vector.load %arg5[%c3_288, %c0_289, %c0_290] : memref<4x32x64xbf16, #tpu.memory_space<vmem>>, vector<1x32x64xbf16>
    %925 = vector.shape_cast %924 : vector<1x32x64xbf16> to vector<32x64xbf16>
    %cst_291 = arith.constant dense<0.000000e+00> : vector<8x64xf32>
    %926 = tpu.matmul %923, %925, %cst_291 {dimension_numbers = #tpu.dot_dimension_numbers<[1], [0], [0], [1], [0, 0, 1, 1], [], []>} : vector<8x32xbf16>, vector<32x64xbf16>, vector<8x64xf32> -> vector<8x64xf32>
    %927 = vector.extract_strided_slice %922 {offsets = [0, 0], sizes = [1, 64], strides = [1, 1]} : vector<2x64xf32> to vector<1x64xf32>
    %928 = vector.broadcast %927 : vector<1x64xf32> to vector<8x64xf32>
    %929 = arith.addf %926, %928 : vector<8x64xf32>
    %cst_292 = arith.constant 0.000000e+00 : f32
    %930 = vector.broadcast %cst_292 : f32 to vector<8x64xf32>
    %931 = arith.maximumf %929, %930 : vector<8x64xf32>
    %932 = arith.truncf %931 : vector<8x64xf32> to vector<8x64xbf16>
    %c3_293 = arith.constant 3 : index
    %c0_294 = arith.constant 0 : index
    %c0_295 = arith.constant 0 : index
    %933 = vector.load %arg6[%c3_293, %c0_294, %c0_295] : memref<4x64x32xbf16, #tpu.memory_space<vmem>>, vector<1x64x32xbf16>
    %934 = vector.shape_cast %933 : vector<1x64x32xbf16> to vector<64x32xbf16>
    %cst_296 = arith.constant dense<0.000000e+00> : vector<8x32xf32>
    %935 = tpu.matmul %932, %934, %cst_296 {dimension_numbers = #tpu.dot_dimension_numbers<[1], [0], [0], [1], [0, 0, 1, 1], [], []>} : vector<8x64xbf16>, vector<64x32xbf16>, vector<8x32xf32> -> vector<8x32xf32>
    %936 = vector.extract_strided_slice %922 {offsets = [1, 0], sizes = [1, 32], strides = [1, 1]} : vector<2x64xf32> to vector<1x32xf32>
    %937 = vector.broadcast %936 : vector<1x32xf32> to vector<8x32xf32>
    %938 = arith.addf %935, %937 : vector<8x32xf32>
    %939 = arith.addf %920, %938 : vector<8x32xf32>
    %c9 = arith.constant 9 : index
    %c0_297 = arith.constant 0 : index
    %c0_298 = arith.constant 0 : index
    %940 = vector.load %arg8[%c9, %c0_297, %c0_298] : memref<10x2x32xf32, #tpu.memory_space<vmem>>, vector<1x1x32xf32>
    %941 = vector.shape_cast %940 : vector<1x1x32xf32> to vector<1x32xf32>
    %c9_299 = arith.constant 9 : index
    %c1_300 = arith.constant 1 : index
    %c0_301 = arith.constant 0 : index
    %942 = vector.load %arg8[%c9_299, %c1_300, %c0_301] : memref<10x2x32xf32, #tpu.memory_space<vmem>>, vector<1x1x32xf32>
    %943 = vector.shape_cast %942 : vector<1x1x32xf32> to vector<1x32xf32>
    %cst_302 = arith.constant dense<0.000000e+00> : vector<8xf32>
    %944 = vector.multi_reduction <add>, %939, %cst_302 [1] : vector<8x32xf32> to vector<8xf32>
    %945 = vector.shape_cast %944 : vector<8xf32> to vector<8x1xf32>
    %cst_303 = arith.constant 3.200000e+01 : f32
    %946 = vector.broadcast %cst_303 : f32 to vector<8x1xf32>
    %947 = arith.divf %945, %946 : vector<8x1xf32>
    %948 = vector.broadcast %947 : vector<8x1xf32> to vector<8x32xf32>
    %949 = arith.subf %939, %948 : vector<8x32xf32>
    %950 = arith.mulf %949, %949 : vector<8x32xf32>
    %cst_304 = arith.constant dense<0.000000e+00> : vector<8xf32>
    %951 = vector.multi_reduction <add>, %950, %cst_304 [1] : vector<8x32xf32> to vector<8xf32>
    %952 = vector.shape_cast %951 : vector<8xf32> to vector<8x1xf32>
    %cst_305 = arith.constant 3.200000e+01 : f32
    %953 = vector.broadcast %cst_305 : f32 to vector<8x1xf32>
    %954 = arith.divf %952, %953 : vector<8x1xf32>
    %955 = vector.broadcast %947 : vector<8x1xf32> to vector<8x32xf32>
    %956 = arith.subf %939, %955 : vector<8x32xf32>
    %cst_306 = arith.constant 9.99999997E-7 : f32
    %957 = vector.broadcast %cst_306 : f32 to vector<8x1xf32>
    %958 = arith.addf %954, %957 : vector<8x1xf32>
    %959 = math.rsqrt %958 : vector<8x1xf32>
    %960 = vector.broadcast %959 : vector<8x1xf32> to vector<8x32xf32>
    %961 = arith.mulf %956, %960 : vector<8x32xf32>
    %962 = vector.broadcast %941 : vector<1x32xf32> to vector<8x32xf32>
    %963 = arith.mulf %961, %962 : vector<8x32xf32>
    %964 = vector.broadcast %943 : vector<1x32xf32> to vector<8x32xf32>
    %965 = arith.addf %963, %964 : vector<8x32xf32>
    %966 = arith.truncf %965 : vector<8x32xf32> to vector<8x32xbf16>
    %c0_307 = arith.constant 0 : index
    %c0_308 = arith.constant 0 : index
    %967 = vector.load %arg9[%c0_307, %c0_308] : memref<32x128xbf16, #tpu.memory_space<vmem>>, vector<32x128xbf16>
    %cst_309 = arith.constant dense<0.000000e+00> : vector<8x128xf32>
    %968 = tpu.matmul %966, %967, %cst_309 {dimension_numbers = #tpu.dot_dimension_numbers<[1], [0], [0], [1], [0, 0, 1, 1], [], []>} : vector<8x32xbf16>, vector<32x128xbf16>, vector<8x128xf32> -> vector<8x128xf32>
    %c0_310 = arith.constant 0 : index
    %c0_311 = arith.constant 0 : index
    %969 = vector.load %arg10[%c0_310, %c0_311] : memref<1x128xf32, #tpu.memory_space<vmem>>, vector<1x128xf32>
    %970 = vector.broadcast %969 : vector<1x128xf32> to vector<8x128xf32>
    %971 = arith.addf %968, %970 : vector<8x128xf32>
    %c0_312 = arith.constant 0 : index
    %c0_313 = arith.constant 0 : index
    %c0_314 = arith.constant 0 : index
    %972 = vector.load %arg11[%c0_312, %c0_313, %c0_314] : memref<1x8x128xf32, #tpu.memory_space<vmem>>, vector<1x8x128xf32>
    %973 = vector.shape_cast %972 : vector<1x8x128xf32> to vector<8x128xf32>
    %974 = vector.shape_cast %971 : vector<8x128xf32> to vector<1x8x128xf32>
    tpu.vector_store %arg11[%c0_312, %c0_313, %c0_314], %974 {strides = array<i32>} : memref<1x8x128xf32, #tpu.memory_space<vmem>>, vector<1x8x128xf32>,
    return
  }
  func.func @transform_0(%arg0: i32) -> (i32, i32, i32) {
    %c0_i32 = arith.constant 0 : i32
    %c0_i32_0 = arith.constant 0 : i32
    %c0_i32_1 = arith.constant 0 : i32
    return %arg0, %c0_i32, %c0_i32_0 : i32, i32, i32
  }
  func.func @transform_1(%arg0: i32) -> (i32, i32, i32) {
    %c0_i32 = arith.constant 0 : i32
    %c0_i32_0 = arith.constant 0 : i32
    %c0_i32_1 = arith.constant 0 : i32
    return %arg0, %c0_i32, %c0_i32_0 : i32, i32, i32
  }
  func.func @transform_2(%arg0: i32) -> (i32, i32, i32) {
    %c0_i32 = arith.constant 0 : i32
    %c0_i32_0 = arith.constant 0 : i32
    %c0_i32_1 = arith.constant 0 : i32
    %c0_i32_2 = arith.constant 0 : i32
    return %c0_i32, %c0_i32_0, %c0_i32_1 : i32, i32, i32
  }
  func.func @transform_3(%arg0: i32) -> (i32, i32, i32) {
    %c0_i32 = arith.constant 0 : i32
    %c0_i32_0 = arith.constant 0 : i32
    %c0_i32_1 = arith.constant 0 : i32
    %c0_i32_2 = arith.constant 0 : i32
    return %c0_i32, %c0_i32_0, %c0_i32_1 : i32, i32, i32
  }
  func.func @transform_4(%arg0: i32) -> (i32, i32, i32) {
    %c0_i32 = arith.constant 0 : i32
    %c0_i32_0 = arith.constant 0 : i32
    %c0_i32_1 = arith.constant 0 : i32
    %c0_i32_2 = arith.constant 0 : i32
    return %c0_i32, %c0_i32_0, %c0_i32_1 : i32, i32, i32
  }
  func.func @transform_5(%arg0: i32) -> (i32, i32, i32) {
    %c0_i32 = arith.constant 0 : i32
    %c0_i32_0 = arith.constant 0 : i32
    %c0_i32_1 = arith.constant 0 : i32
    %c0_i32_2 = arith.constant 0 : i32
    return %c0_i32, %c0_i32_0, %c0_i32_1 : i32, i32, i32
  }
  func.func @transform_6(%arg0: i32) -> (i32, i32, i32) {
    %c0_i32 = arith.constant 0 : i32
    %c0_i32_0 = arith.constant 0 : i32
    %c0_i32_1 = arith.constant 0 : i32
    %c0_i32_2 = arith.constant 0 : i32
    return %c0_i32, %c0_i32_0, %c0_i32_1 : i32, i32, i32
  }
  func.func @transform_7(%arg0: i32) -> (i32, i32, i32) {
    %c0_i32 = arith.constant 0 : i32
    %c0_i32_0 = arith.constant 0 : i32
    %c0_i32_1 = arith.constant 0 : i32
    %c0_i32_2 = arith.constant 0 : i32
    return %c0_i32, %c0_i32_0, %c0_i32_1 : i32, i32, i32
  }
  func.func @transform_8(%arg0: i32) -> (i32, i32) {
    %c0_i32 = arith.constant 0 : i32
    %c0_i32_0 = arith.constant 0 : i32
    %c0_i32_1 = arith.constant 0 : i32
    return %c0_i32, %c0_i32_0 : i32, i32
  }
  func.func @transform_9(%arg0: i32) -> (i32, i32) {
    %c0_i32 = arith.constant 0 : i32
    %c0_i32_0 = arith.constant 0 : i32
    %c0_i32_1 = arith.constant 0 : i32
    return %c0_i32, %c0_i32_0 : i32, i32
  }
  func.func @transform_10(%arg0: i32) -> (i32, i32, i32) {
    %c0_i32 = arith.constant 0 : i32
    %c0_i32_0 = arith.constant 0 : i32
    %c0_i32_1 = arith.constant 0 : i32
    return %arg0, %c0_i32, %c0_i32_0 : i32, i32, i32
  }
}

</mosaic_0001>

<bundles_post_ra>
// kernel: tpu_custom_call.1
= control target key start
LH: loop header
LB: loop body
LE: loop exit
PB: predicated region body
PF: predicated region fallthrough
CT: control target
= control target key end

     0   :  { %s7465_s0 = inlined_call_operand.vmem [shape: f32[2,16,32], index: 0, kind: input, shape index: {}]   ;;  %s7466_s1 = inlined_call_operand.vmem [shape: f32[2,24,8], index: 1, kind: input, shape index: {}]   ;;  %s7467_s2 = inlined_call_operand.vmem [shape: bf16[6,32,128], index: 2, kind: input, shape index: {}]   ;;  %s7468_s3 = inlined_call_operand.hbm [shape: f32[6,2,128], index: 3, kind: input, shape index: {}]   ;;  %s7469_s4 = inlined_call_operand.vmem [shape: bf16[4,32,64], index: 4, kind: input, shape index: {}]   ;;  %s7470_s5 = inlined_call_operand.vmem [shape: bf16[4,64,32], index: 5, kind: input, shape index: {}]   ;;  %s7471_s6 = inlined_call_operand.vmem [shape: f32[4,2,64], index: 6, kind: input, shape index: {}]   ;;  %s7472_s7 = inlined_call_operand.hbm [shape: f32[10,2,32], index: 7, kind: input, shape index: {}]   ;;  %s7473_s8 = inlined_call_operand.hbm [shape: bf16[32,128], index: 8, kind: input, shape index: {}]   ;;  %s7474_s9 = inlined_call_operand.vmem [shape: f32[1,128], index: 9, kind: input, shape index: {}]   ;;  %s7475_s10 = inlined_call_operand.hbm [shape: f32[2,8,128], index: 10, kind: output, shape index: {}]  }
   0x1   :  { %7515 = sst [smem:[#allocation18_spill]] %s7465_s0 }
   0x2   :  { %7516 = sst [smem:[#allocation19_spill]] %s7466_s1 }
   0x3   :  { %7517 = sst [smem:[#allocation20_spill]] %s7468_s3 }
   0x4   :  { %7518 = sst [smem:[#allocation21_spill]] %s7472_s7 }
   0x5   :  { %7519 = sst [smem:[#allocation22_spill]] %s7473_s8 }
   0x6   :  { %7520 = sst [smem:[#allocation23_spill]] %s7474_s9 }
   0x7   :  { %7521 = sst [smem:[#allocation24_spill]] %s7475_s10 }
   0x8   :  { %15 = vsyncpa [#allocation3], 0 }
   0x9   :  { %16 = vsyncpa [#allocation6], 0 }
   0xa   :  { %17 = vsyncpa [#allocation4], 0 }
   0xb   :  { %19 = vsyncpa [#allocation4 + $0x1], 0  ;;  %s6384_s13 = smov 0   ;;  %s6386_s14 = smov 0  }
   0xc   :  { %s6388_s15 = smov 0   ;;  %s6390_s16 = smov 0  }
   0xd LB: > { %7522 = sst [smem:[#allocation12_spill]] %s6290_s13  ;;  %s6405_s17 = sadd.s32 4294967295, %s6302_s16   ;;  %s6302_s16 = sphi %s6390_s16, %s7563_s16   ;;  %s6298_s15 = sphi %s6388_s15, %s7565_s15   ;;  %s6294_s14 = sphi %s6386_s14, %s7567_s14   ;;  %s6290_s13 = sphi %s6384_s13, %s7566_s13  }
   0xe   : > { %7523 = sst [smem:[#allocation13_spill]] %s6298_s15  ;;  %s5039_s18 = sadd.s32 4294967294, %s6302_s16  }
   0xf   : > { %7524 = sst [smem:[#allocation14_spill]] %s6302_s16  ;;  %s6409_s19 = sadd.s32 1, %s6302_s16  }
  0x10   : > { %7525 = sst [smem:[#allocation15_spill]] %s6409_s19  ;;  %s252_s20 = sadd.s32 1, %s6298_s15 }
  0x11   : > { %s249_s21 = ssub.s32 %s6302_s16, %s6409_s19  ;;  %p262_p0 = scmp.ne.s32.totalorder %s6298_s15, %s6294_s14 }
  0x12   : > { %p250_p1 = scmp.eq.s32.totalorder %s249_s21, 0  ;;  %p263_p2 = scmp.eq.s32.totalorder %s6405_s17, 1 }
  0x13   : > { %p268_p3 = scmp.ne.s32.totalorder %s6294_s14, %s6290_s13  ;;  %p269_p4 = scmp.eq.s32.totalorder %s5039_s18, 1 }
  0x14   : > { %s6420_s22 = scalar_select %p250_p1, %s6298_s15, %s252_s20  }
  0x15   : > { %p6422_p5 = por %p263_p2, %p262_p0  ;;  %p6426_p6 = por %p269_p4, %p268_p3 }
  0x16   : > { %7526 = sst [smem:[#allocation16_spill]] %s6420_s22  ;;  %p5040_p7 = scmp.ge.s32.totalorder %s6302_s16, 1 }
  0x17   : > { %s7527_s23 = scalar_select %p6422_p5, 1, 0 }
  0x18   : > { %s7528_s24 = scalar_select %p6426_p6, 1, 0 }
  0x19   : > { %p276_p8 = scmp.lt.s32.totalorder %s6302_s16, 3  ;;  %p7476_p9 = scmp.eq.s32.totalorder %s6405_s17, 0 }
  0x1a   : > { %7529 = sst [smem:[#allocation17_spill]] %s7528_s24  ;;  %s6304_s26 = smov [#allocation5]  }
  0x1b   : > { %p6433_p10 = pnand %p5040_p7, %p276_p8  ;;  %s313_s27 = sshll.u32 %s6304_s26, 4  ;;  %s314_s27 = int_to_ptr.vmem [resolvable:$true] %s313_s27 }
  0x1c   : > { %s6305_s29 = smov [#allocation2]   ;;  %s6306_s11 = smov [#allocation7]  }
  0x1d   : > { %p5923_p11 = pneg %p6433_p10  ;;  %s291_s30 = sshll.u32 %s6305_s29, 4  ;;  %s292_s30 = int_to_ptr.vmem [resolvable:$true] %s291_s30 }
  0x1e   : > { %s326_s12 = sshll.u32 %s6306_s11, 4  ;;  %s6167_s18 = scalar_lea.vmem %s314_s27, 320  ;;  %s327_s12 = int_to_ptr.vmem [resolvable:$true] %s326_s12 }
  0x1f   : > { %p6441_p12 = pnand %p7476_p9, %p5923_p11  ;;  %p6168_p0 = scmp.ne.s32.totalorder %s314_s27, %s6167_s18 }
  0x20   : > { %p6175_p3 = scmp.lt.s32.totalorder %s314_s27, %s314_s27  ;;  %p6176_p4 = scmp.lt.s32.totalorder %s6167_s18, %s6167_s18 }
  0x21   : > { %p6158_p13 = pneg %p6441_p12 }
  0x22   : > { %p6177_p7 = por %p6176_p4, %p6175_p3 }
  0x23   : > { %p6170_p1 = pnand %p6168_p0, %p6158_p13 }
  0x25   : > { %p6171_p2 = pneg %p6170_p1 }
  0x27   : > { %p6178_p8 = pnand %p6177_p7, %p6171_p2 }
  0x29   : > { %6181 = shalt.err (!%p6178_p8)
}
  0x2a   : > { %s6307_s20 = smov 32   ;;  %s6308_s21 = smov 2  }
  0x2b   : > { %s7532_s7 = sld [smem:[#allocation21_spill]]  ;;  %s6193_s11 = scalar_lea.vmem %s292_s30, 192 }
  0x2c   : > { %p6194_p11 = scmp.ne.s32.totalorder %s292_s30, %s6193_s11  ;;  %p6201_p9 = scmp.lt.s32.totalorder %s292_s30, %s292_s30 }
  0x2d   : > { %p6202_p6 = scmp.lt.s32.totalorder %s6193_s11, %s6193_s11 }
  0x2e   : > { %p6196_p0 = pnand %p6194_p11, %p6158_p13 }
  0x2f   : > { %p6203_p3 = por %p6202_p6, %p6201_p9 }
  0x30   : > { %p6197_p1 = pneg %p6196_p0 }
  0x31   : > { %5929 = dma.hbm_to_vmem [thread:$0]  (!%p6441_p12), %s7532_s7, 320, %s314_s27, [#allocation6], %s6307_s20, %s6307_s20, %s6308_s21  }
  0x32   : > { %p6204_p2 = pnand %p6203_p3, %p6197_p1 }
  0x34   : > { %6207 = shalt.err (!%p6204_p2)
}
  0x35   : > { %s7533_s3 = sld [smem:[#allocation20_spill]]  ;;  %s6219_s27 = scalar_lea.vmem %s327_s12, 256 }
  0x36   : > { %p6220_p4 = scmp.ne.s32.totalorder %s327_s12, %s6219_s27  ;;  %p6227_p11 = scmp.lt.s32.totalorder %s327_s12, %s327_s12 }
  0x37   : > { %p6228_p0 = scmp.lt.s32.totalorder %s6219_s27, %s6219_s27 }
  0x38   : > { %p6222_p7 = pnand %p6220_p4, %p6158_p13 }
  0x39   : > { %p6229_p5 = por %p6228_p0, %p6227_p11 }
  0x3a   : > { %p6223_p8 = pneg %p6222_p7 }
  0x3b   : > { %5926 = dma.hbm_to_vmem [thread:$0]  (!%p6441_p12), %s7533_s3, 192, %s292_s30, [#allocation3], %s6307_s20, %s6307_s20, %s6308_s21  }
  0x3c   : > { %p6230_p6 = pnand %p6229_p5, %p6223_p8 }
  0x3e   : > { %6233 = shalt.err (!%p6230_p6)
}
  0x3f   : > { %s6309_s26 = smov 64   ;;  %s6310_s29 = smov 4  }
  0x40   : > { %s7534_s8 = sld [smem:[#allocation22_spill]]  ;;  %p7535_p9 = scmp.eq.s32.totalorder (!%p6433_p10), %s6405_s17, 0 }
  0x42   : > { %361 = sbr.rel (%p6433_p10) target bundleno = 12636 (0x315c), region = 60 }
  0x46   : > { %5932 = dma.hbm_to_vmem [thread:$0]  (!%p6441_p12), %s7534_s8, 256, %s327_s12, [#allocation6], %s6309_s26, %s6309_s26, %s6310_s29  }
  0x47   : > { %6277 = dma.done.wait (%p7535_p9), [#allocation3], 192   ;;  %p7536_p13 = pmov %p7535_p9 }
  0x48   : > { %p7537_p5 = pmov %p7535_p9 }
  0x49   : > { %6279 = vsyncadd (%p7536_p13), [#allocation3], 4294967104 }
  0x4a   : > { %6281 = dma.done.wait (%p7537_p5), [#allocation6], 576   ;;  %p7538_p1 = pmov %p7537_p5 }
  0x4b   : > { %p412_p3 = scmp.lt.s32.totalorder %s6405_s17, 1  ;;  %v6311_v0 = vmov 0.0   ;;  %vm6312_vm0 = vmmov 0   ;;  %s7539_s0 = sld [smem:[#allocation18_spill]]  ;;  %v6500_v1 = vld [vmem:[%s7467_s2 + $0x8] sm:$0xff]   ;;  %v6506_v2 = vld [vmem:[%s7467_s2] sm:$0xff]   ;;  %v434_v5 = vlaneseq }
  0x4c   : > { %6283 = vsyncadd (%p7538_p1), [#allocation6], 4294966720  ;;  %5420 = vmatprep.subr.bf16.mxu0 %v6311_v0  ;;  %5424 = vmatprep.mubr.msk.bf16.mxu0 %vm6312_vm0, %v6311_v0  ;;  %vm450_vm1 = vcmask 261120   ;;  %v6524_v8 = vld [vmem:[#allocation2] sm:$0x3]  ;;  %s7500_s29 = smov 120  }
  0x4d   : > { %s6486_s25 = scalar_select %p412_p3, %s6405_s17, 1  ;;  %5428 = vmatprep.subr.bf16.mxu1 %v6311_v0  ;;  %5430 = vmatprep.mubr.msk.bf16.mxu1 %vm6312_vm0, %v6311_v0  ;;  %v6519_v6 = vshrl.u32 %v434_v5, 7  ;;  %vm498_vm2 = vcmask 64512   ;;  %vm562_vm3 = vcmask 1043456   ;;  %vm949_vm4 = vcmask 130048  }
  0x4e   : > { %5421 = vmatpush3.bf16.msra.mxu0 %v6500_v1  ;;  %s7504_s11 = smov 96   ;;  %s7496_s22 = smov 80   ;;  %vm951_vm5 = vcmask 195584   ;;  %vm1137_vm6 = vcmask 523264  }
  0x4f   : > { %s5246_s28 = sshll.u32 %s6486_s25, 4  ;;  %5422 = vmatprep.subr.bf16.mxu0 %v6311_v0  ;;  %v6522_v7 = vsub.s32 0, %v6519_v6  ;;  %s7478_s30 = smov 72  }
  0x50   : > { %s7502_s12 = smov 112   ;;  %s7498_s21 = smov 104  }
  0x51   : > { %s6495_s20 = scalar_lea.vmem %s7539_s0, %s5246_s28  ;;  %v437_v9 = vrot.slane %v6524_v8, %v6522_v7  ;;  %s7506_s28 = smov 88  }
  0x52   : > { %v6509_v3 = vld [vmem:[%s6495_s20] sm:$0xff]  ;;  %5423 = vmatpush3.bf16.msra.mxu0 %v6506_v2  ;;  %s5908_s18 = smul.u32 24, %s6486_s25  ;;  %s7540_s1 = sld [smem:[#allocation19_spill]] }
  0x53   : > { %v433_v4 = vpack.c.bf16 %v6509_v3, %v6509_v3  ;;  %5434 = vmatprep.subr.bf16.mxu0 %v6311_v0  ;;  %s7486_s25 = smov 56   ;;  %s7482_s27 = smov 40  }
  0x54   : > { %s7480_s26 = smov 48   ;;  %s7551_s0 = smov 8  }
  0x55   : > { %5425 = vmatmul.mubr.msk.bf16.vlgmr.msra.gmra.mxu0 %vm450_vm1, %v433_v4  ;;  %s7553_s3 = smov 24   ;;  %s7554_s8 = smov 88  }
  0x56   : > { %5436 = vmatprep.mubr.msk.bf16.mxu0 %vm6312_vm0, %v6311_v0  ;;  %s7555_s10 = smov 96   ;;  %s409_s13 = sand.u32 1, %s6294_s14  }
  0x57   : > { %s5049_s15 = sshll.u32 %s409_s13, 3  ;;  %s7556_s9 = sld [smem:[#allocation23_spill]] }
  0x58   : > { %s5243_s24 = sshll.u32 %s6405_s17, 7  ;;  %p7558_p12 = scmp.ne.s32.totalorder %s7527_s23, 0 }
  0x59   : > { %s6328_s17 = smov [#allocation8]  }
 0x115   : > { %v488_v10 = vpop.f32.mrf.mxu0 }
 0x116   : > { %v489_v11 = vadd.f32 %v488_v10, %v437_v9 }
 0x117   : > { %v5426_v12 = vpop.f32.mrf.mxu0 }
 0x118   : > { %v6528_v13 = vpack.c.bf16 %v489_v11, %v489_v11 }
 0x119   : > { %v491_v14 = vpop.f32.mrf.mxu0 }
 0x11a   : > { %606 = vrot.lane.b32.xlu1 %v6528_v13, %s7500_s29  ;;  %496 = vrot.lane.b32.xlu0 %v6528_v13, %s7504_s11  ;;  %s7547_s29 = smov 64  }
 0x11b   : > { %v5427_v15 = vpop.f32.mrf.mxu0 }
 0x11e   : > { %718 = vrot.lane.b32.xlu1 %v6528_v13, %s7496_s22  ;;  %608 = vrot.lane.b32.xlu0 %v6528_v13, %s7506_s28  ;;  %s7548_s22 = smov 40  }
 0x122   : > { %828 = vrot.lane.b32.xlu1 %v6528_v13, %s7478_s30  ;;  %716 = vrot.lane.b32.xlu0 %v6528_v13, %s7502_s12  ;;  %s6569_s30 = scalar_lea.vmem %s7540_s1, %s5908_s18  ;;  %s7484_s18 = smov 64  }
 0x123   : > { %v6572_v27 = vld [vmem:[%s6569_s30] sm:$0xff]  ;;  %s7541_s12 = smov 112   ;;  %s7552_s1 = smov 16  }
 0x126   : > { %826 = vrot.lane.b32.xlu0 %v6528_v13, %s7498_s21  ;;  %s7542_s21 = smov 120  }
 0x18c   : > { %v497_v16 = vpop.permute.xlu0 %496  ;;  %v607_v19 = vpop.permute.xlu1 %606 }
 0x18d   : > { %v503_v17 = vsel %vm498_vm2, %v497_v16, 0 }
 0x18e   : > { %5429 = vmatpush3.bf16.xpose.msra.mxu1 %v503_v17 }
 0x18f   : > { %5440 = vmatprep.subr.bf16.mxu1 %v6311_v0 }
 0x190   : > { %v609_v18 = vpop.permute.xlu0 %608  ;;  %v719_v21 = vpop.permute.xlu1 %718 }
 0x191   : > { %v614_v20 = vsel %vm498_vm2, %v609_v18, 0  ;;  %v724_v22 = vsel %vm498_vm2, %v719_v21, 0 }
 0x194   : > { %v829_v23 = vpop.permute.xlu1 %828  ;;  %v717_v24 = vpop.permute.xlu0 %716 }
 0x195   : > { %5431 = vmatmul.mubr.msk.bf16.vlgmr.msra.gmra.mxu1 %vm498_vm2, %v6528_v13  ;;  %v834_v25 = vsel %vm498_vm2, %v829_v23, 0 }
 0x196   : > { %5441 = vmatpush3.bf16.xpose.msra.mxu1 %v614_v20  ;;  %5442 = vmatprep.mubr.msk.bf16.mxu1 %vm6312_vm0, %v6311_v0 }
 0x197   : > { %5452 = vmatprep.subr.bf16.mxu1 %v6311_v0 }
 0x198   : > { %v827_v26 = vpop.permute.xlu0 %826 }
 0x19d   : > { %5443 = vmatmul.mubr.msk.bf16.vlgmr.msra.gmra.mxu1 %vm498_vm2, %v607_v19 }
 0x19e   : > { %5453 = vmatpush3.bf16.xpose.msra.mxu1 %v724_v22  ;;  %5454 = vmatprep.mubr.msk.bf16.mxu1 %vm6312_vm0, %v6311_v0 }
 0x19f   : > { %5464 = vmatprep.subr.bf16.mxu1 %v6311_v0 }
 0x1a5   : > { %5455 = vmatmul.mubr.msk.bf16.vlgmr.msra.gmra.mxu1 %vm498_vm2, %v717_v24 }
 0x1a6   : > { %5465 = vmatpush3.bf16.xpose.msra.mxu1 %v834_v25  ;;  %5466 = vmatprep.mubr.msk.bf16.mxu1 %vm6312_vm0, %v6311_v0 }
 0x1a7   : > { %5476 = vmatprep.subr.bf16.mxu1 %v6311_v0 }
 0x1ad   : > { %5467 = vmatmul.mubr.msk.bf16.vlgmr.msra.gmra.mxu1 %vm498_vm2, %v827_v26 }
 0x1ae   : > { %5480 = vmatprep.mubr.msk.bf16.mxu1 %vm6312_vm0, %v6311_v0 }
 0x255   : > { %v539_v28 = vpop.f32.mrf.mxu1 }
 0x256   : > { %v540_v29 = vadd.f32 %v539_v28, %v6572_v27 }
 0x257   : > { %v5432_v30 = vpop.f32.mrf.mxu1 }
 0x258   : > { %v545_v31 = vsel %vm498_vm2, %v540_v29, -inf }
 0x259   : > { %546 = vmax.xlane.f32.xlu1 %v545_v31  ;;  %v542_v32 = vpop.f32.mrf.mxu1 }
 0x25b   : > { %v5433_v33 = vpop.f32.mrf.mxu1 }
 0x25d   : > { %v650_v34 = vpop.f32.mrf.mxu1 }
 0x25e   : > { %v651_v35 = vadd.f32 %v650_v34, %v6572_v27 }
 0x25f   : > { %v5444_v36 = vpop.f32.mrf.mxu1 }
 0x260   : > { %v656_v37 = vsel %vm498_vm2, %v651_v35, -inf }
 0x261   : > { %657 = vmax.xlane.f32.xlu0 %v656_v37  ;;  %v653_v38 = vpop.f32.mrf.mxu1 }
 0x263   : > { %v5445_v39 = vpop.f32.mrf.mxu1 }
 0x265   : > { %v760_v40 = vpop.f32.mrf.mxu1 }
 0x266   : > { %v761_v41 = vadd.f32 %v760_v40, %v6572_v27 }
 0x267   : > { %v5456_v42 = vpop.f32.mrf.mxu1 }
 0x268   : > { %v766_v43 = vsel %vm498_vm2, %v761_v41, -inf }
 0x269   : > { %767 = vmax.xlane.f32.xlu0 %v766_v43  ;;  %v763_v44 = vpop.f32.mrf.mxu1 }
 0x26b   : > { %v5457_v45 = vpop.f32.mrf.mxu1 }
 0x26d   : > { %v870_v46 = vpop.f32.mrf.mxu1 }
 0x26e   : > { %v871_v47 = vadd.f32 %v870_v46, %v6572_v27 }
 0x26f   : > { %v5468_v48 = vpop.f32.mrf.mxu1 }
 0x270   : > { %v876_v49 = vsel %vm498_vm2, %v871_v47, -inf }
 0x271   : > { %877 = vmax.xlane.f32.xlu1 %v876_v49  ;;  %v873_v50 = vpop.f32.mrf.mxu1 }
 0x273   : > { %v5469_v51 = vpop.f32.mrf.mxu1 }
 0x2e2   : > { %v547_v52 = vpop.xlane.xlu1 %546 }
 0x2e3   : > { %v548_v53 = vsub.f32 %v540_v29, %v547_v52 }
 0x2e5   : > { %v549_v54 = vmul.f32 1.442695, %v548_v53 }
 0x2e7   : > { %6038 = vpow2.f32 %v549_v54 }
 0x2ea   : > { %v658_v55 = vpop.xlane.xlu0 %657 }
 0x2eb   : > { %v659_v56 = vsub.f32 %v651_v35, %v658_v55 }
 0x2ed   : > { %v660_v57 = vmul.f32 1.442695, %v659_v56 }
 0x2ef   : > { %6040 = vpow2.f32 %v660_v57 }
 0x2f2   : > { %v768_v58 = vpop.xlane.xlu0 %767 }
 0x2f3   : > { %v769_v59 = vsub.f32 %v761_v41, %v768_v58 }
 0x2f4   : > { %v6039_v60 = vpop.eup %6038 }
 0x2f5   : > { %v770_v61 = vmul.f32 1.442695, %v769_v59  ;;  %v551_v62 = vsel %vm498_vm2, %v6039_v60, 0.0 }
 0x2f6   : > { %552 = vadd.xlane.f32.xlu0 %v551_v62 }
 0x2f7   : > { %6042 = vpow2.f32 %v770_v61 }
 0x2fa   : > { %v878_v10 = vpop.xlane.xlu1 %877 }
 0x2fb   : > { %v879_v11 = vsub.f32 %v871_v47, %v878_v10 }
 0x2fc   : > { %v6041_v63 = vpop.eup %6040 }
 0x2fd   : > { %v662_v4 = vsel %vm498_vm2, %v6041_v63, 0.0  ;;  %v880_v12 = vmul.f32 1.442695, %v879_v11 }
 0x2fe   : > { %663 = vadd.xlane.f32.xlu1 %v662_v4 }
 0x2ff   : > { %6044 = vpow2.f32 %v880_v12 }
 0x304   : > { %v6043_v5 = vpop.eup %6042 }
 0x305   : > { %v772_v9 = vsel %vm498_vm2, %v6043_v5, 0.0 }
 0x306   : > { %773 = vadd.xlane.f32.xlu0 %v772_v9 }
 0x30c   : > { %v6045_v14 = vpop.eup %6044 }
 0x30d   : > { %v882_v15 = vsel %vm498_vm2, %v6045_v14, 0.0 }
 0x30f   : > { %668 = vrot.lane.b32.xlu1 %v6528_v13, %s7486_s25  ;;  %s7488_s25 = smov 24  }
 0x31c   : > { %557 = vrot.lane.b32.xlu0 %v6528_v13, %s7484_s18  ;;  %s7490_s18 = smov 16  }
 0x320   : > { %888 = vrot.lane.b32.xlu0 %v6528_v13, %s7482_s27  ;;  %s7492_s27 = smov 8  }
 0x333   : > { %883 = vadd.xlane.f32.xlu1 %v882_v15 }
 0x344   : > { %778 = vrot.lane.b32.xlu1 %v6528_v13, %s7480_s26  ;;  %s7494_s26 = smov 32  }
 0x348   : > { %960 = vrot.lane.b32.xlu1 %v6500_v1, %s7494_s26 }
 0x37f   : > { %v553_v16 = vpop.xlane.xlu0 %552 }
 0x380   : > { %6046 = vrcp.f32 %v553_v16 }
 0x387   : > { %v664_v17 = vpop.xlane.xlu1 %663 }
 0x388   : > { %6048 = vrcp.f32 %v664_v17 }
 0x38b   : > { %v669_v23 = vpop.permute.xlu1 %668 }
 0x38c   : > { %v674_v26 = vsel %vm562_vm3, %v669_v23, 0 }
 0x38d   : > { %v6047_v18 = vpop.eup %6046 }
 0x38e   : > { %v555_v20 = vmul.f32 %v6047_v18, %v6039_v60 }
 0x38f   : > { %v774_v19 = vpop.xlane.xlu0 %773 }
 0x390   : > { %v556_v24 = vpack.c.bf16 %v555_v20, %v555_v20  ;;  %6050 = vrcp.f32 %v774_v19  ;;  %v6004_v20 = vld [vmem:[%s7470_s5 + $0x18] sm:$0xff]  }
 0x393   : > { %v558_v21 = vpop.permute.xlu0 %557 }
 0x394   : > { %v564_v22 = vsel %vm562_vm3, %v558_v21, 0  ;;  %v6005_v21 = vld [vmem:[%s7470_s5 + $0x10] sm:$0xff]  }
 0x395   : > { %5435 = vmatpush3.bf16.msra.mxu0 %v564_v22  ;;  %v6049_v25 = vpop.eup %6048 }
 0x396   : > { %5446 = vmatprep.subr.bf16.mxu0 %v6311_v0  ;;  %v666_v13 = vmul.f32 %v6049_v25, %v6041_v63  ;;  %v6630_v63 = vsub.s32 1, %v6519_v6 }
 0x397   : > { %v889_v34 = vpop.permute.xlu0 %888 }
 0x398   : > { %5437 = vmatmul.mubr.msk.bf16.vlgmr.msra.gmra.mxu0 %vm498_vm2, %v556_v24  ;;  %v667_v28 = vpack.c.bf16 %v666_v13, %v666_v13  ;;  %v894_v36 = vsel %vm562_vm3, %v889_v34, 0  ;;  %v957_v4 = vrot.slane %v6524_v8, %v6630_v63  ;;  %v6002_v8 = vld [vmem:[%s7469_s4 + $0x8] sm:$0xff]   ;;  %v1034_v34 = vld [vmem:[%s7471_s6] sm:$0x3] }
 0x399   : > { %5447 = vmatpush3.bf16.msra.mxu0 %v674_v26  ;;  %5448 = vmatprep.mubr.msk.bf16.mxu0 %vm6312_vm0, %v6311_v0  ;;  %v5065_v26 = vld [vmem:[#allocation5] ss:$0 sm:$0xff] }
 0x39a   : > { %5458 = vmatprep.subr.bf16.mxu0 %v6311_v0 }
 0x39d   : > { %v6051_v29 = vpop.eup %6050 }
 0x39e   : > { %v776_v31 = vmul.f32 %v6051_v29, %v6043_v5 }
 0x3a0   : > { %5449 = vmatmul.mubr.msk.bf16.vlgmr.msra.gmra.mxu0 %vm498_vm2, %v667_v28  ;;  %v777_v35 = vpack.c.bf16 %v776_v31, %v776_v31  ;;  %v5066_v28 = vld [vmem:[#allocation5 + $0x1] ss:$0 sm:$0xff] }
 0x3a1   : > { %5460 = vmatprep.mubr.msk.bf16.mxu0 %vm6312_vm0, %v6311_v0 }
 0x3bc   : > { %v884_v30 = vpop.xlane.xlu1 %883 }
 0x3bd   : > { %6052 = vrcp.f32 %v884_v30 }
 0x3c0   : > { %v779_v32 = vpop.permute.xlu1 %778 }
 0x3c1   : > { %v784_v33 = vsel %vm562_vm3, %v779_v32, 0  ;;  %v6006_v32 = vld [vmem:[%s7470_s5 + $0x8] sm:$0xff]  }
 0x3c2   : > { %5459 = vmatpush3.bf16.msra.mxu0 %v784_v33  ;;  %v6007_v33 = vld [vmem:[%s7470_s5] sm:$0xff]  }
 0x3c3   : > { %5470 = vmatprep.subr.bf16.mxu0 %v6311_v0 }
 0x3c4   : > { %v961_v41 = vpop.permute.xlu1 %960 }
 0x3c5   : > { %5461 = vmatmul.mubr.msk.bf16.vlgmr.msra.gmra.mxu0 %vm498_vm2, %v777_v35  ;;  %5477 = vmatpush3.bf16.msra.mxu1 %v961_v41  ;;  %v1043_v35 = vrot.slane %v1034_v34, %v6522_v7 }
 0x3c6   : > { %5471 = vmatpush3.bf16.msra.mxu0 %v894_v36  ;;  %5472 = vmatprep.mubr.msk.bf16.mxu0 %vm6312_vm0, %v6311_v0 }
 0x3c7   : > { %5484 = vmatprep.subr.bf16.mxu0 %v6311_v0  ;;  %5478 = vmatprep.subr.bf16.mxu1 %v6311_v0 }
 0x3ca   : > { %v6053_v37 = vpop.eup %6052 }
 0x3cb   : > { %v886_v38 = vmul.f32 %v6053_v37, %v6045_v14 }
 0x3cd   : > { %v887_v39 = vpack.c.bf16 %v886_v38, %v886_v38 }
 0x3cf   : > { %5473 = vmatmul.mubr.msk.bf16.vlgmr.msra.gmra.mxu0 %vm498_vm2, %v887_v39 }
 0x3d0   : > { %5488 = vmatprep.mubr.msk.bf16.mxu0 %vm6312_vm0, %v6311_v0  ;;  %5485 = vmatpush3.bf16.msra.mxu0 %v6002_v8 }
 0x3d1   : > { %5486 = vmatprep.subr.bf16.mxu0 %v6311_v0 }
 0x458   : > { %v600_v40 = vpop.f32.mrf.mxu0 }
 0x45a   : > { %v5438_v42 = vpop.f32.mrf.mxu0 }
 0x45c   : > { %v603_v43 = vpop.f32.mrf.mxu0 }
 0x45d   : > { %v1112_v43 = vrot.slane %v1034_v34, %v6630_v63 }
 0x45e   : > { %v5439_v44 = vpop.f32.mrf.mxu0 }
 0x460   : > { %v710_v45 = vpop.f32.mrf.mxu0 }
 0x461   : > { %937 = vrot.lane.b32.xlu0 %v710_v45, %s7492_s27  ;;  %s7545_s27 = smov 72  }
 0x462   : > { %v5450_v46 = vpop.f32.mrf.mxu0 }
 0x464   : > { %v713_v47 = vpop.f32.mrf.mxu0 }
 0x466   : > { %v5451_v48 = vpop.f32.mrf.mxu0 }
 0x485   : > { %v820_v49 = vpop.f32.mrf.mxu0 }
 0x486   : > { %941 = vrot.lane.b32.xlu1 %v820_v49, %s7490_s18  ;;  %s7544_s18 = smov 80  }
 0x487   : > { %v5462_v1 = vpop.f32.mrf.mxu0 }
 0x489   : > { %v823_v50 = vpop.f32.mrf.mxu0 }
 0x48a   : > { %958 = vrot.lane.b32.xlu1 %v6506_v2, %s7494_s26  ;;  %s7546_s26 = smov 56  }
 0x48b   : > { %v5463_v51 = vpop.f32.mrf.mxu0 }
 0x48f   : > { %v930_v52 = vpop.f32.mrf.mxu0 }
 0x490   : > { %945 = vrot.lane.b32.xlu0 %v930_v52, %s7488_s25  ;;  %s7543_s25 = smov 104  }
 0x491   : > { %v5474_v53 = vpop.f32.mrf.mxu0 }
 0x493   : > { %v933_v54 = vpop.f32.mrf.mxu0 }
 0x495   : > { %v5475_v55 = vpop.f32.mrf.mxu0 }
 0x496   : > { %v6677_v55 = vld [vmem:[%s7467_s2 + $0x18] sm:$0xff]  }
 0x4d3   : > { %v938_v58 = vpop.permute.xlu0 %937 }
 0x4d4   : > { %v948_v59 = vsel %vm498_vm2, %v600_v40, %v938_v58 }
 0x4f8   : > { %v942_v56 = vpop.permute.xlu1 %941 }
 0x4f9   : > { %v950_v2 = vsel %vm949_vm4, %v948_v59, %v942_v56  ;;  %v6683_v56 = vld [vmem:[%s7467_s2 + $0x10] sm:$0xff]  }
 0x4fc   : > { %v959_v57 = vpop.permute.xlu1 %958 }
 0x4fd   : > { %5479 = vmatpush3.bf16.msra.mxu1 %v959_v57 }
 0x4fe   : > { %5492 = vmatprep.subr.bf16.mxu1 %v6311_v0 }
 0x502   : > { %v946_v60 = vpop.permute.xlu0 %945 }
 0x503   : > { %v952_v61 = vsel %vm951_vm5, %v950_v2, %v946_v60  ;;  %v5075_v60 = vld [vmem:[#allocation5 + $0x2] ss:$0 sm:$0xff] }
 0x504   : > { %v953_v62 = vpack.c.bf16 %v952_v61, %v952_v61 }
 0x506   : > { %5481 = vmatmul.mubr.msk.bf16.vlgmr.msra.gmra.mxu1 %vm450_vm1, %v953_v62  ;;  %v5076_v62 = vld [vmem:[#allocation5 + $0x3] ss:$0 sm:$0xff] }
 0x507   : > { %5500 = vmatprep.mubr.msk.bf16.mxu1 %vm6312_vm0, %v6311_v0  ;;  %5493 = vmatpush3.bf16.msra.mxu1 %v6004_v20 }
 0x508   : > { %5494 = vmatprep.subr.bf16.mxu1 %v6311_v0 }
 0x50b   : > { %5495 = vmatpush3.bf16.msra.mxu1 %v6005_v21 }
 0x50c   : > { %5496 = vmatprep.subr.bf16.mxu1 %v6311_v0 }
 0x50f   : > { %5497 = vmatpush3.bf16.msra.mxu1 %v6006_v32 }
 0x510   : > { %5498 = vmatprep.subr.bf16.mxu1 %v6311_v0 }
 0x513   : > { %5499 = vmatpush3.bf16.msra.mxu1 %v6007_v33 }
 0x514   : > { %5518 = vmatprep.subr.bf16.mxu1 %v6311_v0 }
 0x5c6   : > { %v1001_v5 = vpop.f32.mrf.mxu1 }
 0x5c7   : > { %v1002_v9 = vadd.f32 %v1001_v5, %v957_v4 }
 0x5c8   : > { %v5482_v10 = vpop.f32.mrf.mxu1 }
 0x5c9   : > { %v1007_v11 = vadd.f32 %v1002_v9, %v6509_v3  ;;  %v6003_v3 = vld [vmem:[%s7469_s4] sm:$0xff]  }
 0x5ca   : > { %v1004_v12 = vpop.f32.mrf.mxu1  ;;  %5487 = vmatpush3.bf16.msra.mxu0 %v6003_v3  ;;  %v6695_v10 = vld [vmem:[#allocation2 + $0x2] sm:$0x3] }
 0x5cb   : > { %v1010_v14 = vsel %vm450_vm1, %v1007_v11, 0.0  ;;  %5504 = vmatprep.subr.bf16.mxu0 %v6311_v0 }
 0x5cc   : > { %1011 = vadd.xlane.f32.xlu0 %v1010_v14  ;;  %v5483_v15 = vpop.f32.mrf.mxu1 }
 0x655   : > { %v1012_v16 = vpop.xlane.xlu0 %1011 }
 0x656   : > { %v1014_v17 = vmul.f32 0.03125, %v1012_v16 }
 0x658   : > { %v1015_v18 = vsub.f32 %v1007_v11, %v1014_v17  ;;  %v1219_v11 = vrot.slane %v6695_v10, %v6522_v7 }
 0x65a   : > { %v1016_v19 = vmul.f32 %v1015_v18, %v1015_v18 }
 0x65c   : > { %v1017_v6 = vsel %vm450_vm1, %v1016_v19, 0.0 }
 0x65d   : > { %1018 = vadd.xlane.f32.xlu1 %v1017_v6 }
 0x6e6   : > { %v1019_v22 = vpop.xlane.xlu1 %1018 }
 0x6e7   : > { %v1020_v23 = vmul.f32 0.03125, %v1019_v22 }
 0x6e9   : > { %v1021_v24 = vadd.f32 1e-06, %v1020_v23 }
 0x6eb   : > { %6054 = vrsqrt.f32 %v1021_v24 }
 0x6f8   : > { %v6055_v25 = vpop.eup %6054 }
 0x6f9   : > { %v1023_v13 = vmul.f32 %v6055_v25, %v1015_v18 }
 0x6fb   : > { %v1028_v29 = vmul.f32 %v5065_v26, %v1023_v13 }
 0x6fd   : > { %v1033_v30 = vadd.f32 %v5066_v28, %v1028_v29 }
 0x6ff   : > { %v1035_v31 = vpack.c.bf16 %v1033_v30, %v1033_v30 }
 0x701   : > { %5489 = vmatmul.mubr.msk.bf16.vlgmr.msra.gmra.mxu0 %vm450_vm1, %v1035_v31 }
 0x702   : > { %5508 = vmatprep.mubr.msk.bf16.mxu0 %vm6312_vm0, %v6311_v0  ;;  %5505 = vmatpush3.bf16.msra.mxu0 %v6677_v55 }
 0x703   : > { %5506 = vmatprep.subr.bf16.mxu0 %v6311_v0 }
 0x706   : > { %5507 = vmatpush3.bf16.msra.mxu0 %v6683_v56 }
 0x707   : > { %5512 = vmatprep.subr.bf16.mxu0 %v6311_v0 }
 0x7c1   : > { %v1093_v36 = vpop.f32.mrf.mxu0 }
 0x7c2   : > { %v1094_v37 = vadd.f32 %v1093_v36, %v1043_v35 }
 0x7c3   : > { %v5490_v38 = vpop.f32.mrf.mxu0 }
 0x7c4   : > { %v1099_v39 = vmax.f32 %v1094_v37, 0.0 }
 0x7c5   : > { %v1096_v40 = vpop.f32.mrf.mxu0 }
 0x7c6   : > { %v1100_v41 = vpack.c.bf16 %v1099_v39, %v1099_v39 }
 0x7c7   : > { %v5491_v42 = vpop.f32.mrf.mxu0 }
 0x7c8   : > { %5501 = vmatmul.mubr.msk.bf16.vlgmr.msra.gmra.mxu1 %vm1137_vm6, %v1100_v41 }
 0x7c9   : > { %5520 = vmatprep.mubr.msk.bf16.mxu1 %vm6312_vm0, %v6311_v0 }
 0x888   : > { %v1175_v44 = vpop.f32.mrf.mxu1 }
 0x889   : > { %v1176_v45 = vadd.f32 %v1175_v44, %v1112_v43 }
 0x88a   : > { %v5502_v46 = vpop.f32.mrf.mxu1 }
 0x88b   : > { %v1181_v47 = vadd.f32 %v1176_v45, %v1033_v30 }
 0x88c   : > { %v1178_v48 = vpop.f32.mrf.mxu1 }
 0x88d   : > { %v1185_v49 = vsel %vm450_vm1, %v1181_v47, 0.0 }
 0x88e   : > { %1186 = vadd.xlane.f32.xlu0 %v1185_v49  ;;  %v5503_v1 = vpop.f32.mrf.mxu1 }
 0x917   : > { %v1187_v50 = vpop.xlane.xlu0 %1186 }
 0x918   : > { %v1188_v51 = vmul.f32 0.03125, %v1187_v50 }
 0x91a   : > { %v1189_v52 = vsub.f32 %v1181_v47, %v1188_v51 }
 0x91c   : > { %v1190_v53 = vmul.f32 %v1189_v52, %v1189_v52 }
 0x91e   : > { %v1191_v54 = vsel %vm450_vm1, %v1190_v53, 0.0 }
 0x91f   : > { %1192 = vadd.xlane.f32.xlu0 %v1191_v54 }
 0x9a8   : > { %v1193_v57 = vpop.xlane.xlu0 %1192 }
 0x9a9   : > { %v1194_v58 = vmul.f32 0.03125, %v1193_v57 }
 0x9ab   : > { %v1195_v59 = vadd.f32 1e-06, %v1194_v58 }
 0x9ad   : > { %6056 = vrsqrt.f32 %v1195_v59 }
 0x9ba   : > { %v6057_v2 = vpop.eup %6056 }
 0x9bb   : > { %v1197_v61 = vmul.f32 %v6057_v2, %v1189_v52 }
 0x9bd   : > { %v1202_v4 = vmul.f32 %v5075_v60, %v1197_v61 }
 0x9bf   : > { %v6688_v5 = vadd.f32 %v5076_v62, %v1202_v4 }
 0x9c1   : > { %v1215_v9 = vpack.c.bf16 %v6688_v5, %v6688_v5 }
 0x9c3   : > { %5509 = vmatmul.mubr.msk.bf16.vlgmr.msra.gmra.mxu0 %vm450_vm1, %v1215_v9 }
 0x9c4   : > { %5514 = vmatprep.mubr.msk.bf16.mxu0 %vm6312_vm0, %v6311_v0 }
 0xa83   : > { %v1269_v12 = vpop.f32.mrf.mxu0 }
 0xa84   : > { %v1270_v14 = vadd.f32 %v1269_v12, %v1219_v11 }
 0xa85   : > { %v5510_v15 = vpop.f32.mrf.mxu0 }
 0xa86   : > { %v6699_v16 = vpack.c.bf16 %v1270_v14, %v1270_v14 }
 0xa87   : > { %v1272_v17 = vpop.f32.mrf.mxu0 }
 0xa88   : > { %1387 = vrot.lane.b32.xlu0 %v6699_v16, %s7506_s28  ;;  %1277 = vrot.lane.b32.xlu1 %v6699_v16, %s7504_s11  ;;  %s7549_s11 = smov 48   ;;  %s7550_s28 = smov 32  }
 0xa89   : > { %v5511_v18 = vpop.f32.mrf.mxu0 }
 0xa8c   : > { %1495 = vrot.lane.b32.xlu0 %v6699_v16, %s7541_s12  ;;  %1385 = vrot.lane.b32.xlu1 %v6699_v16, %s7542_s21 }
 0xa90   : > { %1605 = vrot.lane.b32.xlu0 %v6699_v16, %s7543_s25  ;;  %1497 = vrot.lane.b32.xlu1 %v6699_v16, %s7544_s18 }
 0xa94   : > { %1607 = vrot.lane.b32.xlu1 %v6699_v16, %s7545_s27 }
 0xafa   : > { %v1278_v19 = vpop.permute.xlu1 %1277  ;;  %v1388_v8 = vpop.permute.xlu0 %1387 }
 0xafb   : > { %v1283_v6 = vsel %vm498_vm2, %v1278_v19, 0  ;;  %v1393_v20 = vsel %vm498_vm2, %v1388_v8, 0 }
 0xafc   : > { %5513 = vmatpush3.bf16.xpose.msra.mxu0 %v1283_v6 }
 0xafd   : > { %5524 = vmatprep.subr.bf16.mxu0 %v6311_v0 }
 0xafe   : > { %v1386_v3 = vpop.permute.xlu1 %1385  ;;  %v1496_v24 = vpop.permute.xlu0 %1495 }
 0xb02   : > { %v1498_v21 = vpop.permute.xlu1 %1497  ;;  %v1606_v26 = vpop.permute.xlu0 %1605 }
 0xb03   : > { %5515 = vmatmul.mubr.msk.bf16.vlgmr.msra.gmra.mxu0 %vm498_vm2, %v6699_v16  ;;  %v1503_v22 = vsel %vm498_vm2, %v1498_v21, 0 }
 0xb04   : > { %5525 = vmatpush3.bf16.xpose.msra.mxu0 %v1393_v20  ;;  %5526 = vmatprep.mubr.msk.bf16.mxu0 %vm6312_vm0, %v6311_v0 }
 0xb05   : > { %5536 = vmatprep.subr.bf16.mxu0 %v6311_v0 }
 0xb06   : > { %v1608_v23 = vpop.permute.xlu1 %1607 }
 0xb07   : > { %v1613_v25 = vsel %vm498_vm2, %v1608_v23, 0 }
 0xb0b   : > { %5527 = vmatmul.mubr.msk.bf16.vlgmr.msra.gmra.mxu0 %vm498_vm2, %v1386_v3 }
 0xb0c   : > { %5537 = vmatpush3.bf16.xpose.msra.mxu0 %v1503_v22  ;;  %5538 = vmatprep.mubr.msk.bf16.mxu0 %vm6312_vm0, %v6311_v0 }
 0xb0d   : > { %5548 = vmatprep.subr.bf16.mxu0 %v6311_v0 }
 0xb13   : > { %5539 = vmatmul.mubr.msk.bf16.vlgmr.msra.gmra.mxu0 %vm498_vm2, %v1496_v24 }
 0xb14   : > { %5549 = vmatpush3.bf16.xpose.msra.mxu0 %v1613_v25  ;;  %5550 = vmatprep.mubr.msk.bf16.mxu0 %vm6312_vm0, %v6311_v0 }
 0xb15   : > { %5560 = vmatprep.subr.bf16.mxu0 %v6311_v0 }
 0xb1b   : > { %5551 = vmatmul.mubr.msk.bf16.vlgmr.msra.gmra.mxu0 %vm498_vm2, %v1606_v26 }
 0xb1c   : > { %5564 = vmatprep.mubr.msk.bf16.mxu0 %vm6312_vm0, %v6311_v0 }
 0xbc3   : > { %v1319_v13 = vpop.f32.mrf.mxu0 }
 0xbc4   : > { %v1320_v28 = vadd.f32 %v1319_v13, %v6572_v27 }
 0xbc5   : > { %v5516_v29 = vpop.f32.mrf.mxu0 }
 0xbc6   : > { %v1325_v30 = vsel %vm498_vm2, %v1320_v28, -inf }
 0xbc7   : > { %1326 = vmax.xlane.f32.xlu1 %v1325_v30  ;;  %v1322_v31 = vpop.f32.mrf.mxu0 }
 0xbc9   : > { %v5517_v32 = vpop.f32.mrf.mxu0 }
 0xbcb   : > { %v1429_v33 = vpop.f32.mrf.mxu0 }
 0xbcc   : > { %v1430_v34 = vadd.f32 %v1429_v33, %v6572_v27 }
 0xbcd   : > { %v5528_v35 = vpop.f32.mrf.mxu0 }
 0xbce   : > { %v1435_v36 = vsel %vm498_vm2, %v1430_v34, -inf }
 0xbcf   : > { %1436 = vmax.xlane.f32.xlu0 %v1435_v36  ;;  %v1432_v37 = vpop.f32.mrf.mxu0 }
 0xbd1   : > { %v5529_v38 = vpop.f32.mrf.mxu0 }
 0xbd3   : > { %v1539_v39 = vpop.f32.mrf.mxu0 }
 0xbd4   : > { %v1540_v40 = vadd.f32 %v1539_v39, %v6572_v27 }
 0xbd5   : > { %v5540_v41 = vpop.f32.mrf.mxu0 }
 0xbd6   : > { %v1545_v42 = vsel %vm498_vm2, %v1540_v40, -inf }
 0xbd7   : > { %1546 = vmax.xlane.f32.xlu0 %v1545_v42  ;;  %v1542_v43 = vpop.f32.mrf.mxu0 }
 0xbd9   : > { %v5541_v44 = vpop.f32.mrf.mxu0 }
 0xbdb   : > { %v1649_v45 = vpop.f32.mrf.mxu0 }
 0xbdc   : > { %v1650_v46 = vadd.f32 %v1649_v45, %v6572_v27 }
 0xbdd   : > { %v5552_v47 = vpop.f32.mrf.mxu0 }
 0xbde   : > { %v1655_v48 = vsel %vm498_vm2, %v1650_v46, -inf }
 0xbdf   : > { %1656 = vmax.xlane.f32.xlu1 %v1655_v48  ;;  %v1652_v49 = vpop.f32.mrf.mxu0 }
 0xbe1   : > { %v5553_v1 = vpop.f32.mrf.mxu0 }
 0xc50   : > { %v1327_v50 = vpop.xlane.xlu1 %1326 }
 0xc51   : > { %v1328_v51 = vsub.f32 %v1320_v28, %v1327_v50 }
 0xc53   : > { %v1329_v52 = vmul.f32 1.442695, %v1328_v51 }
 0xc55   : > { %6058 = vpow2.f32 %v1329_v52 }
 0xc58   : > { %v1437_v53 = vpop.xlane.xlu0 %1436 }
 0xc59   : > { %v1438_v54 = vsub.f32 %v1430_v34, %v1437_v53 }
 0xc5b   : > { %v1439_v57 = vmul.f32 1.442695, %v1438_v54 }
 0xc5d   : > { %6060 = vpow2.f32 %v1439_v57 }
 0xc60   : > { %v1547_v58 = vpop.xlane.xlu0 %1546 }
 0xc61   : > { %v1548_v59 = vsub.f32 %v1540_v40, %v1547_v58 }
 0xc62   : > { %v6059_v2 = vpop.eup %6058 }
 0xc63   : > { %v1549_v60 = vmul.f32 1.442695, %v1548_v59  ;;  %v1331_v27 = vsel %vm498_vm2, %v6059_v2, 0.0 }
 0xc64   : > { %1332 = vadd.xlane.f32.xlu0 %v1331_v27  ;;  %v1734_v27 = vrot.slane %v6695_v10, %v6630_v63  ;;  %v6010_v10 = vld [vmem:[%s7469_s4 + $0x18] sm:$0xff]  }
 0xc65   : > { %6062 = vpow2.f32 %v1549_v60 }
 0xc68   : > { %v1657_v11 = vpop.xlane.xlu1 %1656 }
 0xc69   : > { %v1658_v12 = vsub.f32 %v1650_v46, %v1657_v11 }
 0xc6a   : > { %v6061_v61 = vpop.eup %6060 }
 0xc6b   : > { %v1441_v62 = vsel %vm498_vm2, %v6061_v61, 0.0  ;;  %v1659_v14 = vmul.f32 1.442695, %v1658_v12 }
 0xc6c   : > { %1442 = vadd.xlane.f32.xlu1 %v1441_v62 }
 0xc6d   : > { %6064 = vpow2.f32 %v1659_v14 }
 0xc72   : > { %v6063_v4 = vpop.eup %6062 }
 0xc73   : > { %v1551_v9 = vsel %vm498_vm2, %v6063_v4, 0.0 }
 0xc74   : > { %1552 = vadd.xlane.f32.xlu0 %v1551_v9 }
 0xc7a   : > { %v6065_v15 = vpop.eup %6064 }
 0xc7b   : > { %v1661_v17 = vsel %vm498_vm2, %v6065_v15, 0.0 }
 0xc7d   : > { %1447 = vrot.lane.b32.xlu1 %v6699_v16, %s7546_s26 }
 0xc8a   : > { %1337 = vrot.lane.b32.xlu0 %v6699_v16, %s7547_s29 }
 0xc8e   : > { %1667 = vrot.lane.b32.xlu0 %v6699_v16, %s7548_s22 }
 0xca1   : > { %1662 = vadd.xlane.f32.xlu1 %v1661_v17 }
 0xcb2   : > { %1557 = vrot.lane.b32.xlu1 %v6699_v16, %s7549_s11 }
 0xcb6   : > { %1737 = vrot.lane.b32.xlu1 %v6677_v55, %s7550_s28 }
 0xced   : > { %v1333_v18 = vpop.xlane.xlu0 %1332 }
 0xcee   : > { %6066 = vrcp.f32 %v1333_v18 }
 0xcf5   : > { %v1443_v19 = vpop.xlane.xlu1 %1442 }
 0xcf6   : > { %6068 = vrcp.f32 %v1443_v19 }
 0xcf9   : > { %v1448_v22 = vpop.permute.xlu1 %1447 }
 0xcfa   : > { %v1453_v16 = vsel %vm562_vm3, %v1448_v22, 0 }
 0xcfb   : > { %v6067_v6 = vpop.eup %6066 }
 0xcfc   : > { %v1335_v3 = vmul.f32 %v6067_v6, %v6059_v2 }
 0xcfd   : > { %v1553_v8 = vpop.xlane.xlu0 %1552 }
 0xcfe   : > { %v1336_v23 = vpack.c.bf16 %v1335_v3, %v1335_v3  ;;  %6070 = vrcp.f32 %v1553_v8  ;;  %v6014_v8 = vld [vmem:[%s7470_s5 + $0x38] sm:$0xff]   ;;  %v6015_v3 = vld [vmem:[%s7470_s5 + $0x30] sm:$0xff]  }
 0xd01   : > { %v1338_v20 = vpop.permute.xlu0 %1337 }
 0xd02   : > { %v1343_v21 = vsel %vm562_vm3, %v1338_v20, 0 }
 0xd03   : > { %5519 = vmatpush3.bf16.msra.mxu1 %v1343_v21  ;;  %v6069_v24 = vpop.eup %6068 }
 0xd04   : > { %5530 = vmatprep.subr.bf16.mxu1 %v6311_v0  ;;  %v1445_v55 = vmul.f32 %v6069_v24, %v6061_v61  ;;  %v5093_v24 = vld [vmem:[#allocation5 + $0x4] ss:$0 sm:$0xff] }
 0xd05   : > { %v1668_v31 = vpop.permute.xlu0 %1667 }
 0xd06   : > { %5521 = vmatmul.mubr.msk.bf16.vlgmr.msra.gmra.mxu1 %vm498_vm2, %v1336_v23  ;;  %v1446_v25 = vpack.c.bf16 %v1445_v55, %v1445_v55  ;;  %v1673_v33 = vsel %vm562_vm3, %v1668_v31, 0  ;;  %v5094_v55 = vld [vmem:[#allocation5 + $0x5] ss:$0 sm:$0xff] }
 0xd07   : > { %5531 = vmatpush3.bf16.msra.mxu1 %v1453_v16  ;;  %5532 = vmatprep.mubr.msk.bf16.mxu1 %vm6312_vm0, %v6311_v0 }
 0xd08   : > { %5542 = vmatprep.subr.bf16.mxu1 %v6311_v0 }
 0xd0b   : > { %v6071_v26 = vpop.eup %6070 }
 0xd0c   : > { %v1555_v28 = vmul.f32 %v6071_v26, %v6063_v4 }
 0xd0e   : > { %5533 = vmatmul.mubr.msk.bf16.vlgmr.msra.gmra.mxu1 %vm498_vm2, %v1446_v25  ;;  %v1556_v32 = vpack.c.bf16 %v1555_v28, %v1555_v28 }
 0xd0f   : > { %5544 = vmatprep.mubr.msk.bf16.mxu1 %vm6312_vm0, %v6311_v0 }
 0xd2a   : > { %v1663_v13 = vpop.xlane.xlu1 %1662 }
 0xd2b   : > { %6072 = vrcp.f32 %v1663_v13  ;;  %v6817_v13 = vld [vmem:[%s7467_s2 + $0x28] sm:$0xff]  }
 0xd2e   : > { %v1558_v29 = vpop.permute.xlu1 %1557 }
 0xd2f   : > { %v1563_v30 = vsel %vm562_vm3, %v1558_v29, 0  ;;  %v6823_v29 = vld [vmem:[%s6495_s20 + $0x8] sm:$0xff] }
 0xd30   : > { %5543 = vmatpush3.bf16.msra.mxu1 %v1563_v30  ;;  %v6829_v30 = vld [vmem:[%s7467_s2 + $0x20] sm:$0xff]   ;;  %v1994_v31 = vpack.c.bf16 %v6823_v29, %v6823_v29 }
 0xd31   : > { %5554 = vmatprep.subr.bf16.mxu1 %v6311_v0 }
 0xd32   : > { %v1738_v37 = vpop.permute.xlu1 %1737 }
 0xd33   : > { %5545 = vmatmul.mubr.msk.bf16.vlgmr.msra.gmra.mxu1 %vm498_vm2, %v1556_v32  ;;  %5561 = vmatpush3.bf16.msra.mxu0 %v1738_v37  ;;  %v6016_v32 = vld [vmem:[%s7470_s5 + $0x28] sm:$0xff]  }
 0xd34   : > { %5555 = vmatpush3.bf16.msra.mxu1 %v1673_v33  ;;  %5556 = vmatprep.mubr.msk.bf16.mxu1 %vm6312_vm0, %v6311_v0  ;;  %v6017_v33 = vld [vmem:[%s7470_s5 + $0x20] sm:$0xff]  }
 0xd35   : > { %5568 = vmatprep.subr.bf16.mxu1 %v6311_v0  ;;  %5562 = vmatprep.subr.bf16.mxu0 %v6311_v0 }
 0xd38   : > { %v6073_v34 = vpop.eup %6072 }
 0xd39   : > { %v1665_v35 = vmul.f32 %v6073_v34, %v6065_v15  ;;  %v6852_v34 = vld [vmem:[%s7471_s6 + $0x2] sm:$0x3] }
 0xd3b   : > { %v1666_v36 = vpack.c.bf16 %v1665_v35, %v1665_v35  ;;  %v1822_v35 = vrot.slane %v6852_v34, %v6522_v7 }
 0xd3d   : > { %5557 = vmatmul.mubr.msk.bf16.vlgmr.msra.gmra.mxu1 %vm498_vm2, %v1666_v36 }
 0xd3e   : > { %5572 = vmatprep.mubr.msk.bf16.mxu1 %vm6312_vm0, %v6311_v0  ;;  %5569 = vmatpush3.bf16.msra.mxu1 %v6010_v10 }
 0xd3f   : > { %5570 = vmatprep.subr.bf16.mxu1 %v6311_v0 }
 0xdc6   : > { %v1379_v38 = vpop.f32.mrf.mxu1 }
 0xdc8   : > { %v5522_v39 = vpop.f32.mrf.mxu1 }
 0xdc9   : > { %v6856_v39 = vld [vmem:[#allocation2 + $0x4] sm:$0x3] }
 0xdca   : > { %v1382_v40 = vpop.f32.mrf.mxu1 }
 0xdcc   : > { %v5523_v41 = vpop.f32.mrf.mxu1 }
 0xdce   : > { %v1489_v42 = vpop.f32.mrf.mxu1 }
 0xdcf   : > { %1716 = vrot.lane.b32.xlu0 %v1489_v42, %s7551_s0 }
 0xdd0   : > { %v5534_v43 = vpop.f32.mrf.mxu1 }
 0xdd1   : > { %v1998_v43 = vrot.slane %v6856_v39, %v6522_v7 }
 0xdd2   : > { %v1492_v44 = vpop.f32.mrf.mxu1 }
 0xdd4   : > { %v5535_v45 = vpop.f32.mrf.mxu1 }
 0xdf3   : > { %v1599_v46 = vpop.f32.mrf.mxu1 }
 0xdf4   : > { %1720 = vrot.lane.b32.xlu1 %v1599_v46, %s7552_s1 }
 0xdf5   : > { %v5546_v47 = vpop.f32.mrf.mxu1 }
 0xdf7   : > { %v1602_v48 = vpop.f32.mrf.mxu1 }
 0xdf8   : > { %1735 = vrot.lane.b32.xlu1 %v6683_v56, %s7550_s28 }
 0xdf9   : > { %v5547_v49 = vpop.f32.mrf.mxu1 }
 0xdfd   : > { %v1709_v1 = vpop.f32.mrf.mxu1 }
 0xdfe   : > { %1724 = vrot.lane.b32.xlu0 %v1709_v1, %s7553_s3 }
 0xdff   : > { %v5558_v50 = vpop.f32.mrf.mxu1 }
 0xe01   : > { %v1712_v51 = vpop.f32.mrf.mxu1 }
 0xe03   : > { %v5559_v52 = vpop.f32.mrf.mxu1 }
 0xe41   : > { %v1717_v57 = vpop.permute.xlu0 %1716 }
 0xe42   : > { %v1727_v58 = vsel %vm498_vm2, %v1379_v38, %v1717_v57 }
 0xe66   : > { %v1721_v53 = vpop.permute.xlu1 %1720 }
 0xe67   : > { %v1728_v59 = vsel %vm949_vm4, %v1727_v58, %v1721_v53 }
 0xe6a   : > { %v1736_v54 = vpop.permute.xlu1 %1735 }
 0xe6b   : > { %5563 = vmatpush3.bf16.msra.mxu0 %v1736_v54 }
 0xe6c   : > { %5576 = vmatprep.subr.bf16.mxu0 %v6311_v0 }
 0xe70   : > { %v1725_v2 = vpop.permute.xlu0 %1724 }
 0xe71   : > { %v1729_v56 = vsel %vm951_vm5, %v1728_v59, %v1725_v2 }
 0xe72   : > { %v1730_v60 = vpack.c.bf16 %v1729_v56, %v1729_v56 }
 0xe74   : > { %5565 = vmatmul.mubr.msk.bf16.vlgmr.msra.gmra.mxu0 %vm450_vm1, %v1730_v60 }
 0xe75   : > { %5584 = vmatprep.mubr.msk.bf16.mxu0 %vm6312_vm0, %v6311_v0  ;;  %5577 = vmatpush3.bf16.msra.mxu0 %v6014_v8 }
 0xe76   : > { %5578 = vmatprep.subr.bf16.mxu0 %v6311_v0 }
 0xe79   : > { %5579 = vmatpush3.bf16.msra.mxu0 %v6015_v3 }
 0xe7a   : > { %5580 = vmatprep.subr.bf16.mxu0 %v6311_v0 }
 0xe7d   : > { %5581 = vmatpush3.bf16.msra.mxu0 %v6016_v32 }
 0xe7e   : > { %5582 = vmatprep.subr.bf16.mxu0 %v6311_v0 }
 0xe81   : > { %5583 = vmatpush3.bf16.msra.mxu0 %v6017_v33 }
 0xe82   : > { %5602 = vmatprep.subr.bf16.mxu0 %v6311_v0 }
 0xf34   : > { %v1778_v61 = vpop.f32.mrf.mxu0 }
 0xf35   : > { %v1779_v62 = vadd.f32 %v1778_v61, %v1734_v27 }
 0xf36   : > { %v5566_v4 = vpop.f32.mrf.mxu0 }
 0xf37   : > { %v1784_v9 = vadd.f32 %v1779_v62, %v6688_v5  ;;  %v6011_v5 = vld [vmem:[%s7469_s4 + $0x10] sm:$0xff]  }
 0xf38   : > { %v1781_v11 = vpop.f32.mrf.mxu0  ;;  %5571 = vmatpush3.bf16.msra.mxu1 %v6011_v5 }
 0xf39   : > { %v1788_v12 = vsel %vm450_vm1, %v1784_v9, 0.0  ;;  %5588 = vmatprep.subr.bf16.mxu1 %v6311_v0 }
 0xf3a   : > { %1789 = vadd.xlane.f32.xlu0 %v1788_v12  ;;  %v5567_v14 = vpop.f32.mrf.mxu0 }
 0xfc3   : > { %v1790_v15 = vpop.xlane.xlu0 %1789 }
 0xfc4   : > { %v1791_v17 = vmul.f32 0.03125, %v1790_v15 }
 0xfc6   : > { %v1792_v18 = vsub.f32 %v1784_v9, %v1791_v17  ;;  %v426_v9 = vld [vmem:[%s6569_s30 + $0x8] sm:$0xff] }
 0xfc8   : > { %v1793_v19 = vmul.f32 %v1792_v18, %v1792_v18 }
 0xfca   : > { %v1794_v6 = vsel %vm450_vm1, %v1793_v19, 0.0 }
 0xfcb   : > { %1795 = vadd.xlane.f32.xlu1 %v1794_v6 }
0x1054   : > { %v1796_v20 = vpop.xlane.xlu1 %1795 }
0x1055   : > { %v1797_v21 = vmul.f32 0.03125, %v1796_v20 }
0x1057   : > { %v1798_v22 = vadd.f32 1e-06, %v1797_v21 }
0x1059   : > { %6074 = vrsqrt.f32 %v1798_v22 }
0x1066   : > { %v6075_v23 = vpop.eup %6074 }
0x1067   : > { %v1800_v16 = vmul.f32 %v6075_v23, %v1792_v18 }
0x1069   : > { %v1805_v25 = vmul.f32 %v5093_v24, %v1800_v16 }
0x106b   : > { %v6812_v26 = vadd.f32 %v5094_v55, %v1805_v25 }
0x106d   : > { %v1813_v28 = vpack.c.bf16 %v6812_v26, %v6812_v26 }
0x106f   : > { %5573 = vmatmul.mubr.msk.bf16.vlgmr.msra.gmra.mxu1 %vm450_vm1, %v1813_v28 }
0x1070   : > { %5589 = vmatpush3.bf16.msra.mxu1 %v6817_v13  ;;  %5592 = vmatprep.mubr.msk.bf16.mxu1 %vm6312_vm0, %v6311_v0 }
0x1071   : > { %5590 = vmatprep.subr.bf16.mxu1 %v6311_v0 }
0x1074   : > { %5591 = vmatpush3.bf16.msra.mxu1 %v6829_v30 }
0x1075   : > { %5596 = vmatprep.subr.bf16.mxu1 %v6311_v0 }
0x1077   : > { %5593 = vmatmul.mubr.msk.bf16.vlgmr.msra.gmra.mxu1 %vm450_vm1, %v1994_v31 }
0x1078   : > { %5598 = vmatprep.mubr.msk.bf16.mxu1 %vm6312_vm0, %v6311_v0 }
0x112f   : > { %v1872_v36 = vpop.f32.mrf.mxu1 }
0x1130   : > { %v1873_v37 = vadd.f32 %v1872_v36, %v1822_v35 }
0x1131   : > { %v5574_v38 = vpop.f32.mrf.mxu1 }
0x1132   : > { %v1878_v40 = vmax.f32 %v1873_v37, 0.0 }
0x1133   : > { %v1875_v41 = vpop.f32.mrf.mxu1 }
0x1134   : > { %v1879_v42 = vpack.c.bf16 %v1878_v40, %v1878_v40 }
0x1135   : > { %v5575_v44 = vpop.f32.mrf.mxu1 }
0x1136   : > { %5585 = vmatmul.mubr.msk.bf16.vlgmr.msra.gmra.mxu0 %vm1137_vm6, %v1879_v42 }
0x1137   : > { %v2048_v45 = vpop.f32.mrf.mxu1  ;;  %5604 = vmatprep.mubr.msk.bf16.mxu0 %vm6312_vm0, %v6311_v0 }
0x1138   : > { %v2049_v46 = vadd.f32 %v2048_v45, %v1998_v43 }
0x1139   : > { %v5594_v47 = vpop.f32.mrf.mxu1 }
0x113a   : > { %v6863_v48 = vpack.c.bf16 %v2049_v46, %v2049_v46 }
0x113b   : > { %v2051_v49 = vpop.f32.mrf.mxu1 }
0x113c   : > { %2166 = vrot.lane.b32.xlu1 %v6863_v48, %s7554_s8  ;;  %2056 = vrot.lane.b32.xlu0 %v6863_v48, %s7555_s10 }
0x113d   : > { %v5595_v1 = vpop.f32.mrf.mxu1 }
0x1140   : > { %2276 = vrot.lane.b32.xlu1 %v6863_v48, %s7544_s18  ;;  %2164 = vrot.lane.b32.xlu0 %v6863_v48, %s7542_s21 }
0x1144   : > { %2386 = vrot.lane.b32.xlu1 %v6863_v48, %s7545_s27  ;;  %2274 = vrot.lane.b32.xlu0 %v6863_v48, %s7541_s12 }
0x1148   : > { %2384 = vrot.lane.b32.xlu0 %v6863_v48, %s7543_s25 }
0x11ae   : > { %v2057_v50 = vpop.permute.xlu0 %2056  ;;  %v2167_v52 = vpop.permute.xlu1 %2166 }
0x11af   : > { %v2062_v51 = vsel %vm498_vm2, %v2057_v50, 0  ;;  %v2172_v53 = vsel %vm498_vm2, %v2167_v52, 0 }
0x11b0   : > { %5597 = vmatpush3.bf16.xpose.msra.mxu1 %v2062_v51 }
0x11b1   : > { %5608 = vmatprep.subr.bf16.mxu1 %v6311_v0 }
0x11b2   : > { %v2277_v54 = vpop.permute.xlu1 %2276  ;;  %v2165_v57 = vpop.permute.xlu0 %2164 }
0x11b3   : > { %v2282_v58 = vsel %vm498_vm2, %v2277_v54, 0 }
0x11b6   : > { %v2387_v59 = vpop.permute.xlu1 %2386  ;;  %v2275_v2 = vpop.permute.xlu0 %2274 }
0x11b7   : > { %5599 = vmatmul.mubr.msk.bf16.vlgmr.msra.gmra.mxu1 %vm498_vm2, %v6863_v48  ;;  %v2392_v56 = vsel %vm498_vm2, %v2387_v59, 0 }
0x11b8   : > { %5609 = vmatpush3.bf16.xpose.msra.mxu1 %v2172_v53  ;;  %5610 = vmatprep.mubr.msk.bf16.mxu1 %vm6312_vm0, %v6311_v0 }
0x11b9   : > { %5620 = vmatprep.subr.bf16.mxu1 %v6311_v0 }
0x11ba   : > { %v2385_v60 = vpop.permute.xlu0 %2384 }
0x11bf   : > { %5611 = vmatmul.mubr.msk.bf16.vlgmr.msra.gmra.mxu1 %vm498_vm2, %v2165_v57 }
0x11c0   : > { %5621 = vmatpush3.bf16.xpose.msra.mxu1 %v2282_v58  ;;  %5622 = vmatprep.mubr.msk.bf16.mxu1 %vm6312_vm0, %v6311_v0 }
0x11c1   : > { %5632 = vmatprep.subr.bf16.mxu1 %v6311_v0 }
0x11c7   : > { %5623 = vmatmul.mubr.msk.bf16.vlgmr.msra.gmra.mxu1 %vm498_vm2, %v2275_v2 }
0x11c8   : > { %5633 = vmatpush3.bf16.xpose.msra.mxu1 %v2392_v56  ;;  %5634 = vmatprep.mubr.msk.bf16.mxu1 %vm6312_vm0, %v6311_v0 }
0x11c9   : > { %5644 = vmatprep.subr.bf16.mxu1 %v6311_v0 }
0x11cf   : > { %5635 = vmatmul.mubr.msk.bf16.vlgmr.msra.gmra.mxu1 %vm498_vm2, %v2385_v60 }
0x11d0   : > { %5648 = vmatprep.mubr.msk.bf16.mxu1 %vm6312_vm0, %v6311_v0 }
0x11f6   : > { %v6900_v27 = vpop.f32.mrf.mxu0 }
0x11f8   : > { %v5586_v61 = vpop.f32.mrf.mxu0 }
0x11fa   : > { %v1957_v62 = vpop.f32.mrf.mxu0 }
0x11fc   : > { %v5587_v4 = vpop.f32.mrf.mxu0 }
0x1277   : > { %v2098_v11 = vpop.f32.mrf.mxu1 }
0x1278   : > { %v2099_v12 = vadd.f32 %v2098_v11, %v426_v9 }
0x1279   : > { %v5600_v14 = vpop.f32.mrf.mxu1 }
0x127a   : > { %v2104_v15 = vsel %vm498_vm2, %v2099_v12, -inf }
0x127b   : > { %2105 = vmax.xlane.f32.xlu1 %v2104_v15  ;;  %v2101_v17 = vpop.f32.mrf.mxu1 }
0x127d   : > { %v5601_v18 = vpop.f32.mrf.mxu1 }
0x127f   : > { %v2208_v19 = vpop.f32.mrf.mxu1 }
0x1280   : > { %v2209_v6 = vadd.f32 %v2208_v19, %v426_v9 }
0x1281   : > { %v5612_v10 = vpop.f32.mrf.mxu1 }
0x1282   : > { %v2214_v5 = vsel %vm498_vm2, %v2209_v6, -inf }
0x1283   : > { %2215 = vmax.xlane.f32.xlu0 %v2214_v5  ;;  %v2211_v8 = vpop.f32.mrf.mxu1 }
0x1285   : > { %v5613_v3 = vpop.f32.mrf.mxu1 }
0x1287   : > { %v2318_v20 = vpop.f32.mrf.mxu1 }
0x1288   : > { %v2319_v21 = vadd.f32 %v2318_v20, %v426_v9 }
0x1289   : > { %v5624_v22 = vpop.f32.mrf.mxu1 }
0x128a   : > { %v2324_v23 = vsel %vm498_vm2, %v2319_v21, -inf }
0x128b   : > { %2325 = vmax.xlane.f32.xlu0 %v2324_v23  ;;  %v2321_v24 = vpop.f32.mrf.mxu1 }
0x128d   : > { %v5625_v16 = vpop.f32.mrf.mxu1 }
0x128f   : > { %v2428_v55 = vpop.f32.mrf.mxu1 }
0x1290   : > { %v2429_v25 = vadd.f32 %v2428_v55, %v426_v9 }
0x1291   : > { %v5636_v28 = vpop.f32.mrf.mxu1 }
0x1292   : > { %v2434_v31 = vsel %vm498_vm2, %v2429_v25, -inf }
0x1293   : > { %2435 = vmax.xlane.f32.xlu1 %v2434_v31  ;;  %v2431_v32 = vpop.f32.mrf.mxu1 }
0x1295   : > { %v5637_v33 = vpop.f32.mrf.mxu1 }
0x1304   : > { %v2106_v35 = vpop.xlane.xlu1 %2105 }
0x1305   : > { %v2107_v36 = vsub.f32 %v2099_v12, %v2106_v35 }
0x1307   : > { %v2108_v37 = vmul.f32 1.442695, %v2107_v36 }
0x1309   : > { %6076 = vpow2.f32 %v2108_v37 }
0x130c   : > { %v2216_v38 = vpop.xlane.xlu0 %2215 }
0x130d   : > { %v2217_v40 = vsub.f32 %v2209_v6, %v2216_v38 }
0x130f   : > { %v2218_v41 = vmul.f32 1.442695, %v2217_v40 }
0x1311   : > { %6078 = vpow2.f32 %v2218_v41 }
0x1314   : > { %v2326_v42 = vpop.xlane.xlu0 %2325 }
0x1315   : > { %v2327_v43 = vsub.f32 %v2319_v21, %v2326_v42  ;;  %v1892_v42 = vrot.slane %v6852_v34, %v6630_v63 }
0x1316   : > { %v6077_v44 = vpop.eup %6076 }
0x1317   : > { %v2328_v45 = vmul.f32 1.442695, %v2327_v43  ;;  %v2110_v46 = vsel %vm498_vm2, %v6077_v44, 0.0  ;;  %v1955_v43 = vadd.f32 %v6900_v27, %v1892_v42 }
0x1318   : > { %2111 = vadd.xlane.f32.xlu0 %v2110_v46 }
0x1319   : > { %6080 = vpow2.f32 %v2328_v45 }
0x131c   : > { %v2436_v51 = vpop.xlane.xlu1 %2435 }
0x131d   : > { %v2437_v52 = vsub.f32 %v2429_v25, %v2436_v51 }
0x131e   : > { %v6079_v47 = vpop.eup %6078 }
0x131f   : > { %v2220_v49 = vsel %vm498_vm2, %v6079_v47, 0.0  ;;  %v2438_v53 = vmul.f32 1.442695, %v2437_v52 }
0x1320   : > { %2221 = vadd.xlane.f32.xlu1 %v2220_v49 }
0x1321   : > { %6082 = vpow2.f32 %v2438_v53 }
0x1326   : > { %v6081_v1 = vpop.eup %6080 }
0x1327   : > { %v2330_v50 = vsel %vm498_vm2, %v6081_v1, 0.0 }
0x1328   : > { %2331 = vadd.xlane.f32.xlu0 %v2330_v50 }
0x132e   : > { %v6083_v54 = vpop.eup %6082 }
0x132f   : > { %v2440_v57 = vsel %vm498_vm2, %v6083_v54, 0.0 }
0x1331   : > { %2226 = vrot.lane.b32.xlu1 %v6863_v48, %s7546_s26 }
0x133e   : > { %2116 = vrot.lane.b32.xlu0 %v6863_v48, %s7547_s29 }
0x1342   : > { %2446 = vrot.lane.b32.xlu0 %v6863_v48, %s7548_s22 }
0x1355   : > { %2441 = vadd.xlane.f32.xlu1 %v2440_v57  ;;  %v2513_v57 = vrot.slane %v6856_v39, %v6630_v63 }
0x1366   : > { %2336 = vrot.lane.b32.xlu1 %v6863_v48, %s7549_s11 }
0x136a   : > { %2516 = vrot.lane.b32.xlu1 %v6817_v13, %s7550_s28 }
0x13a1   : > { %v2112_v58 = vpop.xlane.xlu0 %2111 }
0x13a2   : > { %6084 = vrcp.f32 %v2112_v58 }
0x13a9   : > { %v2222_v59 = vpop.xlane.xlu1 %2221 }
0x13aa   : > { %6086 = vrcp.f32 %v2222_v59 }
0x13ad   : > { %v2227_v4 = vpop.permute.xlu1 %2226 }
0x13ae   : > { %v2232_v48 = vsel %vm562_vm3, %v2227_v4, 0  ;;  %v6967_v4 = vld [vmem:[%s7467_s2 + $0x38] sm:$0xff]  }
0x13af   : > { %v6085_v2 = vpop.eup %6084 }
0x13b0   : > { %v2114_v60 = vmul.f32 %v6085_v2, %v6077_v44  ;;  %v1960_v44 = vadd.f32 %v1955_v43, %v6812_v26 }
0x13b1   : > { %v2332_v56 = vpop.xlane.xlu0 %2331 }
0x13b2   : > { %v2115_v9 = vpack.c.bf16 %v2114_v60, %v2114_v60  ;;  %6088 = vrcp.f32 %v2332_v56  ;;  %v1964_v45 = vsel %vm450_vm1, %v1960_v44, 0.0 }
0x13b5   : > { %v2117_v61 = vpop.permute.xlu0 %2116 }
0x13b6   : > { %v2122_v62 = vsel %vm562_vm3, %v2117_v61, 0 }
0x13b7   : > { %5603 = vmatpush3.bf16.msra.mxu0 %v2122_v62  ;;  %v6087_v11 = vpop.eup %6086 }
0x13b8   : > { %5614 = vmatprep.subr.bf16.mxu0 %v6311_v0  ;;  %v2224_v13 = vmul.f32 %v6087_v11, %v6079_v47 }
0x13b9   : > { %v2447_v6 = vpop.permute.xlu0 %2446 }
0x13ba   : > { %5605 = vmatmul.mubr.msk.bf16.vlgmr.msra.gmra.mxu0 %vm498_vm2, %v2115_v9  ;;  %v2225_v12 = vpack.c.bf16 %v2224_v13, %v2224_v13  ;;  %v2452_v5 = vsel %vm562_vm3, %v2447_v6, 0 }
0x13bb   : > { %5615 = vmatpush3.bf16.msra.mxu0 %v2232_v48  ;;  %5616 = vmatprep.mubr.msk.bf16.mxu0 %vm6312_vm0, %v6311_v0 }
0x13bc   : > { %5626 = vmatprep.subr.bf16.mxu0 %v6311_v0 }
0x13bf   : > { %v6089_v14 = vpop.eup %6088 }
0x13c0   : > { %v2334_v17 = vmul.f32 %v6089_v14, %v6081_v1  ;;  %v6984_v14 = vld [vmem:[#allocation2 + $0x6] sm:$0x3] }
0x13c2   : > { %5617 = vmatmul.mubr.msk.bf16.vlgmr.msra.gmra.mxu0 %vm498_vm2, %v2225_v12  ;;  %v2335_v10 = vpack.c.bf16 %v2334_v17, %v2334_v17 }
0x13c3   : > { %5628 = vmatprep.mubr.msk.bf16.mxu0 %vm6312_vm0, %v6311_v0 }
0x13de   : > { %v2442_v15 = vpop.xlane.xlu1 %2441 }
0x13df   : > { %6090 = vrcp.f32 %v2442_v15  ;;  %v2601_v15 = vrot.slane %v6984_v14, %v6522_v7 }
0x13e2   : > { %v2337_v18 = vpop.permute.xlu1 %2336 }
0x13e3   : > { %v2342_v19 = vsel %vm562_vm3, %v2337_v18, 0 }
0x13e4   : > { %5627 = vmatpush3.bf16.msra.mxu0 %v2342_v19 }
0x13e5   : > { %5638 = vmatprep.subr.bf16.mxu0 %v6311_v0 }
0x13e6   : > { %v2517_v21 = vpop.permute.xlu1 %2516 }
0x13e7   : > { %5629 = vmatmul.mubr.msk.bf16.vlgmr.msra.gmra.mxu0 %vm498_vm2, %v2335_v10  ;;  %5645 = vmatpush3.bf16.msra.mxu1 %v2517_v21 }
0x13e8   : > { %5639 = vmatpush3.bf16.msra.mxu0 %v2452_v5  ;;  %5640 = vmatprep.mubr.msk.bf16.mxu0 %vm6312_vm0, %v6311_v0  ;;  %v5116_v5 = vld [vmem:[#allocation5 + $0x6] ss:$0 sm:$0xff] }
0x13e9   : > { %5652 = vmatprep.subr.bf16.mxu0 %v6311_v0  ;;  %5646 = vmatprep.subr.bf16.mxu1 %v6311_v0 }
0x13ec   : > { %v6091_v8 = vpop.eup %6090 }
0x13ed   : > { %v2444_v3 = vmul.f32 %v6091_v8, %v6083_v54 }
0x13ef   : > { %v2445_v20 = vpack.c.bf16 %v2444_v3, %v2444_v3  ;;  %v5117_v3 = vld [vmem:[#allocation5 + $0x7] ss:$0 sm:$0xff] }
0x13f1   : > { %5641 = vmatmul.mubr.msk.bf16.vlgmr.msra.gmra.mxu0 %vm498_vm2, %v2445_v20 }
0x13f2   : > { %5656 = vmatprep.mubr.msk.bf16.mxu0 %vm6312_vm0, %v6311_v0  ;;  %5653 = vmatpush3.bf16.msra.mxu0 %v6967_v4 }
0x13f3   : > { %5654 = vmatprep.subr.bf16.mxu0 %v6311_v0 }
0x147a   : > { %v2158_v22 = vpop.f32.mrf.mxu0 }
0x147c   : > { %v5606_v23 = vpop.f32.mrf.mxu0 }
0x147e   : > { %v2161_v24 = vpop.f32.mrf.mxu0 }
0x1480   : > { %v5607_v16 = vpop.f32.mrf.mxu0 }
0x1482   : > { %v2268_v55 = vpop.f32.mrf.mxu0 }
0x1483   : > { %2495 = vrot.lane.b32.xlu0 %v2268_v55, %s7551_s0 }
0x1484   : > { %v5618_v25 = vpop.f32.mrf.mxu0 }
0x1485   : > { %v5134_v25 = vld [vmem:[#allocation5 + $0x8] ss:$0 sm:$0xff] }
0x1486   : > { %v2271_v28 = vpop.f32.mrf.mxu0 }
0x1488   : > { %v5619_v31 = vpop.f32.mrf.mxu0 }
0x1489   : > { %v5135_v31 = vld [vmem:[#allocation5 + $0x9] ss:$0 sm:$0xff] }
0x14a7   : > { %v2378_v32 = vpop.f32.mrf.mxu0 }
0x14a8   : > { %2499 = vrot.lane.b32.xlu1 %v2378_v32, %s7552_s1 }
0x14a9   : > { %v5630_v33 = vpop.f32.mrf.mxu0 }
0x14ab   : > { %v2381_v35 = vpop.f32.mrf.mxu0 }
0x14ac   : > { %2514 = vrot.lane.b32.xlu1 %v6829_v30, %s7550_s28 }
0x14ad   : > { %v5631_v36 = vpop.f32.mrf.mxu0 }
0x14b1   : > { %v2488_v37 = vpop.f32.mrf.mxu0 }
0x14b2   : > { %2503 = vrot.lane.b32.xlu0 %v2488_v37, %s7553_s3 }
0x14b3   : > { %v5642_v38 = vpop.f32.mrf.mxu0 }
0x14b5   : > { %v2491_v40 = vpop.f32.mrf.mxu0 }
0x14b7   : > { %v5643_v41 = vpop.f32.mrf.mxu0 }
0x14d1   : > { %1965 = vadd.xlane.f32.xlu0 %v1964_v45 }
0x14f5   : > { %v2496_v30 = vpop.permute.xlu0 %2495 }
0x14f6   : > { %v2506_v49 = vsel %vm498_vm2, %v2158_v22, %v2496_v30 }
0x151a   : > { %v2500_v46 = vpop.permute.xlu1 %2499 }
0x151b   : > { %v2507_v1 = vsel %vm949_vm4, %v2506_v49, %v2500_v46 }
0x151e   : > { %v2515_v47 = vpop.permute.xlu1 %2514 }
0x151f   : > { %5647 = vmatpush3.bf16.msra.mxu1 %v2515_v47 }
0x1520   : > { %5660 = vmatprep.subr.bf16.mxu1 %v6311_v0 }
0x1524   : > { %v2504_v50 = vpop.permute.xlu0 %2503 }
0x1525   : > { %v2508_v34 = vsel %vm951_vm5, %v2507_v1, %v2504_v50 }
0x1526   : > { %v2509_v51 = vpack.c.bf16 %v2508_v34, %v2508_v34 }
0x1528   : > { %5649 = vmatmul.mubr.msk.bf16.vlgmr.msra.gmra.mxu1 %vm450_vm1, %v2509_v51 }
0x1529   : > { %5664 = vmatprep.mubr.msk.bf16.mxu1 %vm6312_vm0, %v6311_v0 }
0x155a   : > { %v1966_v26 = vpop.xlane.xlu0 %1965 }
0x155b   : > { %v1967_v27 = vmul.f32 0.03125, %v1966_v26 }
0x155d   : > { %v1968_v52 = vsub.f32 %v1960_v44, %v1967_v27 }
0x155f   : > { %v1969_v53 = vmul.f32 %v1968_v52, %v1968_v52 }
0x1561   : > { %v1970_v54 = vsel %vm450_vm1, %v1969_v53, 0.0 }
0x1562   : > { %1971 = vadd.xlane.f32.xlu0 %v1970_v54 }
0x15e8   : > { %v2557_v58 = vpop.f32.mrf.mxu1 }
0x15e9   : > { %v2558_v59 = vadd.f32 %v2557_v58, %v2513_v57  ;;  %v7036_v58 = vld [vmem:[%s6569_s30 + $0x10] sm:$0xff] }
0x15ea   : > { %v5650_v2 = vpop.f32.mrf.mxu1 }
0x15eb   : > { %v2563_v56 = vadd.f32 %v2558_v59, %v6823_v29  ;;  %v6976_v29 = vld [vmem:[%s7467_s2 + $0x30] sm:$0xff]   ;;  %v1972_v17 = vpop.xlane.xlu0 %1971 }
0x15ec   : > { %v2560_v60 = vpop.f32.mrf.mxu1  ;;  %5655 = vmatpush3.bf16.msra.mxu0 %v6976_v29  ;;  %v1973_v18 = vmul.f32 0.03125, %v1972_v17 }
0x15ed   : > { %v2567_v61 = vsel %vm450_vm1, %v2563_v56, 0.0  ;;  %5668 = vmatprep.subr.bf16.mxu0 %v6311_v0 }
0x15ee   : > { %2568 = vadd.xlane.f32.xlu1 %v2567_v61  ;;  %v5651_v62 = vpop.f32.mrf.mxu1  ;;  %v1974_v19 = vadd.f32 1e-06, %v1973_v18 }
0x15f0   : > { %6092 = vrsqrt.f32 %v1974_v19 }
0x15fd   : > { %v6093_v6 = vpop.eup %6092 }
0x15fe   : > { %v1976_v10 = vmul.f32 %v6093_v6, %v1968_v52 }
0x15ff   : > { %2660 = vrot.lane.b32.xlu1 %v6967_v4, %s7555_s10 }
0x1600   : > { %v1981_v8 = vmul.f32 %v5116_v5, %v1976_v10 }
0x1602   : > { %v1986_v22 = vadd.f32 %v5117_v3, %v1981_v8 }
0x1603   : > { %2665 = vrot.lane.b32.xlu1 %v2601_v15, %s7555_s10 }
0x1604   : > { %v6989_v16 = vpack.c.bf16 %v1986_v22, %v1986_v22 }
0x1677   : > { %v2569_v39 = vpop.xlane.xlu1 %2568 }
0x1678   : > { %v2570_v9 = vmul.f32 0.03125, %v2569_v39 }
0x167a   : > { %v2571_v11 = vsub.f32 %v2563_v56, %v2570_v9 }
0x167b   : > { %v2661_v48 = vpop.permute.xlu1 %2660 }
0x167c   : > { %v2572_v13 = vmul.f32 %v2571_v11, %v2571_v11  ;;  %5661 = vmatpush3.bf16.msra.mxu1 %v2661_v48 }
0x167d   : > { %5662 = vmatprep.subr.bf16.mxu1 %v6311_v0 }
0x167e   : > { %v2573_v12 = vsel %vm450_vm1, %v2572_v13, 0.0 }
0x167f   : > { %2574 = vadd.xlane.f32.xlu0 %v2573_v12  ;;  %v2666_v36 = vpop.permute.xlu1 %2665 }
0x1695   : > { %2658 = vrot.lane.b32.xlu0 %v6976_v29, %s7555_s10 }
0x1708   : > { %v2575_v20 = vpop.xlane.xlu0 %2574 }
0x1709   : > { %v2576_v21 = vmul.f32 0.03125, %v2575_v20 }
0x170b   : > { %v2577_v23 = vadd.f32 1e-06, %v2576_v21 }
0x170c   : > { %v2659_v24 = vpop.permute.xlu0 %2658 }
0x170d   : > { %6094 = vrsqrt.f32 %v2577_v23  ;;  %5663 = vmatpush3.bf16.msra.mxu1 %v2659_v24 }
0x170e   : > { %5674 = vmatprep.subr.bf16.mxu1 %v6311_v0 }
0x1710   : > { %5665 = vmatmul.mubr.msk.bf16.vlgmr.msra.gmra.mxu1 %vm450_vm1, %v6989_v16 }
0x1711   : > { %5676 = vmatprep.mubr.msk.bf16.mxu1 %vm6312_vm0, %v6311_v0 }
0x171a   : > { %v6095_v55 = vpop.eup %6094 }
0x171b   : > { %v2579_v28 = vmul.f32 %v6095_v55, %v2571_v11 }
0x171d   : > { %v2584_v32 = vmul.f32 %v5134_v25, %v2579_v28 }
0x171f   : > { %v6996_v33 = vadd.f32 %v5135_v31, %v2584_v32 }
0x1721   : > { %v2597_v35 = vpack.c.bf16 %v6996_v33, %v6996_v33 }
0x1723   : > { %5657 = vmatmul.mubr.msk.bf16.vlgmr.msra.gmra.mxu0 %vm450_vm1, %v2597_v35 }
0x1724   : > { %5670 = vmatprep.mubr.msk.bf16.mxu0 %vm6312_vm0, %v6311_v0 }
0x17d0   : > { %v2705_v37 = vpop.f32.mrf.mxu1 }
0x17d1   : > { %v2706_v38 = vadd.f32 %v2705_v37, %v2666_v36 }
0x17d2   : > { %v5666_v40 = vpop.f32.mrf.mxu1 }
0x17d3   : > { %v7003_v41 = vpack.c.bf16 %v2706_v38, %v2706_v38 }
0x17d4   : > { %v2708_v42 = vpop.f32.mrf.mxu1 }
0x17d5   : > { %2823 = vrot.lane.b32.xlu1 %v7003_v41, %s7542_s21  ;;  %v2717_v43 = vsel %vm498_vm2, %v7003_v41, 0 }
0x17d6   : > { %v5667_v44 = vpop.f32.mrf.mxu1  ;;  %5669 = vmatpush3.bf16.xpose.msra.mxu0 %v2717_v43 }
0x17d7   : > { %5680 = vmatprep.subr.bf16.mxu0 %v6311_v0 }
0x17d9   : > { %2933 = vrot.lane.b32.xlu1 %v7003_v41, %s7541_s12 }
0x17dd   : > { %3043 = vrot.lane.b32.xlu1 %v7003_v41, %s7543_s25 }
0x17e3   : > { %v2651_v45 = vpop.f32.mrf.mxu0 }
0x17e4   : > { %v2652_v46 = vadd.f32 %v2651_v45, %v2601_v15 }
0x17e5   : > { %v5658_v47 = vpop.f32.mrf.mxu0 }
0x17e6   : > { %v2711_v30 = vpack.c.bf16 %v2652_v46, %v2652_v46 }
0x17e7   : > { %v2654_v49 = vpop.f32.mrf.mxu0 }
0x17e8   : > { %2821 = vrot.lane.b32.xlu0 %v2711_v30, %s7542_s21  ;;  %5671 = vmatmul.mubr.msk.bf16.vlgmr.msra.gmra.mxu0 %vm498_vm2, %v2711_v30 }
0x17e9   : > { %v5659_v1 = vpop.f32.mrf.mxu0  ;;  %5682 = vmatprep.mubr.msk.bf16.mxu0 %vm6312_vm0, %v6311_v0 }
0x17ec   : > { %2931 = vrot.lane.b32.xlu0 %v2711_v30, %s7541_s12 }
0x17f0   : > { %3041 = vrot.lane.b32.xlu0 %v2711_v30, %s7543_s25 }
0x1847   : > { %v2824_v50 = vpop.permute.xlu1 %2823 }
0x1848   : > { %v2829_v34 = vsel %vm498_vm2, %v2824_v50, 0 }
0x1849   : > { %5681 = vmatpush3.bf16.xpose.msra.mxu0 %v2829_v34 }
0x184a   : > { %5692 = vmatprep.subr.bf16.mxu0 %v6311_v0 }
0x184b   : > { %v2934_v51 = vpop.permute.xlu1 %2933 }
0x184c   : > { %v2939_v27 = vsel %vm498_vm2, %v2934_v51, 0 }
0x184f   : > { %v3044_v52 = vpop.permute.xlu1 %3043 }
0x1850   : > { %v3049_v54 = vsel %vm498_vm2, %v3044_v52, 0 }
0x185a   : > { %v2822_v26 = vpop.permute.xlu0 %2821 }
0x185b   : > { %5683 = vmatmul.mubr.msk.bf16.vlgmr.msra.gmra.mxu0 %vm498_vm2, %v2822_v26 }
0x185c   : > { %5693 = vmatpush3.bf16.xpose.msra.mxu0 %v2939_v27  ;;  %5694 = vmatprep.mubr.msk.bf16.mxu0 %vm6312_vm0, %v6311_v0 }
0x185d   : > { %5704 = vmatprep.subr.bf16.mxu0 %v6311_v0 }
0x185e   : > { %v2932_v53 = vpop.permute.xlu0 %2931 }
0x1862   : > { %v3042_v57 = vpop.permute.xlu0 %3041 }
0x1863   : > { %5695 = vmatmul.mubr.msk.bf16.vlgmr.msra.gmra.mxu0 %vm498_vm2, %v2932_v53 }
0x1864   : > { %5705 = vmatpush3.bf16.xpose.msra.mxu0 %v3049_v54  ;;  %5706 = vmatprep.mubr.msk.bf16.mxu0 %vm6312_vm0, %v6311_v0 }
0x1865   : > { %5716 = vmatprep.subr.bf16.mxu0 %v6311_v0 }
0x186b   : > { %5707 = vmatmul.mubr.msk.bf16.vlgmr.msra.gmra.mxu0 %vm498_vm2, %v3042_v57 }
0x186c   : > { %5720 = vmatprep.mubr.msk.bf16.mxu0 %vm6312_vm0, %v6311_v0 }
0x18a8   : > { %v2753_v59 = vpop.f32.mrf.mxu0 }
0x18a9   : > { %v2754_v2 = vadd.f32 %v2753_v59, %v7036_v58 }
0x18aa   : > { %v5672_v56 = vpop.f32.mrf.mxu0 }
0x18ab   : > { %v2759_v60 = vsel %vm498_vm2, %v2754_v2, -inf }
0x18ac   : > { %2760 = vmax.xlane.f32.xlu1 %v2759_v60  ;;  %v2756_v61 = vpop.f32.mrf.mxu0 }
0x18ae   : > { %v5673_v62 = vpop.f32.mrf.mxu0 }
0x191b   : > { %v2865_v39 = vpop.f32.mrf.mxu0 }
0x191c   : > { %v2866_v9 = vadd.f32 %v2865_v39, %v7036_v58 }
0x191d   : > { %v5684_v11 = vpop.f32.mrf.mxu0 }
0x191e   : > { %v2871_v48 = vsel %vm498_vm2, %v2866_v9, -inf }
0x191f   : > { %2872 = vmax.xlane.f32.xlu0 %v2871_v48  ;;  %v2868_v13 = vpop.f32.mrf.mxu0 }
0x1921   : > { %v5685_v12 = vpop.f32.mrf.mxu0 }
0x1923   : > { %v2975_v15 = vpop.f32.mrf.mxu0 }
0x1924   : > { %v2976_v17 = vadd.f32 %v2975_v15, %v7036_v58 }
0x1925   : > { %v5696_v18 = vpop.f32.mrf.mxu0 }
0x1926   : > { %v2981_v19 = vsel %vm498_vm2, %v2976_v17, -inf }
0x1927   : > { %2982 = vmax.xlane.f32.xlu0 %v2981_v19  ;;  %v2978_v6 = vpop.f32.mrf.mxu0 }
0x1929   : > { %v5697_v10 = vpop.f32.mrf.mxu0 }
0x192b   : > { %v3085_v5 = vpop.f32.mrf.mxu0 }
0x192c   : > { %v3086_v8 = vadd.f32 %v3085_v5, %v7036_v58 }
0x192d   : > { %v5708_v3 = vpop.f32.mrf.mxu0 }
0x192e   : > { %v3091_v20 = vsel %vm498_vm2, %v3086_v8, -inf }
0x192f   : > { %3092 = vmax.xlane.f32.xlu1 %v3091_v20  ;;  %v3088_v21 = vpop.f32.mrf.mxu0 }
0x1931   : > { %v5709_v22 = vpop.f32.mrf.mxu0 }
0x1935   : > { %v2761_v23 = vpop.xlane.xlu1 %2760 }
0x1936   : > { %v2762_v24 = vsub.f32 %v2754_v2, %v2761_v23 }
0x1938   : > { %v2763_v55 = vmul.f32 1.442695, %v2762_v24 }
0x193a   : > { %6096 = vpow2.f32 %v2763_v55 }
0x1947   : > { %v6097_v25 = vpop.eup %6096 }
0x1948   : > { %v2765_v28 = vsel %vm498_vm2, %v6097_v25, 0.0 }
0x1949   : > { %2766 = vadd.xlane.f32.xlu0 %v2765_v28 }
0x19a8   : > { %v2873_v31 = vpop.xlane.xlu0 %2872 }
0x19a9   : > { %v2874_v32 = vsub.f32 %v2866_v9, %v2873_v31 }
0x19ab   : > { %v2875_v35 = vmul.f32 1.442695, %v2874_v32 }
0x19ad   : > { %6098 = vpow2.f32 %v2875_v35 }
0x19b0   : > { %v2983_v36 = vpop.xlane.xlu0 %2982 }
0x19b1   : > { %v2984_v37 = vsub.f32 %v2976_v17, %v2983_v36 }
0x19b3   : > { %v2985_v38 = vmul.f32 1.442695, %v2984_v37 }
0x19b5   : > { %6100 = vpow2.f32 %v2985_v38 }
0x19b8   : > { %v3093_v45 = vpop.xlane.xlu1 %3092 }
0x19b9   : > { %v3094_v46 = vsub.f32 %v3086_v8, %v3093_v45 }
0x19ba   : > { %v6099_v40 = vpop.eup %6098 }
0x19bb   : > { %v2877_v42 = vsel %vm498_vm2, %v6099_v40, 0.0  ;;  %v3095_v47 = vmul.f32 1.442695, %v3094_v46 }
0x19bc   : > { %2878 = vadd.xlane.f32.xlu1 %v2877_v42  ;;  %v3170_v42 = vrot.slane %v6984_v14, %v6630_v63  ;;  %v6020_v14 = vld [vmem:[%s7469_s4 + $0x28] sm:$0xff]  }
0x19bd   : > { %6102 = vpow2.f32 %v3095_v47 }
0x19c2   : > { %v6101_v43 = vpop.eup %6100 }
0x19c3   : > { %v2987_v44 = vsel %vm498_vm2, %v6101_v43, 0.0 }
0x19c4   : > { %2988 = vadd.xlane.f32.xlu0 %v2987_v44 }
0x19ca   : > { %v6103_v30 = vpop.eup %6102 }
0x19cb   : > { %v3097_v49 = vsel %vm498_vm2, %v6103_v30, 0.0 }
0x19cd   : > { %2883 = vrot.lane.b32.xlu1 %v7003_v41, %s7554_s8 }
0x19d2   : > { %v2767_v1 = vpop.xlane.xlu0 %2766 }
0x19d3   : > { %6104 = vrcp.f32 %v2767_v1 }
0x19da   : > { %2772 = vrot.lane.b32.xlu0 %v7003_v41, %s7555_s10 }
0x19de   : > { %3103 = vrot.lane.b32.xlu0 %v7003_v41, %s7545_s27 }
0x19e0   : > { %v6105_v34 = vpop.eup %6104 }
0x19e1   : > { %v2769_v26 = vmul.f32 %v6105_v34, %v6097_v25 }
0x19e3   : > { %v2770_v54 = vpack.c.bf16 %v2769_v26, %v2769_v26 }
0x19f1   : > { %3098 = vadd.xlane.f32.xlu1 %v3097_v49 }
0x1a02   : > { %2993 = vrot.lane.b32.xlu1 %v7003_v41, %s7544_s18 }
0x1a06   : > { %3173 = vrot.lane.b32.xlu1 %v6967_v4, %s7550_s28 }
0x1a45   : > { %v2879_v50 = vpop.xlane.xlu1 %2878 }
0x1a46   : > { %6106 = vrcp.f32 %v2879_v50 }
0x1a49   : > { %v2884_v53 = vpop.permute.xlu1 %2883 }
0x1a4a   : > { %v2889_v41 = vsel %vm562_vm3, %v2884_v53, 0 }
0x1a4d   : > { %v2989_v51 = vpop.xlane.xlu0 %2988 }
0x1a4e   : > { %6108 = vrcp.f32 %v2989_v51 }
0x1a51   : > { %v2773_v27 = vpop.permute.xlu0 %2772 }
0x1a52   : > { %v2778_v52 = vsel %vm562_vm3, %v2773_v27, 0  ;;  %v6022_v27 = vld [vmem:[%s7470_s5 + $0x58] sm:$0xff]  }
0x1a53   : > { %5675 = vmatpush3.bf16.msra.mxu1 %v2778_v52  ;;  %v6107_v57 = vpop.eup %6106  ;;  %v6023_v52 = vld [vmem:[%s7470_s5 + $0x50] sm:$0xff]  }
0x1a54   : > { %5686 = vmatprep.subr.bf16.mxu1 %v6311_v0  ;;  %v2881_v4 = vmul.f32 %v6107_v57, %v6099_v40 }
0x1a55   : > { %v3104_v39 = vpop.permute.xlu0 %3103 }
0x1a56   : > { %5677 = vmatmul.mubr.msk.bf16.vlgmr.msra.gmra.mxu1 %vm498_vm2, %v2770_v54  ;;  %v2882_v59 = vpack.c.bf16 %v2881_v4, %v2881_v4  ;;  %v3109_v11 = vsel %vm562_vm3, %v3104_v39, 0  ;;  %v5153_v4 = vld [vmem:[#allocation5 + $0xa] ss:$0 sm:$0xff]  ;;  %v6025_v39 = vld [vmem:[%s7470_s5 + $0x40] sm:$0xff]  }
0x1a57   : > { %5687 = vmatpush3.bf16.msra.mxu1 %v2889_v41  ;;  %5688 = vmatprep.mubr.msk.bf16.mxu1 %vm6312_vm0, %v6311_v0 }
0x1a58   : > { %5698 = vmatprep.subr.bf16.mxu1 %v6311_v0 }
0x1a5b   : > { %v6109_v2 = vpop.eup %6108 }
0x1a5c   : > { %v2991_v60 = vmul.f32 %v6109_v2, %v6101_v43  ;;  %v5154_v2 = vld [vmem:[#allocation5 + $0xb] ss:$0 sm:$0xff] }
0x1a5e   : > { %5689 = vmatmul.mubr.msk.bf16.vlgmr.msra.gmra.mxu1 %vm498_vm2, %v2882_v59  ;;  %v2992_v9 = vpack.c.bf16 %v2991_v60, %v2991_v60 }
0x1a5f   : > { %5700 = vmatprep.mubr.msk.bf16.mxu1 %vm6312_vm0, %v6311_v0 }
0x1a7a   : > { %v3099_v56 = vpop.xlane.xlu1 %3098 }
0x1a7b   : > { %6110 = vrcp.f32 %v3099_v56 }
0x1a7e   : > { %v2994_v61 = vpop.permute.xlu1 %2993 }
0x1a7f   : > { %v2999_v62 = vsel %vm562_vm3, %v2994_v61, 0 }
0x1a80   : > { %5699 = vmatpush3.bf16.msra.mxu1 %v2999_v62  ;;  %v6024_v62 = vld [vmem:[%s7470_s5 + $0x48] sm:$0xff]  }
0x1a81   : > { %5710 = vmatprep.subr.bf16.mxu1 %v6311_v0 }
0x1a82   : > { %v3174_v15 = vpop.permute.xlu1 %3173 }
0x1a83   : > { %5701 = vmatmul.mubr.msk.bf16.vlgmr.msra.gmra.mxu1 %vm498_vm2, %v2992_v9  ;;  %5717 = vmatpush3.bf16.msra.mxu0 %v3174_v15  ;;  %v5155_v9 = vld [vmem:[%s7471_s6 + $0x4] sm:$0x3] }
0x1a84   : > { %5711 = vmatpush3.bf16.msra.mxu1 %v3109_v11  ;;  %5712 = vmatprep.mubr.msk.bf16.mxu1 %vm6312_vm0, %v6311_v0  ;;  %v3258_v11 = vrot.slane %v5155_v9, %v6522_v7 }
0x1a85   : > { %5724 = vmatprep.subr.bf16.mxu1 %v6311_v0  ;;  %5718 = vmatprep.subr.bf16.mxu0 %v6311_v0 }
0x1a88   : > { %v6111_v48 = vpop.eup %6110 }
0x1a89   : > { %v3101_v13 = vmul.f32 %v6111_v48, %v6103_v30 }
0x1a8b   : > { %v3102_v12 = vpack.c.bf16 %v3101_v13, %v3101_v13 }
0x1a8d   : > { %5713 = vmatmul.mubr.msk.bf16.vlgmr.msra.gmra.mxu1 %vm498_vm2, %v3102_v12 }
0x1a8e   : > { %5728 = vmatprep.mubr.msk.bf16.mxu1 %vm6312_vm0, %v6311_v0  ;;  %5725 = vmatpush3.bf16.msra.mxu1 %v6020_v14 }
0x1a8f   : > { %5726 = vmatprep.subr.bf16.mxu1 %v6311_v0 }
0x1b16   : > { %v2814_v17 = vpop.f32.mrf.mxu1 }
0x1b18   : > { %v5678_v18 = vpop.f32.mrf.mxu1 }
0x1b1a   : > { %v2817_v19 = vpop.f32.mrf.mxu1 }
0x1b1c   : > { %v5679_v6 = vpop.f32.mrf.mxu1 }
0x1b1d   : > { %v3328_v6 = vrot.slane %v5155_v9, %v6630_v63 }
0x1b1e   : > { %v2925_v10 = vpop.f32.mrf.mxu1 }
0x1b1f   : > { %3152 = vrot.lane.b32.xlu0 %v2925_v10, %s7551_s0 }
0x1b20   : > { %v5690_v5 = vpop.f32.mrf.mxu1 }
0x1b22   : > { %v2928_v8 = vpop.f32.mrf.mxu1 }
0x1b24   : > { %v5691_v3 = vpop.f32.mrf.mxu1 }
0x1b43   : > { %v3035_v20 = vpop.f32.mrf.mxu1 }
0x1b44   : > { %3156 = vrot.lane.b32.xlu1 %v3035_v20, %s7552_s1 }
0x1b45   : > { %v5702_v21 = vpop.f32.mrf.mxu1 }
0x1b47   : > { %v3038_v22 = vpop.f32.mrf.mxu1 }
0x1b48   : > { %3171 = vrot.lane.b32.xlu1 %v6976_v29, %s7550_s28 }
0x1b49   : > { %v5703_v23 = vpop.f32.mrf.mxu1 }
0x1b4d   : > { %v3145_v24 = vpop.f32.mrf.mxu1 }
0x1b4e   : > { %3160 = vrot.lane.b32.xlu0 %v3145_v24, %s7553_s3 }
0x1b4f   : > { %v5714_v55 = vpop.f32.mrf.mxu1 }
0x1b51   : > { %v3148_v25 = vpop.f32.mrf.mxu1 }
0x1b53   : > { %v5715_v28 = vpop.f32.mrf.mxu1 }
0x1b91   : > { %v3153_v35 = vpop.permute.xlu0 %3152 }
0x1b92   : > { %v3163_v36 = vsel %vm498_vm2, %v2814_v17, %v3153_v35 }
0x1bb6   : > { %v3157_v31 = vpop.permute.xlu1 %3156 }
0x1bb7   : > { %v3164_v37 = vsel %vm949_vm4, %v3163_v36, %v3157_v31  ;;  %v7138_v31 = vld [vmem:[%s7467_s2 + $0x48] sm:$0xff]  }
0x1bba   : > { %v3172_v32 = vpop.permute.xlu1 %3171 }
0x1bbb   : > { %5719 = vmatpush3.bf16.msra.mxu0 %v3172_v32  ;;  %v7144_v32 = vld [vmem:[%s7467_s2 + $0x40] sm:$0xff]  }
0x1bbc   : > { %5732 = vmatprep.subr.bf16.mxu0 %v6311_v0 }
0x1bc0   : > { %v3161_v38 = vpop.permute.xlu0 %3160 }
0x1bc1   : > { %v3165_v29 = vsel %vm951_vm5, %v3164_v37, %v3161_v38 }
0x1bc2   : > { %v3166_v40 = vpack.c.bf16 %v3165_v29, %v3165_v29  ;;  %v5176_v29 = vld [vmem:[#allocation5 + $0xc] ss:$0 sm:$0xff] }
0x1bc4   : > { %5721 = vmatmul.mubr.msk.bf16.vlgmr.msra.gmra.mxu0 %vm450_vm1, %v3166_v40 }
0x1bc5   : > { %5740 = vmatprep.mubr.msk.bf16.mxu0 %vm6312_vm0, %v6311_v0  ;;  %5733 = vmatpush3.bf16.msra.mxu0 %v6022_v27 }
0x1bc6   : > { %5734 = vmatprep.subr.bf16.mxu0 %v6311_v0 }
0x1bc9   : > { %5735 = vmatpush3.bf16.msra.mxu0 %v6023_v52 }
0x1bca   : > { %5736 = vmatprep.subr.bf16.mxu0 %v6311_v0 }
0x1bcd   : > { %5737 = vmatpush3.bf16.msra.mxu0 %v6024_v62 }
0x1bce   : > { %5738 = vmatprep.subr.bf16.mxu0 %v6311_v0 }
0x1bd1   : > { %5739 = vmatpush3.bf16.msra.mxu0 %v6025_v39 }
0x1bd2   : > { %5758 = vmatprep.subr.bf16.mxu0 %v6311_v0 }
0x1c84   : > { %v3214_v43 = vpop.f32.mrf.mxu0 }
0x1c85   : > { %v3215_v44 = vadd.f32 %v3214_v43, %v3170_v42  ;;  %v5177_v42 = vld [vmem:[#allocation5 + $0xd] ss:$0 sm:$0xff] }
0x1c86   : > { %v5722_v45 = vpop.f32.mrf.mxu0 }
0x1c87   : > { %v3220_v46 = vadd.f32 %v3215_v44, %v6996_v33  ;;  %v6021_v33 = vld [vmem:[%s7469_s4 + $0x20] sm:$0xff]  }
0x1c88   : > { %v3217_v47 = vpop.f32.mrf.mxu0  ;;  %5727 = vmatpush3.bf16.msra.mxu1 %v6021_v33 }
0x1c89   : > { %v3224_v30 = vsel %vm450_vm1, %v3220_v46, 0.0  ;;  %5744 = vmatprep.subr.bf16.mxu1 %v6311_v0 }
0x1c8a   : > { %3225 = vadd.xlane.f32.xlu0 %v3224_v30  ;;  %v5723_v49 = vpop.f32.mrf.mxu0 }
0x1d13   : > { %v3226_v1 = vpop.xlane.xlu0 %3225 }
0x1d14   : > { %v3227_v50 = vmul.f32 0.03125, %v3226_v1 }
0x1d16   : > { %v3228_v34 = vsub.f32 %v3220_v46, %v3227_v50  ;;  %v7156_v46 = vld [vmem:[#allocation2 + $0x8] sm:$0x3] }
0x1d17   : > { %v3434_v47 = vrot.slane %v7156_v46, %v6522_v7 }
0x1d18   : > { %v3229_v51 = vmul.f32 %v3228_v34, %v3228_v34 }
0x1d1a   : > { %v3230_v26 = vsel %vm450_vm1, %v3229_v51, 0.0 }
0x1d1b   : > { %3231 = vadd.xlane.f32.xlu1 %v3230_v26 }
0x1da4   : > { %v3232_v53 = vpop.xlane.xlu1 %3231 }
0x1da5   : > { %v3233_v54 = vmul.f32 0.03125, %v3232_v53 }
0x1da7   : > { %v3234_v57 = vadd.f32 1e-06, %v3233_v54 }
0x1da9   : > { %6112 = vrsqrt.f32 %v3234_v57 }
0x1db6   : > { %v6113_v41 = vpop.eup %6112 }
0x1db7   : > { %v3236_v59 = vmul.f32 %v6113_v41, %v3228_v34 }
0x1db9   : > { %v3241_v56 = vmul.f32 %v5153_v4, %v3236_v59 }
0x1dbb   : > { %v3246_v60 = vadd.f32 %v5154_v2, %v3241_v56  ;;  %v6154_v56 = vld [vmem:[%s6569_s30 + $0x8] sm:$0xff] }
0x1dbd   : > { %v3249_v61 = vpack.c.bf16 %v3246_v60, %v3246_v60 }
0x1dbf   : > { %5729 = vmatmul.mubr.msk.bf16.vlgmr.msra.gmra.mxu1 %vm450_vm1, %v3249_v61 }
0x1dc0   : > { %5748 = vmatprep.mubr.msk.bf16.mxu1 %vm6312_vm0, %v6311_v0  ;;  %5745 = vmatpush3.bf16.msra.mxu1 %v7138_v31 }
0x1dc1   : > { %5746 = vmatprep.subr.bf16.mxu1 %v6311_v0 }
0x1dc4   : > { %5747 = vmatpush3.bf16.msra.mxu1 %v7144_v32 }
0x1dc5   : > { %5752 = vmatprep.subr.bf16.mxu1 %v6311_v0 }
0x1e7f   : > { %v3308_v48 = vpop.f32.mrf.mxu1 }
0x1e80   : > { %v3309_v13 = vadd.f32 %v3308_v48, %v3258_v11 }
0x1e81   : > { %v5730_v12 = vpop.f32.mrf.mxu1 }
0x1e82   : > { %v3314_v15 = vmax.f32 %v3309_v13, 0.0 }
0x1e83   : > { %v3311_v17 = vpop.f32.mrf.mxu1 }
0x1e84   : > { %v3315_v18 = vpack.c.bf16 %v3314_v15, %v3314_v15 }
0x1e85   : > { %v5731_v19 = vpop.f32.mrf.mxu1 }
0x1e86   : > { %5741 = vmatmul.mubr.msk.bf16.vlgmr.msra.gmra.mxu0 %vm1137_vm6, %v3315_v18 }
0x1e87   : > { %5760 = vmatprep.mubr.msk.bf16.mxu0 %vm6312_vm0, %v6311_v0 }
0x1f46   : > { %v3390_v10 = vpop.f32.mrf.mxu0 }
0x1f47   : > { %v3391_v5 = vadd.f32 %v3390_v10, %v3328_v6 }
0x1f48   : > { %v5742_v8 = vpop.f32.mrf.mxu0 }
0x1f49   : > { %v3396_v3 = vadd.f32 %v3391_v5, %v3246_v60 }
0x1f4a   : > { %v3393_v20 = vpop.f32.mrf.mxu0 }
0x1f4b   : > { %v3400_v21 = vsel %vm450_vm1, %v3396_v3, 0.0 }
0x1f4c   : > { %3401 = vadd.xlane.f32.xlu0 %v3400_v21  ;;  %v5743_v22 = vpop.f32.mrf.mxu0 }
0x1fd5   : > { %v3402_v23 = vpop.xlane.xlu0 %3401 }
0x1fd6   : > { %v3403_v24 = vmul.f32 0.03125, %v3402_v23 }
0x1fd8   : > { %v3404_v55 = vsub.f32 %v3396_v3, %v3403_v24 }
0x1fda   : > { %v3405_v25 = vmul.f32 %v3404_v55, %v3404_v55 }
0x1fdc   : > { %v3406_v28 = vsel %vm450_vm1, %v3405_v25, 0.0 }
0x1fdd   : > { %3407 = vadd.xlane.f32.xlu0 %v3406_v28 }
0x2066   : > { %v3408_v35 = vpop.xlane.xlu0 %3407 }
0x2067   : > { %v3409_v36 = vmul.f32 0.03125, %v3408_v35 }
0x2069   : > { %v3410_v37 = vadd.f32 1e-06, %v3409_v36 }
0x206b   : > { %6114 = vrsqrt.f32 %v3410_v37 }
0x2078   : > { %v6115_v38 = vpop.eup %6114 }
0x2079   : > { %v3412_v40 = vmul.f32 %v6115_v38, %v3404_v55 }
0x207b   : > { %v3417_v43 = vmul.f32 %v5176_v29, %v3412_v40 }
0x207d   : > { %v7149_v44 = vadd.f32 %v5177_v42, %v3417_v43 }
0x207f   : > { %v3430_v45 = vpack.c.bf16 %v7149_v44, %v7149_v44 }
0x2081   : > { %5749 = vmatmul.mubr.msk.bf16.vlgmr.msra.gmra.mxu1 %vm450_vm1, %v3430_v45 }
0x2082   : > { %5754 = vmatprep.mubr.msk.bf16.mxu1 %vm6312_vm0, %v6311_v0 }
0x2141   : > { %v3484_v30 = vpop.f32.mrf.mxu1 }
0x2142   : > { %v3485_v49 = vadd.f32 %v3484_v30, %v3434_v47 }
0x2143   : > { %v5750_v1 = vpop.f32.mrf.mxu1 }
0x2144   : > { %v7160_v50 = vpack.c.bf16 %v3485_v49, %v3485_v49 }
0x2145   : > { %v3487_v34 = vpop.f32.mrf.mxu1 }
0x2146   : > { %3602 = vrot.lane.b32.xlu0 %v7160_v50, %s7554_s8  ;;  %3492 = vrot.lane.b32.xlu1 %v7160_v50, %s7555_s10 }
0x2147   : > { %v5751_v51 = vpop.f32.mrf.mxu1 }
0x214a   : > { %3710 = vrot.lane.b32.xlu0 %v7160_v50, %s7541_s12  ;;  %3600 = vrot.lane.b32.xlu1 %v7160_v50, %s7542_s21 }
0x214e   : > { %3820 = vrot.lane.b32.xlu0 %v7160_v50, %s7543_s25  ;;  %3712 = vrot.lane.b32.xlu1 %v7160_v50, %s7544_s18 }
0x2152   : > { %3822 = vrot.lane.b32.xlu1 %v7160_v50, %s7545_s27 }
0x21b8   : > { %v3493_v26 = vpop.permute.xlu1 %3492  ;;  %v3603_v33 = vpop.permute.xlu0 %3602 }
0x21b9   : > { %v3498_v14 = vsel %vm498_vm2, %v3493_v26, 0  ;;  %v3608_v52 = vsel %vm498_vm2, %v3603_v33, 0 }
0x21ba   : > { %5753 = vmatpush3.bf16.xpose.msra.mxu1 %v3498_v14 }
0x21bb   : > { %5764 = vmatprep.subr.bf16.mxu1 %v6311_v0 }
0x21bc   : > { %v3601_v27 = vpop.permute.xlu1 %3600  ;;  %v3711_v41 = vpop.permute.xlu0 %3710 }
0x21c0   : > { %v3713_v53 = vpop.permute.xlu1 %3712  ;;  %v3821_v59 = vpop.permute.xlu0 %3820 }
0x21c1   : > { %5755 = vmatmul.mubr.msk.bf16.vlgmr.msra.gmra.mxu1 %vm498_vm2, %v7160_v50  ;;  %v3718_v54 = vsel %vm498_vm2, %v3713_v53, 0 }
0x21c2   : > { %5765 = vmatpush3.bf16.xpose.msra.mxu1 %v3608_v52  ;;  %5766 = vmatprep.mubr.msk.bf16.mxu1 %vm6312_vm0, %v6311_v0 }
0x21c3   : > { %5776 = vmatprep.subr.bf16.mxu1 %v6311_v0 }
0x21c4   : > { %v3823_v57 = vpop.permute.xlu1 %3822 }
0x21c5   : > { %v3828_v4 = vsel %vm498_vm2, %v3823_v57, 0 }
0x21c9   : > { %5767 = vmatmul.mubr.msk.bf16.vlgmr.msra.gmra.mxu1 %vm498_vm2, %v3601_v27 }
0x21ca   : > { %5777 = vmatpush3.bf16.xpose.msra.mxu1 %v3718_v54  ;;  %5778 = vmatprep.mubr.msk.bf16.mxu1 %vm6312_vm0, %v6311_v0 }
0x21cb   : > { %5788 = vmatprep.subr.bf16.mxu1 %v6311_v0 }
0x21d1   : > { %5779 = vmatmul.mubr.msk.bf16.vlgmr.msra.gmra.mxu1 %vm498_vm2, %v3711_v41 }
0x21d2   : > { %5789 = vmatpush3.bf16.xpose.msra.mxu1 %v3828_v4  ;;  %5790 = vmatprep.mubr.msk.bf16.mxu1 %vm6312_vm0, %v6311_v0 }
0x21d3   : > { %5800 = vmatprep.subr.bf16.mxu1 %v6311_v0 }
0x21d9   : > { %5791 = vmatmul.mubr.msk.bf16.vlgmr.msra.gmra.mxu1 %vm498_vm2, %v3821_v59 }
0x21da   : > { %5804 = vmatprep.mubr.msk.bf16.mxu1 %vm6312_vm0, %v6311_v0 }
0x2281   : > { %v3534_v2 = vpop.f32.mrf.mxu1 }
0x2282   : > { %v3535_v60 = vadd.f32 %v6154_v56, %v3534_v2 }
0x2283   : > { %v5756_v61 = vpop.f32.mrf.mxu1 }
0x2284   : > { %v3540_v62 = vsel %vm498_vm2, %v3535_v60, -inf }
0x2285   : > { %3541 = vmax.xlane.f32.xlu1 %v3540_v62  ;;  %v3537_v39 = vpop.f32.mrf.mxu1 }
0x2287   : > { %v5757_v9 = vpop.f32.mrf.mxu1 }
0x2289   : > { %v3644_v11 = vpop.f32.mrf.mxu1 }
0x228a   : > { %v3645_v48 = vadd.f32 %v6154_v56, %v3644_v11 }
0x228b   : > { %v5768_v13 = vpop.f32.mrf.mxu1 }
0x228c   : > { %v3650_v12 = vsel %vm498_vm2, %v3645_v48, -inf }
0x228d   : > { %3651 = vmax.xlane.f32.xlu0 %v3650_v12  ;;  %v3647_v15 = vpop.f32.mrf.mxu1 }
0x228f   : > { %v5769_v17 = vpop.f32.mrf.mxu1 }
0x2291   : > { %v3754_v18 = vpop.f32.mrf.mxu1 }
0x2292   : > { %v3755_v19 = vadd.f32 %v6154_v56, %v3754_v18 }
0x2293   : > { %v5780_v6 = vpop.f32.mrf.mxu1 }
0x2294   : > { %v3760_v10 = vsel %vm498_vm2, %v3755_v19, -inf }
0x2295   : > { %3761 = vmax.xlane.f32.xlu0 %v3760_v10  ;;  %v3757_v5 = vpop.f32.mrf.mxu1 }
0x2297   : > { %v5781_v8 = vpop.f32.mrf.mxu1 }
0x2299   : > { %v3864_v3 = vpop.f32.mrf.mxu1 }
0x229a   : > { %v3865_v20 = vadd.f32 %v6154_v56, %v3864_v3 }
0x229b   : > { %v5792_v21 = vpop.f32.mrf.mxu1 }
0x229c   : > { %v3870_v22 = vsel %vm498_vm2, %v3865_v20, -inf }
0x229d   : > { %3871 = vmax.xlane.f32.xlu1 %v3870_v22  ;;  %v3867_v23 = vpop.f32.mrf.mxu1 }
0x229f   : > { %v5793_v24 = vpop.f32.mrf.mxu1 }
0x230e   : > { %v3542_v55 = vpop.xlane.xlu1 %3541 }
0x230f   : > { %v3543_v25 = vsub.f32 %v3535_v60, %v3542_v55 }
0x2311   : > { %v3544_v28 = vmul.f32 1.442695, %v3543_v25 }
0x2313   : > { %6116 = vpow2.f32 %v3544_v28 }
0x2316   : > { %v3652_v35 = vpop.xlane.xlu0 %3651 }
0x2317   : > { %v3653_v36 = vsub.f32 %v3645_v48, %v3652_v35 }
0x2319   : > { %v3654_v37 = vmul.f32 1.442695, %v3653_v36 }
0x231b   : > { %6118 = vpow2.f32 %v3654_v37 }
0x231e   : > { %v3762_v38 = vpop.xlane.xlu0 %3761 }
0x231f   : > { %v3763_v29 = vsub.f32 %v3755_v19, %v3762_v38 }
0x2320   : > { %v6117_v40 = vpop.eup %6116 }
0x2321   : > { %v3764_v42 = vmul.f32 1.442695, %v3763_v29  ;;  %v3546_v43 = vsel %vm498_vm2, %v6117_v40, 0.0 }
0x2322   : > { %3547 = vadd.xlane.f32.xlu0 %v3546_v43 }
0x2323   : > { %6120 = vpow2.f32 %v3764_v42 }
0x2326   : > { %v3872_v1 = vpop.xlane.xlu1 %3871 }
0x2327   : > { %v3873_v34 = vsub.f32 %v3865_v20, %v3872_v1 }
0x2328   : > { %v6119_v45 = vpop.eup %6118 }
0x2329   : > { %v3656_v47 = vsel %vm498_vm2, %v6119_v45, 0.0  ;;  %v3874_v51 = vmul.f32 1.442695, %v3873_v34 }
0x232a   : > { %3657 = vadd.xlane.f32.xlu1 %v3656_v47  ;;  %v3949_v47 = vrot.slane %v7156_v46, %v6630_v63  ;;  %v7263_v46 = vld [vmem:[%s7467_s2 + $0x50] sm:$0xff]  }
0x232b   : > { %6122 = vpow2.f32 %v3874_v51 }
0x2330   : > { %v6121_v30 = vpop.eup %6120 }
0x2331   : > { %v3766_v49 = vsel %vm498_vm2, %v6121_v30, 0.0 }
0x2332   : > { %3767 = vadd.xlane.f32.xlu0 %v3766_v49 }
0x2338   : > { %v6123_v26 = vpop.eup %6122 }
0x2339   : > { %v3876_v14 = vsel %vm498_vm2, %v6123_v26, 0.0 }
0x233b   : > { %3662 = vrot.lane.b32.xlu1 %v7160_v50, %s7546_s26 }
0x2348   : > { %3552 = vrot.lane.b32.xlu0 %v7160_v50, %s7547_s29 }
0x234c   : > { %3882 = vrot.lane.b32.xlu0 %v7160_v50, %s7548_s22 }
0x235f   : > { %3877 = vadd.xlane.f32.xlu1 %v3876_v14 }
0x2370   : > { %3772 = vrot.lane.b32.xlu1 %v7160_v50, %s7549_s11  ;;  %s411_s11 = scalar_lea.vmem [#allocation8], %s5049_s15 }
0x2371   : > { %s4937_s26 = sshll.u32 %s411_s11, 4  ;;  %s7426_s26 = int_to_ptr.vmem [resolvable:$true] %s4937_s26 }
0x2374   : > { %3952 = vrot.lane.b32.xlu1 %v7138_v31, %s7550_s28 }
0x23ab   : > { %v3548_v33 = vpop.xlane.xlu0 %3547 }
0x23ac   : > { %6124 = vrcp.f32 %v3548_v33  ;;  %v7256_v33 = vld [vmem:[%s7467_s2 + $0x58] sm:$0xff]  }
0x23b3   : > { %v3658_v27 = vpop.xlane.xlu1 %3657 }
0x23b4   : > { %6126 = vrcp.f32 %v3658_v27 }
0x23b7   : > { %v3663_v4 = vpop.permute.xlu1 %3662 }
0x23b8   : > { %v3668_v50 = vsel %vm562_vm3, %v3663_v4, 0 }
0x23b9   : > { %v6125_v52 = vpop.eup %6124 }
0x23ba   : > { %v3550_v54 = vmul.f32 %v6125_v52, %v6117_v40 }
0x23bb   : > { %v3768_v53 = vpop.xlane.xlu0 %3767 }
0x23bc   : > { %v3551_v59 = vpack.c.bf16 %v3550_v54, %v3550_v54  ;;  %6128 = vrcp.f32 %v3768_v53 }
0x23bf   : > { %v3553_v57 = vpop.permute.xlu0 %3552 }
0x23c0   : > { %v3558_v41 = vsel %vm562_vm3, %v3553_v57, 0 }
0x23c1   : > { %5759 = vmatpush3.bf16.msra.mxu0 %v3558_v41  ;;  %v6127_v2 = vpop.eup %6126  ;;  %v7273_v41 = vld [vmem:[#allocation2 + $0xa] sm:$0x3] }
0x23c2   : > { %5770 = vmatprep.subr.bf16.mxu0 %v6311_v0  ;;  %v3660_v31 = vmul.f32 %v6127_v2, %v6119_v45  ;;  %v4037_v4 = vrot.slane %v7273_v41, %v6522_v7 }
0x23c3   : > { %v3883_v11 = vpop.permute.xlu0 %3882 }
0x23c4   : > { %5761 = vmatmul.mubr.msk.bf16.vlgmr.msra.gmra.mxu0 %vm498_vm2, %v3551_v59  ;;  %v3661_v56 = vpack.c.bf16 %v3660_v31, %v3660_v31  ;;  %v3888_v13 = vsel %vm562_vm3, %v3883_v11, 0 }
0x23c5   : > { %5771 = vmatpush3.bf16.msra.mxu0 %v3668_v50  ;;  %5772 = vmatprep.mubr.msk.bf16.mxu0 %vm6312_vm0, %v6311_v0 }
0x23c6   : > { %5782 = vmatprep.subr.bf16.mxu0 %v6311_v0 }
0x23c9   : > { %v6129_v60 = vpop.eup %6128 }
0x23ca   : > { %v3770_v62 = vmul.f32 %v6129_v60, %v6121_v30  ;;  %v5194_v60 = vld [vmem:[#allocation5 + $0xe] ss:$0 sm:$0xff] }
0x23cc   : > { %5773 = vmatmul.mubr.msk.bf16.vlgmr.msra.gmra.mxu0 %vm498_vm2, %v3661_v56  ;;  %v3771_v48 = vpack.c.bf16 %v3770_v62, %v3770_v62  ;;  %v5195_v62 = vld [vmem:[#allocation5 + $0xf] ss:$0 sm:$0xff] }
0x23cd   : > { %5784 = vmatprep.mubr.msk.bf16.mxu0 %vm6312_vm0, %v6311_v0 }
0x23e8   : > { %v3878_v61 = vpop.xlane.xlu1 %3877 }
0x23e9   : > { %6130 = vrcp.f32 %v3878_v61 }
0x23ec   : > { %v3773_v39 = vpop.permute.xlu1 %3772 }
0x23ed   : > { %v3778_v9 = vsel %vm562_vm3, %v3773_v39, 0 }
0x23ee   : > { %5783 = vmatpush3.bf16.msra.mxu0 %v3778_v9 }
0x23ef   : > { %5794 = vmatprep.subr.bf16.mxu0 %v6311_v0 }
0x23f0   : > { %v3953_v18 = vpop.permute.xlu1 %3952 }
0x23f1   : > { %5785 = vmatmul.mubr.msk.bf16.vlgmr.msra.gmra.mxu0 %vm498_vm2, %v3771_v48  ;;  %5801 = vmatpush3.bf16.msra.mxu1 %v3953_v18 }
0x23f2   : > { %5795 = vmatpush3.bf16.msra.mxu0 %v3888_v13  ;;  %5796 = vmatprep.mubr.msk.bf16.mxu0 %vm6312_vm0, %v6311_v0 }
0x23f3   : > { %5808 = vmatprep.subr.bf16.mxu0 %v6311_v0  ;;  %5802 = vmatprep.subr.bf16.mxu1 %v6311_v0 }
0x23f6   : > { %v6131_v12 = vpop.eup %6130 }
0x23f7   : > { %v3880_v15 = vmul.f32 %v6131_v12, %v6123_v26 }
0x23f9   : > { %v3881_v17 = vpack.c.bf16 %v3880_v15, %v3880_v15 }
0x23fb   : > { %5797 = vmatmul.mubr.msk.bf16.vlgmr.msra.gmra.mxu0 %vm498_vm2, %v3881_v17 }
0x23fc   : > { %5812 = vmatprep.mubr.msk.bf16.mxu0 %vm6312_vm0, %v6311_v0  ;;  %5809 = vmatpush3.bf16.msra.mxu0 %v7256_v33 }
0x23fd   : > { %5810 = vmatprep.subr.bf16.mxu0 %v6311_v0 }
0x2400   : > { %5811 = vmatpush3.bf16.msra.mxu0 %v7263_v46 }
0x2401   : > { %5824 = vmatprep.subr.bf16.mxu0 %v6311_v0 }
0x2484   : > { %v3594_v19 = vpop.f32.mrf.mxu0 }
0x2486   : > { %v5762_v6 = vpop.f32.mrf.mxu0 }
0x2488   : > { %v3597_v10 = vpop.f32.mrf.mxu0 }
0x248a   : > { %v5763_v5 = vpop.f32.mrf.mxu0 }
0x248c   : > { %v3704_v8 = vpop.f32.mrf.mxu0 }
0x248d   : > { %3931 = vrot.lane.b32.xlu0 %v3704_v8, %s7551_s0 }
0x248e   : > { %v5774_v3 = vpop.f32.mrf.mxu0 }
0x2490   : > { %v3707_v20 = vpop.f32.mrf.mxu0 }
0x2492   : > { %v5775_v21 = vpop.f32.mrf.mxu0 }
0x24b1   : > { %v3814_v22 = vpop.f32.mrf.mxu0 }
0x24b2   : > { %3935 = vrot.lane.b32.xlu1 %v3814_v22, %s7552_s1 }
0x24b3   : > { %v5786_v23 = vpop.f32.mrf.mxu0 }
0x24b5   : > { %v3817_v24 = vpop.f32.mrf.mxu0 }
0x24b6   : > { %3950 = vrot.lane.b32.xlu1 %v7144_v32, %s7550_s28 }
0x24b7   : > { %v5787_v55 = vpop.f32.mrf.mxu0 }
0x24bb   : > { %v3924_v25 = vpop.f32.mrf.mxu0 }
0x24bc   : > { %3939 = vrot.lane.b32.xlu0 %v3924_v25, %s7553_s3 }
0x24bd   : > { %v5798_v28 = vpop.f32.mrf.mxu0 }
0x24bf   : > { %v3927_v35 = vpop.f32.mrf.mxu0 }
0x24c1   : > { %v5799_v36 = vpop.f32.mrf.mxu0 }
0x24ff   : > { %v3932_v29 = vpop.permute.xlu0 %3931 }
0x2500   : > { %v3942_v40 = vsel %vm498_vm2, %v3594_v19, %v3932_v29 }
0x2524   : > { %v3936_v37 = vpop.permute.xlu1 %3935 }
0x2525   : > { %v3943_v42 = vsel %vm949_vm4, %v3942_v40, %v3936_v37 }
0x2528   : > { %v3951_v38 = vpop.permute.xlu1 %3950 }
0x2529   : > { %5803 = vmatpush3.bf16.msra.mxu1 %v3951_v38 }
0x252a   : > { %5816 = vmatprep.subr.bf16.mxu1 %v6311_v0 }
0x252e   : > { %v3940_v43 = vpop.permute.xlu0 %3939 }
0x252f   : > { %v3944_v32 = vsel %vm951_vm5, %v3943_v42, %v3940_v43 }
0x2530   : > { %v3945_v45 = vpack.c.bf16 %v3944_v32, %v3944_v32 }
0x2532   : > { %5805 = vmatmul.mubr.msk.bf16.vlgmr.msra.gmra.mxu1 %vm450_vm1, %v3945_v45  ;;  %v6155_v45 = vld [vmem:[%s6569_s30 + $0x10] sm:$0xff]  ;;  %s6238_s30 = sshll.u32 %s6328_s17, 4  ;;  %s6239_s30 = int_to_ptr.vmem [resolvable:$false] %s6238_s30 }
0x2533   : > { %5820 = vmatprep.mubr.msk.bf16.mxu1 %vm6312_vm0, %v6311_v0  ;;  %p6241_p7 = scmp.lt.s32.totalorder %s7426_s26, %s6239_s30 }
0x25f2   : > { %v3993_v30 = vpop.f32.mrf.mxu1 }
0x25f3   : > { %v3994_v49 = vadd.f32 %v3993_v30, %v3949_v47 }
0x25f4   : > { %v5806_v1 = vpop.f32.mrf.mxu1 }
0x25f5   : > { %v3999_v34 = vadd.f32 %v3994_v49, %v7149_v44 }
0x25f6   : > { %v3996_v51 = vpop.f32.mrf.mxu1 }
0x25f7   : > { %v4003_v26 = vsel %vm450_vm1, %v3999_v34, 0.0 }
0x25f8   : > { %4004 = vadd.xlane.f32.xlu0 %v4003_v26  ;;  %v5807_v14 = vpop.f32.mrf.mxu1 }
0x260e   : > { %4095 = vrot.lane.b32.xlu0 %v7256_v33, %s7555_s10 }
0x2612   : > { %4100 = vrot.lane.b32.xlu0 %v4037_v4, %s7555_s10 }
0x2681   : > { %v4005_v44 = vpop.xlane.xlu0 %4004 }
0x2682   : > { %v4006_v27 = vmul.f32 0.03125, %v4005_v44 }
0x2684   : > { %v4007_v52 = vsub.f32 %v3999_v34, %v4006_v27 }
0x2685   : > { %v4096_v57 = vpop.permute.xlu0 %4095 }
0x2686   : > { %v4008_v53 = vmul.f32 %v4007_v52, %v4007_v52  ;;  %5817 = vmatpush3.bf16.msra.mxu1 %v4096_v57 }
0x2687   : > { %5818 = vmatprep.subr.bf16.mxu1 %v6311_v0 }
0x2688   : > { %v4009_v54 = vsel %vm450_vm1, %v4008_v53, 0.0 }
0x2689   : > { %4010 = vadd.xlane.f32.xlu1 %v4009_v54  ;;  %v4101_v48 = vpop.permute.xlu0 %4100 }
0x269a   : > { %4093 = vrot.lane.b32.xlu1 %v7263_v46, %s7555_s10 }
0x2712   : > { %v4011_v59 = vpop.xlane.xlu1 %4010 }
0x2713   : > { %v4012_v2 = vmul.f32 0.03125, %v4011_v59 }
0x2715   : > { %v4013_v50 = vadd.f32 1e-06, %v4012_v2 }
0x2716   : > { %v4094_v31 = vpop.permute.xlu1 %4093 }
0x2717   : > { %6132 = vrsqrt.f32 %v4013_v50  ;;  %5819 = vmatpush3.bf16.msra.mxu1 %v4094_v31 }
0x2718   : > { %5830 = vmatprep.subr.bf16.mxu1 %v6311_v0 }
0x271a   : > { %5821 = vmatmul.mubr.msk.bf16.vlgmr.msra.gmra.mxu1 %vm450_vm1, %v6989_v16 }
0x271b   : > { %5832 = vmatprep.mubr.msk.bf16.mxu1 %vm6312_vm0, %v6311_v0 }
0x2724   : > { %v6133_v56 = vpop.eup %6132 }
0x2725   : > { %v4015_v61 = vmul.f32 %v6133_v56, %v4007_v52 }
0x2727   : > { %v4020_v39 = vmul.f32 %v5194_v60, %v4015_v61 }
0x2729   : > { %v7283_v9 = vadd.f32 %v5195_v62, %v4020_v39 }
0x272b   : > { %v4033_v11 = vpack.c.bf16 %v7283_v9, %v7283_v9 }
0x272d   : > { %5813 = vmatmul.mubr.msk.bf16.vlgmr.msra.gmra.mxu0 %vm450_vm1, %v4033_v11 }
0x272e   : > { %5826 = vmatprep.mubr.msk.bf16.mxu0 %vm6312_vm0, %v6311_v0 }
0x27da   : > { %v4137_v16 = vpop.f32.mrf.mxu1 }
0x27db   : > { %v4138_v13 = vadd.f32 %v4137_v16, %v4101_v48 }
0x27dc   : > { %v5822_v12 = vpop.f32.mrf.mxu1 }
0x27dd   : > { %v7290_v15 = vpack.c.bf16 %v4138_v13, %v4138_v13 }
0x27de   : > { %v4140_v17 = vpop.f32.mrf.mxu1 }
0x27df   : > { %4255 = vrot.lane.b32.xlu1 %v7290_v15, %s7542_s21  ;;  %v4149_v18 = vsel %vm498_vm2, %v7290_v15, 0 }
0x27e0   : > { %v5823_v19 = vpop.f32.mrf.mxu1  ;;  %5825 = vmatpush3.bf16.xpose.msra.mxu0 %v4149_v18 }
0x27e1   : > { %5836 = vmatprep.subr.bf16.mxu0 %v6311_v0 }
0x27e3   : > { %4365 = vrot.lane.b32.xlu1 %v7290_v15, %s7541_s12 }
0x27e7   : > { %4475 = vrot.lane.b32.xlu1 %v7290_v15, %s7543_s25 }
0x27ed   : > { %v4087_v6 = vpop.f32.mrf.mxu0 }
0x27ee   : > { %v4088_v10 = vadd.f32 %v4087_v6, %v4037_v4 }
0x27ef   : > { %v5814_v5 = vpop.f32.mrf.mxu0 }
0x27f0   : > { %v4143_v8 = vpack.c.bf16 %v4088_v10, %v4088_v10 }
0x27f1   : > { %v4090_v3 = vpop.f32.mrf.mxu0 }
0x27f2   : > { %4253 = vrot.lane.b32.xlu0 %v4143_v8, %s7542_s21  ;;  %5827 = vmatmul.mubr.msk.bf16.vlgmr.msra.gmra.mxu0 %vm498_vm2, %v4143_v8 }
0x27f3   : > { %v5815_v20 = vpop.f32.mrf.mxu0  ;;  %5838 = vmatprep.mubr.msk.bf16.mxu0 %vm6312_vm0, %v6311_v0 }
0x27f6   : > { %4363 = vrot.lane.b32.xlu0 %v4143_v8, %s7541_s12  ;;  %s6240_s12 = scalar_lea.vmem %s6239_s30, 256 }
0x27fa   : > { %4473 = vrot.lane.b32.xlu0 %v4143_v8, %s7543_s25 }
0x2851   : > { %v4256_v21 = vpop.permute.xlu1 %4255 }
0x2852   : > { %v4261_v22 = vsel %vm498_vm2, %v4256_v21, 0 }
0x2853   : > { %5837 = vmatpush3.bf16.xpose.msra.mxu0 %v4261_v22 }
0x2854   : > { %5848 = vmatprep.subr.bf16.mxu0 %v6311_v0 }
0x2855   : > { %v4366_v23 = vpop.permute.xlu1 %4365 }
0x2856   : > { %v4371_v55 = vsel %vm498_vm2, %v4366_v23, 0 }
0x2859   : > { %v4476_v25 = vpop.permute.xlu1 %4475 }
0x285a   : > { %v4481_v35 = vsel %vm498_vm2, %v4476_v25, 0 }
0x2864   : > { %v4254_v24 = vpop.permute.xlu0 %4253 }
0x2865   : > { %5839 = vmatmul.mubr.msk.bf16.vlgmr.msra.gmra.mxu0 %vm498_vm2, %v4254_v24 }
0x2866   : > { %5849 = vmatpush3.bf16.xpose.msra.mxu0 %v4371_v55  ;;  %5850 = vmatprep.mubr.msk.bf16.mxu0 %vm6312_vm0, %v6311_v0 }
0x2867   : > { %5860 = vmatprep.subr.bf16.mxu0 %v6311_v0 }
0x2868   : > { %v4364_v28 = vpop.permute.xlu0 %4363 }
0x286c   : > { %v4474_v36 = vpop.permute.xlu0 %4473 }
0x286d   : > { %5851 = vmatmul.mubr.msk.bf16.vlgmr.msra.gmra.mxu0 %vm498_vm2, %v4364_v28 }
0x286e   : > { %5861 = vmatpush3.bf16.xpose.msra.mxu0 %v4481_v35  ;;  %5862 = vmatprep.mubr.msk.bf16.mxu0 %vm6312_vm0, %v6311_v0 }
0x286f   : > { %5872 = vmatprep.subr.bf16.mxu0 %v6311_v0 }
0x2875   : > { %5863 = vmatmul.mubr.msk.bf16.vlgmr.msra.gmra.mxu0 %vm498_vm2, %v4474_v36 }
0x2876   : > { %5876 = vmatprep.mubr.msk.bf16.mxu0 %vm6312_vm0, %v6311_v0 }
0x28b2   : > { %v4185_v37 = vpop.f32.mrf.mxu0 }
0x28b3   : > { %v4186_v38 = vadd.f32 %v4185_v37, %v7036_v58 }
0x28b4   : > { %v5828_v29 = vpop.f32.mrf.mxu0 }
0x28b5   : > { %v4191_v40 = vsel %vm498_vm2, %v4186_v38, -inf }
0x28b6   : > { %4192 = vmax.xlane.f32.xlu1 %v4191_v40  ;;  %v4188_v42 = vpop.f32.mrf.mxu0 }
0x28b8   : > { %v5829_v43 = vpop.f32.mrf.mxu0 }
0x2925   : > { %v4297_v32 = vpop.f32.mrf.mxu0 }
0x2926   : > { %v4298_v47 = vadd.f32 %v6155_v45, %v4297_v32 }
0x2927   : > { %v5840_v30 = vpop.f32.mrf.mxu0 }
0x2928   : > { %v4303_v49 = vsel %vm498_vm2, %v4298_v47, -inf }
0x2929   : > { %4304 = vmax.xlane.f32.xlu0 %v4303_v49  ;;  %v4300_v1 = vpop.f32.mrf.mxu0 }
0x292b   : > { %v5841_v34 = vpop.f32.mrf.mxu0 }
0x292d   : > { %v4407_v51 = vpop.f32.mrf.mxu0 }
0x292e   : > { %v4408_v26 = vadd.f32 %v6155_v45, %v4407_v51 }
0x292f   : > { %v5852_v14 = vpop.f32.mrf.mxu0 }
0x2930   : > { %v4413_v58 = vsel %vm498_vm2, %v4408_v26, -inf }
0x2931   : > { %4414 = vmax.xlane.f32.xlu0 %v4413_v58  ;;  %v4410_v44 = vpop.f32.mrf.mxu0 }
0x2933   : > { %v5853_v27 = vpop.f32.mrf.mxu0 }
0x2935   : > { %v4517_v52 = vpop.f32.mrf.mxu0 }
0x2936   : > { %v4518_v53 = vadd.f32 %v6155_v45, %v4517_v52 }
0x2937   : > { %v5864_v54 = vpop.f32.mrf.mxu0 }
0x2938   : > { %v4523_v57 = vsel %vm498_vm2, %v4518_v53, -inf }
0x2939   : > { %4524 = vmax.xlane.f32.xlu1 %v4523_v57  ;;  %v4520_v4 = vpop.f32.mrf.mxu0 }
0x293b   : > { %v5865_v59 = vpop.f32.mrf.mxu0 }
0x293f   : > { %v4193_v2 = vpop.xlane.xlu1 %4192 }
0x2940   : > { %v4194_v50 = vsub.f32 %v4186_v38, %v4193_v2 }
0x2942   : > { %v4195_v31 = vmul.f32 1.442695, %v4194_v50 }
0x2944   : > { %6134 = vpow2.f32 %v4195_v31 }
0x2951   : > { %v6135_v56 = vpop.eup %6134 }
0x2952   : > { %v4197_v60 = vsel %vm498_vm2, %v6135_v56, 0.0 }
0x2953   : > { %4198 = vadd.xlane.f32.xlu0 %v4197_v60 }
0x29b2   : > { %v4305_v61 = vpop.xlane.xlu0 %4304 }
0x29b3   : > { %v4306_v62 = vsub.f32 %v4298_v47, %v4305_v61 }
0x29b5   : > { %v4307_v39 = vmul.f32 1.442695, %v4306_v62 }
0x29b7   : > { %6136 = vpow2.f32 %v4307_v39 }
0x29ba   : > { %v4415_v11 = vpop.xlane.xlu0 %4414 }
0x29bb   : > { %v4416_v48 = vsub.f32 %v4408_v26, %v4415_v11 }
0x29bd   : > { %v4417_v16 = vmul.f32 1.442695, %v4416_v48 }
0x29bf   : > { %6138 = vpow2.f32 %v4417_v16  ;;  %v4602_v16 = vrot.slane %v7273_v41, %v6630_v63  ;;  %v6030_v41 = vld [vmem:[%s7469_s4 + $0x38] sm:$0xff]  }
0x29c2   : > { %v4525_v19 = vpop.xlane.xlu1 %4524 }
0x29c3   : > { %v4526_v6 = vsub.f32 %v4518_v53, %v4525_v19 }
0x29c4   : > { %v6137_v13 = vpop.eup %6136 }
0x29c5   : > { %v4309_v12 = vsel %vm498_vm2, %v6137_v13, 0.0  ;;  %v4527_v10 = vmul.f32 1.442695, %v4526_v6 }
0x29c6   : > { %4310 = vadd.xlane.f32.xlu1 %v4309_v12 }
0x29c7   : > { %6140 = vpow2.f32 %v4527_v10 }
0x29cc   : > { %v6139_v17 = vpop.eup %6138 }
0x29cd   : > { %v4419_v18 = vsel %vm498_vm2, %v6139_v17, 0.0 }
0x29ce   : > { %4420 = vadd.xlane.f32.xlu0 %v4419_v18 }
0x29d4   : > { %v6141_v5 = vpop.eup %6140 }
0x29d5   : > { %v4529_v8 = vsel %vm498_vm2, %v6141_v5, 0.0 }
0x29d7   : > { %4315 = vrot.lane.b32.xlu1 %v7290_v15, %s7554_s8 }
0x29dc   : > { %v4199_v3 = vpop.xlane.xlu0 %4198 }
0x29dd   : > { %6142 = vrcp.f32 %v4199_v3 }
0x29e4   : > { %4204 = vrot.lane.b32.xlu0 %v7290_v15, %s7555_s10 }
0x29e8   : > { %4535 = vrot.lane.b32.xlu0 %v7290_v15, %s7545_s27 }
0x29ea   : > { %v6143_v21 = vpop.eup %6142 }
0x29eb   : > { %v4201_v23 = vmul.f32 %v6143_v21, %v6135_v56 }
0x29ed   : > { %v4202_v28 = vpack.c.bf16 %v4201_v23, %v4201_v23  ;;  %v6033_v23 = vld [vmem:[%s7470_s5 + $0x70] sm:$0xff]  }
0x29fb   : > { %4530 = vadd.xlane.f32.xlu1 %v4529_v8 }
0x2a0c   : > { %4425 = vrot.lane.b32.xlu1 %v7290_v15, %s7544_s18 }
0x2a10   : > { %4605 = vrot.lane.b32.xlu1 %v7256_v33, %s7550_s28 }
0x2a4f   : > { %v4311_v20 = vpop.xlane.xlu1 %4310 }
0x2a50   : > { %6144 = vrcp.f32 %v4311_v20 }
0x2a53   : > { %v4316_v25 = vpop.permute.xlu1 %4315 }
0x2a54   : > { %v4321_v15 = vsel %vm562_vm3, %v4316_v25, 0 }
0x2a57   : > { %v4421_v22 = vpop.xlane.xlu0 %4420 }
0x2a58   : > { %6146 = vrcp.f32 %v4421_v22  ;;  %v6032_v22 = vld [vmem:[%s7470_s5 + $0x78] sm:$0xff]  }
0x2a5b   : > { %v4205_v24 = vpop.permute.xlu0 %4204 }
0x2a5c   : > { %v4210_v55 = vsel %vm562_vm3, %v4205_v24, 0 }
0x2a5d   : > { %5831 = vmatpush3.bf16.msra.mxu1 %v4210_v55  ;;  %v6145_v35 = vpop.eup %6144 }
0x2a5e   : > { %5842 = vmatprep.subr.bf16.mxu1 %v6311_v0  ;;  %v4313_v33 = vmul.f32 %v6145_v35, %v6137_v13  ;;  %v5213_v35 = vld [vmem:[#allocation5 + $0x10] ss:$0 sm:$0xff] }
0x2a5f   : > { %v4536_v43 = vpop.permute.xlu0 %4535 }
0x2a60   : > { %5833 = vmatmul.mubr.msk.bf16.vlgmr.msra.gmra.mxu1 %vm498_vm2, %v4202_v28  ;;  %v4314_v36 = vpack.c.bf16 %v4313_v33, %v4313_v33  ;;  %v4541_v45 = vsel %vm562_vm3, %v4536_v43, 0  ;;  %v5214_v33 = vld [vmem:[#allocation5 + $0x11] ss:$0 sm:$0xff] }
0x2a61   : > { %5843 = vmatpush3.bf16.msra.mxu1 %v4321_v15  ;;  %5844 = vmatprep.mubr.msk.bf16.mxu1 %vm6312_vm0, %v6311_v0 }
0x2a62   : > { %5854 = vmatprep.subr.bf16.mxu1 %v6311_v0 }
0x2a65   : > { %v6147_v37 = vpop.eup %6146 }
0x2a66   : > { %v4423_v29 = vmul.f32 %v6147_v37, %v6139_v17 }
0x2a68   : > { %5845 = vmatmul.mubr.msk.bf16.vlgmr.msra.gmra.mxu1 %vm498_vm2, %v4314_v36  ;;  %v4424_v32 = vpack.c.bf16 %v4423_v29, %v4423_v29  ;;  %v6034_v29 = vld [vmem:[%s7470_s5 + $0x68] sm:$0xff]  }
0x2a69   : > { %5856 = vmatprep.mubr.msk.bf16.mxu1 %vm6312_vm0, %v6311_v0 }
0x2a84   : > { %v4531_v38 = vpop.xlane.xlu1 %4530 }
0x2a85   : > { %6148 = vrcp.f32 %v4531_v38 }
0x2a88   : > { %v4426_v40 = vpop.permute.xlu1 %4425 }
0x2a89   : > { %v4431_v42 = vsel %vm562_vm3, %v4426_v40, 0  ;;  %v6035_v40 = vld [vmem:[%s7470_s5 + $0x60] sm:$0xff]  }
0x2a8a   : > { %5855 = vmatpush3.bf16.msra.mxu1 %v4431_v42  ;;  %v5215_v42 = vld [vmem:[%s7471_s6 + $0x6] sm:$0x3] }
0x2a8b   : > { %5866 = vmatprep.subr.bf16.mxu1 %v6311_v0  ;;  %v4690_v43 = vrot.slane %v5215_v42, %v6522_v7 }
0x2a8c   : > { %v4606_v1 = vpop.permute.xlu1 %4605 }
0x2a8d   : > { %5857 = vmatmul.mubr.msk.bf16.vlgmr.msra.gmra.mxu1 %vm498_vm2, %v4424_v32  ;;  %5873 = vmatpush3.bf16.msra.mxu0 %v4606_v1 }
0x2a8e   : > { %5867 = vmatpush3.bf16.msra.mxu1 %v4541_v45  ;;  %5868 = vmatprep.mubr.msk.bf16.mxu1 %vm6312_vm0, %v6311_v0 }
0x2a8f   : > { %5880 = vmatprep.subr.bf16.mxu1 %v6311_v0  ;;  %5874 = vmatprep.subr.bf16.mxu0 %v6311_v0 }
0x2a92   : > { %v6149_v47 = vpop.eup %6148 }
0x2a93   : > { %v4533_v30 = vmul.f32 %v6149_v47, %v6141_v5 }
0x2a95   : > { %v4534_v49 = vpack.c.bf16 %v4533_v30, %v4533_v30 }
0x2a97   : > { %5869 = vmatmul.mubr.msk.bf16.vlgmr.msra.gmra.mxu1 %vm498_vm2, %v4534_v49 }
0x2a98   : > { %5884 = vmatprep.mubr.msk.bf16.mxu1 %vm6312_vm0, %v6311_v0  ;;  %5881 = vmatpush3.bf16.msra.mxu1 %v6030_v41 }
0x2a99   : > { %5882 = vmatprep.subr.bf16.mxu1 %v6311_v0 }
0x2b20   : > { %v4246_v34 = vpop.f32.mrf.mxu1 }
0x2b22   : > { %v5834_v51 = vpop.f32.mrf.mxu1 }
0x2b23   : > { %v4760_v51 = vrot.slane %v5215_v42, %v6630_v63  ;;  %v6037_v63 = vld [vmem:[#allocation7] sm:$0xff]  }
0x2b24   : > { %v4249_v26 = vpop.f32.mrf.mxu1 }
0x2b26   : > { %v5835_v14 = vpop.f32.mrf.mxu1 }
0x2b28   : > { %v4357_v58 = vpop.f32.mrf.mxu1 }
0x2b29   : > { %4584 = vrot.lane.b32.xlu0 %v4357_v58, %s7551_s0  ;;  %s7557_s0 = sld [smem:[#allocation24_spill]] }
0x2b2a   : > { %v5846_v44 = vpop.f32.mrf.mxu1 }
0x2b2c   : > { %v4360_v27 = vpop.f32.mrf.mxu1 }
0x2b2e   : > { %v5847_v52 = vpop.f32.mrf.mxu1 }
0x2b4d   : > { %v4467_v53 = vpop.f32.mrf.mxu1 }
0x2b4e   : > { %4588 = vrot.lane.b32.xlu1 %v4467_v53, %s7552_s1  ;;  %s7424_s1 = scalar_lea.hbm %s7557_s0, %s5243_s24 }
0x2b4f   : > { %v5858_v54 = vpop.f32.mrf.mxu1 }
0x2b51   : > { %v4470_v57 = vpop.f32.mrf.mxu1 }
0x2b52   : > { %4603 = vrot.lane.b32.xlu1 %v7263_v46, %s7550_s28  ;;  %s6234_s28 = scalar_lea.vmem %s7426_s26, 128 }
0x2b53   : > { %v5859_v4 = vpop.f32.mrf.mxu1  ;;  %p6235_p10 = scmp.ne.s32.totalorder %s7426_s26, %s6234_s28  ;;  %p6242_p8 = scmp.lt.s32.totalorder %s6240_s12, %s6234_s28 }
0x2b55   : > { %p6236_p2 = pnand %p6235_p10, %p7558_p12  ;;  %p6243_p11 = por %p6242_p8, %p6241_p7 }
0x2b57   : > { %v4577_v59 = vpop.f32.mrf.mxu1  ;;  %p6237_p4 = pneg %p6236_p2 }
0x2b58   : > { %4592 = vrot.lane.b32.xlu0 %v4577_v59, %s7553_s3  ;;  %s4924_s3 = scalar_lea.sflag [#allocation4], %s409_s13 }
0x2b59   : > { %v5870_v2 = vpop.f32.mrf.mxu1  ;;  %p6244_p0 = pnand %p6243_p11, %p6237_p4 }
0x2b5a   : > { %v6036_v2 = vld [vmem:[#allocation7 + $0x8] sm:$0xff]  }
0x2b5b   : > { %v4580_v50 = vpop.f32.mrf.mxu1 }
0x2b5d   : > { %v5871_v31 = vpop.f32.mrf.mxu1 }
0x2b9b   : > { %v4585_v61 = vpop.permute.xlu0 %4584 }
0x2b9c   : > { %v4595_v62 = vsel %vm498_vm2, %v4246_v34, %v4585_v61  ;;  %v5236_v61 = vld [vmem:[#allocation5 + $0x12] ss:$0 sm:$0xff] }
0x2bc0   : > { %v4589_v56 = vpop.permute.xlu1 %4588 }
0x2bc1   : > { %v4596_v39 = vsel %vm949_vm4, %v4595_v62, %v4589_v56 }
0x2bc4   : > { %v4604_v60 = vpop.permute.xlu1 %4603 }
0x2bc5   : > { %5875 = vmatpush3.bf16.msra.mxu0 %v4604_v60 }
0x2bc6   : > { %5888 = vmatprep.subr.bf16.mxu0 %v6311_v0 }
0x2bca   : > { %v4593_v11 = vpop.permute.xlu0 %4592 }
0x2bcb   : > { %v4597_v46 = vsel %vm951_vm5, %v4596_v39, %v4593_v11  ;;  %v5237_v39 = vld [vmem:[#allocation5 + $0x13] ss:$0 sm:$0xff] }
0x2bcc   : > { %v4598_v48 = vpack.c.bf16 %v4597_v46, %v4597_v46 }
0x2bce   : > { %5877 = vmatmul.mubr.msk.bf16.vlgmr.msra.gmra.mxu0 %vm450_vm1, %v4598_v48 }
0x2bcf   : > { %5896 = vmatprep.mubr.msk.bf16.mxu0 %vm6312_vm0, %v6311_v0  ;;  %5889 = vmatpush3.bf16.msra.mxu0 %v6032_v22 }
0x2bd0   : > { %5890 = vmatprep.subr.bf16.mxu0 %v6311_v0 }
0x2bd3   : > { %5891 = vmatpush3.bf16.msra.mxu0 %v6033_v23 }
0x2bd4   : > { %5892 = vmatprep.subr.bf16.mxu0 %v6311_v0 }
0x2bd7   : > { %5893 = vmatpush3.bf16.msra.mxu0 %v6034_v29 }
0x2bd8   : > { %5894 = vmatprep.subr.bf16.mxu0 %v6311_v0 }
0x2bdb   : > { %5895 = vmatpush3.bf16.msra.mxu0 %v6035_v40 }
0x2c8e   : > { %v4646_v13 = vpop.f32.mrf.mxu0 }
0x2c8f   : > { %v4647_v12 = vadd.f32 %v4646_v13, %v4602_v16 }
0x2c90   : > { %v5878_v17 = vpop.f32.mrf.mxu0 }
0x2c91   : > { %v4652_v18 = vadd.f32 %v4647_v12, %v7283_v9  ;;  %v6031_v9 = vld [vmem:[%s7469_s4 + $0x30] sm:$0xff]  }
0x2c92   : > { %v4649_v19 = vpop.f32.mrf.mxu0  ;;  %5883 = vmatpush3.bf16.msra.mxu1 %v6031_v9 }
0x2c93   : > { %v4656_v6 = vsel %vm450_vm1, %v4652_v18, 0.0  ;;  %5900 = vmatprep.subr.bf16.mxu1 %v6311_v0 }
0x2c94   : > { %4657 = vadd.xlane.f32.xlu0 %v4656_v6  ;;  %v5879_v10 = vpop.f32.mrf.mxu0 }
0x2d1d   : > { %v4658_v5 = vpop.xlane.xlu0 %4657 }
0x2d1e   : > { %v4659_v8 = vmul.f32 0.03125, %v4658_v5 }
0x2d20   : > { %v4660_v3 = vsub.f32 %v4652_v18, %v4659_v8 }
0x2d22   : > { %v4661_v20 = vmul.f32 %v4660_v3, %v4660_v3 }
0x2d24   : > { %v4662_v21 = vsel %vm450_vm1, %v4661_v20, 0.0 }
0x2d25   : > { %4663 = vadd.xlane.f32.xlu1 %v4662_v21 }
0x2dae   : > { %v4664_v24 = vpop.xlane.xlu1 %4663 }
0x2daf   : > { %v4665_v55 = vmul.f32 0.03125, %v4664_v24 }
0x2db1   : > { %v4666_v25 = vadd.f32 1e-06, %v4665_v55 }
0x2db3   : > { %6150 = vrsqrt.f32 %v4666_v25 }
0x2dc0   : > { %v6151_v28 = vpop.eup %6150 }
0x2dc1   : > { %v4668_v15 = vmul.f32 %v6151_v28, %v4660_v3 }
0x2dc3   : > { %v4673_v36 = vmul.f32 %v5213_v35, %v4668_v15 }
0x2dc5   : > { %v4678_v37 = vadd.f32 %v5214_v33, %v4673_v36 }
0x2dc7   : > { %v4681_v38 = vpack.c.bf16 %v4678_v37, %v4678_v37 }
0x2dc9   : > { %5885 = vmatmul.mubr.msk.bf16.vlgmr.msra.gmra.mxu1 %vm450_vm1, %v4681_v38 }
0x2dca   : > { %5904 = vmatprep.mubr.msk.bf16.mxu1 %vm6312_vm0, %v6311_v0  ;;  %5901 = vmatpush3.bf16.msra.mxu1 %v6036_v2 }
0x2dcb   : > { %5902 = vmatprep.subr.bf16.mxu1 %v6311_v0  ;;  %v5238_v0 = vld [vmem:[%s7556_s9] ss:$0 sm:$0xff] }
0x2dce   : > { %5903 = vmatpush3.bf16.msra.mxu1 %v6037_v63 }
0x2e89   : > { %v4740_v32 = vpop.f32.mrf.mxu1 }
0x2e8a   : > { %v4741_v45 = vadd.f32 %v4740_v32, %v4690_v43 }
0x2e8b   : > { %v5886_v47 = vpop.f32.mrf.mxu1 }
0x2e8c   : > { %v4746_v30 = vmax.f32 %v4741_v45, 0.0 }
0x2e8d   : > { %v4743_v49 = vpop.f32.mrf.mxu1 }
0x2e8e   : > { %v4747_v1 = vpack.c.bf16 %v4746_v30, %v4746_v30 }
0x2e8f   : > { %v5887_v34 = vpop.f32.mrf.mxu1 }
0x2e90   : > { %5897 = vmatmul.mubr.msk.bf16.vlgmr.msra.gmra.mxu0 %vm1137_vm6, %v4747_v1 }
0x2f50   : > { %v4822_v26 = vpop.f32.mrf.mxu0 }
0x2f51   : > { %v4823_v14 = vadd.f32 %v4822_v26, %v4760_v51 }
0x2f52   : > { %v5898_v58 = vpop.f32.mrf.mxu0 }
0x2f53   : > { %v4828_v44 = vadd.f32 %v4823_v14, %v4678_v37 }
0x2f54   : > { %v4825_v27 = vpop.f32.mrf.mxu0 }
0x2f55   : > { %v4832_v52 = vsel %vm450_vm1, %v4828_v44, 0.0 }
0x2f56   : > { %4833 = vadd.xlane.f32.xlu0 %v4832_v52  ;;  %v5899_v7 = vpop.f32.mrf.mxu0 }
0x2fdf   : > { %v4834_v53 = vpop.xlane.xlu0 %4833 }
0x2fe0   : > { %v4835_v54 = vmul.f32 0.03125, %v4834_v53 }
0x2fe2   : > { %v4836_v57 = vsub.f32 %v4828_v44, %v4835_v54 }
0x2fe4   : > { %v4837_v4 = vmul.f32 %v4836_v57, %v4836_v57 }
0x2fe6   : > { %v4838_v59 = vsel %vm450_vm1, %v4837_v4, 0.0 }
0x2fe7   : > { %4839 = vadd.xlane.f32.xlu0 %v4838_v59 }
0x3070   : > { %v4840_v50 = vpop.xlane.xlu0 %4839 }
0x3071   : > { %v4841_v31 = vmul.f32 0.03125, %v4840_v50 }
0x3073   : > { %v4842_v56 = vadd.f32 1e-06, %v4841_v31 }
0x3075   : > { %6152 = vrsqrt.f32 %v4842_v56 }
0x3082   : > { %v6153_v60 = vpop.eup %6152 }
0x3083   : > { %v4844_v62 = vmul.f32 %v6153_v60, %v4836_v57 }
0x3085   : > { %v4849_v11 = vmul.f32 %v5236_v61, %v4844_v62 }
0x3087   : > { %v4854_v46 = vadd.f32 %v5237_v39, %v4849_v11 }
0x3089   : > { %v4855_v48 = vpack.c.bf16 %v4854_v46, %v4854_v46 }
0x308b   : > { %5905 = vmatmul.mubr.msk.bf16.vlgmr.msra.gmra.mxu1 %vm450_vm1, %v4855_v48 }
0x314b   : > { %v4916_v16 = vpop.f32.mrf.mxu1 }
0x314c   : > { %v4917_v13 = vadd.f32 %v5238_v0, %v4916_v16 }
0x314d   : > { %v5906_v12 = vpop.f32.mrf.mxu1 }
0x314e   : > { %4922 = vst [vmem:[%s411_s11] sm:$0xff] %v4917_v13 }
0x314f   : > { %v4919_v17 = vpop.f32.mrf.mxu1 }
0x3150   : > { %6247 = shalt.err (!%p6244_p0)
}
0x3151   : > { %s6248_s21 = scalar_lea.hbm %s7424_s1, 128  ;;  %s6252_s27 = scalar_lea.hbm %s7557_s0, 256 }
0x3152   : > { %p6249_p6 = scmp.ne.s32.totalorder %s7424_s1, %s6248_s21  ;;  %p6253_p5 = scmp.lt.s32.totalorder %s7424_s1, %s7557_s0 }
0x3153   : > { %p6254_p1 = scmp.lt.s32.totalorder %s6252_s27, %s6248_s21 }
0x3154   : > { %p6250_p9 = pnand %p6249_p6, %p7558_p12 }
0x3155   : > { %p6255_p3 = por %p6254_p1, %p6253_p5 }
0x3156   : > { %p6251_p13 = pneg %p6250_p9 }
0x3158   : > { %p6256_p10 = pnand %p6255_p3, %p6251_p13 }
0x315a   : > { %6259 = shalt.err (!%p6256_p10)
}
0x315b   : > { %5921 = dma.vmem_to_hbm [thread:$0]  (%p7558_p12), %s7426_s26, 128, %s7424_s1, %s4924_s3   ;;  %v5907_v18 = vpop.f32.mrf.mxu1 }
0x315c PF: > { %s7559_s20 = sld [smem:[#allocation14_spill]] }
0x315d   : > { %s7560_s7 = sld [smem:[#allocation12_spill]] }
0x315e   : > { %s7561_s13 = sld [smem:[#allocation17_spill]] }
0x3162   : > { %p5943_p2 = scmp.ge.s32.totalorder %s7559_s20, 2 }
0x3163   : > { %s4949_s15 = sand.u32 1, %s7560_s7  }
0x3164   : > { %p7562_p4 = scmp.ne.s32.totalorder %s7561_s13, 0  ;;  %s4950_s16 = scalar_lea.sflag [#allocation4], %s4949_s15 }
0x3166   : > { %p5934_p7 = pnand %p5943_p2, %p7562_p4 }
0x3168   : > { %p5935_p8 = pneg %p5934_p7 }
0x316a   : > { %6285 = dma.done.wait (%p5935_p8), %s4950_s16, 128  }
0x316b   : > { %6287 = vsyncadd (%p5935_p8), %s4950_s16, 4294967168  ;;  %s7563_s16 = sld [smem:[#allocation15_spill]]  ;;  %s7566_s13 = smov %s6294_s14 }
0x316c   : > { %s7564_s19 = sld [smem:[#allocation13_spill]] }
0x316d   : > { %s7565_s15 = sld [smem:[#allocation16_spill]] }
0x3171   : > { %p22_p11 = scmp.ge.s32.totalorder %s7563_s16, 4  }
0x3172   : > { %s7567_s14 = smov %s7564_s19 }
0x3173   :  { %24 = sbr.rel (!%p22_p11) target bundleno = 13 (0xd), region = 139 }
0x3178   :  { %4955 = vsyncpa [#allocation3], 1 }
0x3179   :  { %4957 = vsyncpa [#allocation3 + $0x1], 1 }
0x317a   :  { %4958 = vsyncpa [#allocation6], 1 }
0x317b   :  { %4959 = vsyncpa [#allocation4], 1 }
0x317c   :  { %4961 = vsyncpa [#allocation4 + $0x1], 1 }

</bundles_post_ra>
